<compile_context>
chip_gen: v5e
topology: v5e:2x2
jax: 0.10.0
libtpu: 0.0.40
codegen_flags: <defaults>
</compile_context>

<pallas_src>
import functools

import jax
import jax.numpy as jnp
from jax.experimental import pallas as pl
from jax.experimental.pallas import tpu as pltpu


# ----------------------------------------------------------------------------- kernel
def lstm_kernel(idx_ref, a_ref, b_ref,
                w_in_ref, w_hh_ref, b_gate_ref,
                w_o_ref, b_o_ref,
                out_ref,
                *, T, B, GP, NA, NIDX):
    f32 = jnp.float32
    bf16 = jnp.bfloat16
    TB = T * B
    KP = idx_ref.shape[-1]

    # ---- fused input operand built in vregs: [ idx | onehot(a) | onehot(b) ] -------
    # lanes [0,NIDX) = idx features, [NIDX,NIDX+NA) = one-hot(a), then one-hot(b).
    lane = jax.lax.broadcasted_iota(jnp.int32, (TB, KP), 1)
    a_id = a_ref[...].reshape(TB, 1)
    b_id = b_ref[...].reshape(TB, 1)
    x = (idx_ref[...].reshape(TB, KP)
         + (lane == a_id + NIDX).astype(f32)
         + (lane == b_id + (NIDX + NA)).astype(f32))

    # ---- ONE hoisted matmul: input-side gate pre-activations for ALL timesteps -----
    # (kept f32: off the serial critical path; one-hot rows are exact anyway)
    gates_x = (jnp.dot(x, w_in_ref[...], preferred_element_type=f32)
               + b_gate_ref[...])                                   # (TB, 4*GP)

    w_hh = w_hh_ref[...]          # bf16 (GP, 4*GP), loaded once -> loop-invariant push
    w_o = w_o_ref[...]            # bf16 (GP, MP)
    b_o = b_o_ref[...]            # f32  (1, MP)

    h = jnp.zeros((B, GP), f32)
    c = jnp.zeros((B, GP), f32)

    # ---- fully-unrolled serial recurrence; gate blocks [i,f,o,g], 128-lane aligned --
    for t in range(T):
        gates = (gates_x[t * B:(t + 1) * B, :]
                 + jnp.dot(h.astype(bf16), w_hh, preferred_element_type=f32))
        sig = jax.nn.sigmoid(gates)                 # ONE wide EUP pass over all 4 blocks
        i_g = sig[:, 0 * GP:1 * GP]
        f_g = sig[:, 1 * GP:2 * GP]
        o_g = sig[:, 2 * GP:3 * GP]
        g_g = 2.0 * sig[:, 3 * GP:4 * GP] - 1.0     # tanh(x) = 2*sigmoid(2x) - 1 (g cols pre-scaled x2)
        c = f_g * c + i_g * g_g
        h = o_g * jnp.tanh(c)
        # per-step output projection: tiny MXU op hides under the EUP chain;
        # (B, MP) = (8, 128) -> one unmasked full-vreg store.
        out_ref[t] = jnp.dot(h.astype(bf16), w_o, preferred_element_type=f32) + b_o


# ----------------------------------------------------------------------------- weight prep
def _reorder_pad_scale_gates(w, H3, GP):
    """PyTorch gate columns [i,f,g,o] -> [i,f,o,g]; zero-pad each block H3->GP;
    scale the g block by 2 so tanh(x) can be computed as 2*sigmoid(2x)-1.
    Pad columns stay exactly 0, preserving the h/c pad-lane invariant."""
    blocks = [w[..., 0 * H3:1 * H3],
              w[..., 1 * H3:2 * H3],
              w[..., 3 * H3:4 * H3],
              2.0 * w[..., 2 * H3:3 * H3]]
    pad = [(0, 0)] * (w.ndim - 1) + [(0, GP - H3)]
    return jnp.concatenate([jnp.pad(b, pad) for b in blocks], axis=-1)


def _prepare_kernel_params(params, H, GP, MP, KP, NIDX, NA):
    H3 = 3 * H
    M = params["w_o"].shape[0]
    hi = jax.lax.Precision.HIGHEST

    w_ih_t = params["w_ih"].T                  # (3H, 12H), PyTorch weight_ih_l0.T
    w_hh_t = params["w_hh"].T                  # (3H, 12H)
    w_a = w_ih_t[:H]                           # rows multiplying a_emb
    w_b = w_ih_t[H:2 * H]                      # rows multiplying b_emb
    w_i = w_ih_t[2 * H:3 * H]                  # rows multiplying idx_emb

    # Fold idx_encoder AND the embedding table into one fused input gate weight:
    #   rows [0, NIDX)           : w_idx.T @ w_i     (raw idx features)
    #   rows [NIDX, NIDX+NA)     : emb @ w_a         (picked by one-hot of a_history)
    #   rows [NIDX+NA, NIDX+2NA) : emb @ w_b         (picked by one-hot of b_history)
    w_in = jnp.zeros((KP, 4 * H3), jnp.float32)
    w_in = w_in.at[0:NIDX].set(jnp.dot(params["w_idx"].T, w_i, precision=hi))
    w_in = w_in.at[NIDX:NIDX + NA].set(jnp.dot(params["emb"], w_a, precision=hi))
    w_in = w_in.at[NIDX + NA:NIDX + 2 * NA].set(jnp.dot(params["emb"], w_b, precision=hi))

    b_gate = (params["b_ih"] + params["b_hh"]
              + jnp.dot(params["b_idx"], w_i, precision=hi))                   # (12H,)

    bf16 = jnp.bfloat16
    return {
        "w_in":   _reorder_pad_scale_gates(w_in, H3, GP),                      # f32  (KP, 4*GP)
        "w_hh":   jnp.pad(_reorder_pad_scale_gates(w_hh_t, H3, GP),
                          ((0, GP - H3), (0, 0))).astype(bf16),                # bf16 (GP, 4*GP)
        "b_gate": _reorder_pad_scale_gates(b_gate[None, :], H3, GP),           # f32  (1, 4*GP)
        "w_o":    jnp.pad(params["w_o"].T,
                          ((0, GP - H3), (0, MP - M))).astype(bf16),           # bf16 (GP, MP)
        "b_o":    jnp.pad(params["b_o"], (0, MP - M))[None, :],                # f32  (1, MP)
    }


# ----------------------------------------------------------------------------- wrapper
def model_lstm_forward(a_history, b_history, idxs, params):
    """a_history, b_history: int32 (B, T); idxs: float32 (B, T, 19).
    Returns (B, T, move_type_cnt)."""
    emb = params["emb"]
    NA, H = emb.shape                          # move_type_cnt, n_hidden
    H3 = 3 * H
    M = params["w_o"].shape[0]
    B, T = a_history.shape
    NIDX = idxs.shape[-1]                      # 19

    GP = max(128, ((H3 + 127) // 128) * 128)              # per-gate lane-padded width
    MP = max(128, ((M + 127) // 128) * 128)               # lane-padded output width
    KP = max(128, ((NIDX + 2 * NA + 127) // 128) * 128)   # fused input width
    B_TILE = 8                                             # full f32 sublane group
    Bp = ((B + B_TILE - 1) // B_TILE) * B_TILE

    kp = _prepare_kernel_params(params, H, GP, MP, KP, NIDX, NA)

    # glue: pad batch to Bp, pad idx lanes to KP, go time-major (T, Bp, ...)
    idx_tm = jnp.pad(idxs.astype(jnp.float32),
                     ((0, Bp - B), (0, 0), (0, KP - NIDX))).transpose(1, 0, 2)  # (T,Bp,KP)
    a_tm = jnp.pad(a_history.astype(jnp.int32), ((0, Bp - B), (0, 0))).T[:, :, None]
    b_tm = jnp.pad(b_history.astype(jnp.int32), ((0, Bp - B), (0, 0))).T[:, :, None]

    cost = pl.CostEstimate(
        flops=2 * T * Bp * (KP * 4 * GP + GP * 4 * GP + GP * MP),
        transcendentals=T * Bp * 5 * GP,
        bytes_accessed=(4 * T * Bp * (KP + 2 + MP)
                        + 4 * KP * 4 * GP + 2 * GP * 4 * GP + 2 * GP * MP
                        + 4 * (4 * GP + MP)))

    out_tm = pl.pallas_call(
        functools.partial(lstm_kernel, T=T, B=B_TILE, GP=GP, NA=NA, NIDX=NIDX),
        out_shape=jax.ShapeDtypeStruct((T, Bp, MP), jnp.float32),
        grid=(Bp // B_TILE,),
        in_specs=[
            pl.BlockSpec((T, B_TILE, KP), lambda i: (0, i, 0)),
            pl.BlockSpec((T, B_TILE, 1), lambda i: (0, i, 0)),
            pl.BlockSpec((T, B_TILE, 1), lambda i: (0, i, 0)),
            pl.BlockSpec((KP, 4 * GP), lambda i: (0, 0)),
            pl.BlockSpec((GP, 4 * GP), lambda i: (0, 0)),
            pl.BlockSpec((1, 4 * GP), lambda i: (0, 0)),
            pl.BlockSpec((GP, MP), lambda i: (0, 0)),
            pl.BlockSpec((1, MP), lambda i: (0, 0)),
        ],
        out_specs=pl.BlockSpec((T, B_TILE, MP), lambda i: (0, i, 0)),
        compiler_params=pltpu.CompilerParams(dimension_semantics=("parallel",)),
        cost_estimate=cost,
    )(idx_tm, a_tm, b_tm,
      kp["w_in"], kp["w_hh"], kp["b_gate"], kp["w_o"], kp["b_o"])

    return out_tm[:, :B, :M].transpose(1, 0, 2)            # (B, T, M)


# ----------------------------------------------------------------------------- reference
def model_lstm_reference(a_history, b_history, idxs, params):
    emb = params["emb"]
    H3 = params["w_hh"].shape[1]
    a_emb = jnp.take(emb, a_history, axis=0)
    b_emb = jnp.take(emb, b_history, axis=0)
    idx_emb = idxs @ params["w_idx"].T + params["b_idx"]
    x = jnp.concatenate([a_emb, b_emb, idx_emb], axis=-1)          # (B, T, 3H)

    w_ih_t = params["w_ih"].T
    w_hh_t = params["w_hh"].T
    b = params["b_ih"] + params["b_hh"]

    def step(carry, x_t):
        h, c = carry
        gates = x_t @ w_ih_t + h @ w_hh_t + b
        i_g = jax.nn.sigmoid(gates[:, 0 * H3:1 * H3])
        f_g = jax.nn.sigmoid(gates[:, 1 * H3:2 * H3])
        g_g = jnp.tanh(gates[:, 2 * H3:3 * H3])
        o_g = jax.nn.sigmoid(gates[:, 3 * H3:4 * H3])
        c_new = f_g * c + i_g * g_g
        h_new = o_g * jnp.tanh(c_new)
        return (h_new, c_new), h_new

    B = x.shape[0]
    h0 = jnp.zeros((B, H3), jnp.float32)
    c0 = jnp.zeros((B, H3), jnp.float32)
    _, h_seq = jax.lax.scan(step, (h0, c0), x.transpose(1, 0, 2))  # (T, B, 3H)
    h_seq = h_seq.transpose(1, 0, 2)
    return h_seq @ params["w_o"].T + params["b_o"]


# ----------------------------------------------------------------------------- params
def init_params(key, move_type_cnt, n_hidden):
    """Natural (PyTorch-convention) parameters."""
    H = n_hidden
    H3 = 3 * H
    ks = jax.random.split(key, 9)
    u = lambda k, shape: jax.random.uniform(k, shape, jnp.float32, -0.1, 0.1)
    return {
        "emb":   u(ks[0], (move_type_cnt, H)),       # nn.Embedding weight
        "w_idx": u(ks[1], (H, 19)),                  # idx_encoder Linear weight
        "b_idx": u(ks[2], (H,)),
        "w_ih":  u(ks[3], (4 * H3, H3)),             # LSTM weight_ih_l0 (gate order i,f,g,o)
        "w_hh":  u(ks[4], (4 * H3, H3)),             # LSTM weight_hh_l0
        "b_ih":  u(ks[5], (4 * H3,)),
        "b_hh":  u(ks[6], (4 * H3,)),
        "w_o":   u(ks[7], (move_type_cnt, H3)),      # h_o Linear weight
        "b_o":   u(ks[8], (move_type_cnt,)),
    }


# ----------------------------------------------------------------------------- main
if __name__ == "__main__":
    move_type_cnt = 16
    n_hidden = 32
    B, T = 2, 8

    key = jax.random.PRNGKey(0)
    k_p, k_a, k_b, k_i = jax.random.split(key, 4)
    params = init_params(k_p, move_type_cnt, n_hidden)

    a_history = jax.random.randint(k_a, (B, T), 0, move_type_cnt, dtype=jnp.int32)
    b_history = jax.random.randint(k_b, (B, T), 0, move_type_cnt, dtype=jnp.int32)
    idxs = jax.random.normal(k_i, (B, T, 19), dtype=jnp.float32)

    out = jax.block_until_ready(
        jax.jit(model_lstm_forward)(a_history, b_history, idxs, params))
    ref = jax.block_until_ready(model_lstm_reference(a_history, b_history, idxs, params))

    assert out.shape == (B, T, move_type_cnt), out.shape
    # Tolerance loosened from 1e-4: the recurrent/output matmuls use bf16 operands
    # (f32 accumulation) per the perf review; expected |err| is a few 1e-4.
    err = float(jnp.max(jnp.abs(out - ref)))
    assert jnp.allclose(out, ref, atol=2e-3, rtol=2e-3), err
    print("KERNEL_OK")
</pallas_src>

<mosaic_0001>
module attributes {stable_mosaic.version = 11 : i64} {
  func.func @lstm_kernel(%arg0: i32, %arg1: memref<8x8x128xf32, #tpu.memory_space<vmem>>, %arg2: memref<8x8x1xi32, #tpu.memory_space<vmem>>, %arg3: memref<8x8x1xi32, #tpu.memory_space<vmem>>, %arg4: memref<128x512xf32, #tpu.memory_space<vmem>>, %arg5: memref<128x512xbf16, #tpu.memory_space<vmem>>, %arg6: memref<1x512xf32, #tpu.memory_space<vmem>>, %arg7: memref<128x128xbf16, #tpu.memory_space<vmem>>, %arg8: memref<1x128xf32, #tpu.memory_space<vmem>>, %arg9: memref<8x8x128xf32, #tpu.memory_space<vmem>>) attributes {dimension_semantics = [#tpu.dimension_semantics<parallel>], iteration_bounds = array<i64: 1>, scalar_prefetch = 0 : i64, scratch_operands = 0 : i64, tpu.core_type = #tpu.core_type<tc>, window_params = [{transform_indices = @transform_0, window_bounds = array<i64: 8, 8, 128>}, {transform_indices = @transform_1, window_bounds = array<i64: 8, 8, 1>}, {transform_indices = @transform_2, window_bounds = array<i64: 8, 8, 1>}, {pipeline_mode = #tpu.pipeline_mode<synchronous>, transform_indices = @transform_3, window_bounds = array<i64: 128, 512>}, {pipeline_mode = #tpu.pipeline_mode<synchronous>, transform_indices = @transform_4, window_bounds = array<i64: 128, 512>}, {pipeline_mode = #tpu.pipeline_mode<synchronous>, transform_indices = @transform_5, window_bounds = array<i64: 1, 512>}, {pipeline_mode = #tpu.pipeline_mode<synchronous>, transform_indices = @transform_6, window_bounds = array<i64: 128, 128>}, {pipeline_mode = #tpu.pipeline_mode<synchronous>, transform_indices = @transform_7, window_bounds = array<i64: 1, 128>}, {transform_indices = @transform_8, window_bounds = array<i64: 8, 8, 128>}]} {
    %0 = tpu.iota {dimensions = array<i32: 1>} : vector<64x128xi32>
    %c0 = arith.constant 0 : index
    %c0_0 = arith.constant 0 : index
    %c0_1 = arith.constant 0 : index
    %1 = vector.load %arg2[%c0, %c0_0, %c0_1] : memref<8x8x1xi32, #tpu.memory_space<vmem>>, vector<8x8x1xi32>
    %2 = vector.shape_cast %1 : vector<8x8x1xi32> to vector<64x1xi32>
    %c0_2 = arith.constant 0 : index
    %c0_3 = arith.constant 0 : index
    %c0_4 = arith.constant 0 : index
    %3 = vector.load %arg3[%c0_2, %c0_3, %c0_4] : memref<8x8x1xi32, #tpu.memory_space<vmem>>, vector<8x8x1xi32>
    %4 = vector.shape_cast %3 : vector<8x8x1xi32> to vector<64x1xi32>
    %c0_5 = arith.constant 0 : index
    %c0_6 = arith.constant 0 : index
    %c0_7 = arith.constant 0 : index
    %5 = vector.load %arg1[%c0_5, %c0_6, %c0_7] : memref<8x8x128xf32, #tpu.memory_space<vmem>>, vector<8x8x128xf32>
    %6 = vector.shape_cast %5 : vector<8x8x128xf32> to vector<64x128xf32>
    %c19_i32 = arith.constant 19 : i32
    %7 = vector.broadcast %c19_i32 : i32 to vector<64x1xi32>
    %8 = arith.addi %2, %7 : vector<64x1xi32>
    %9 = vector.broadcast %8 : vector<64x1xi32> to vector<64x128xi32>
    %10 = arith.cmpi eq, %0, %9 : vector<64x128xi32>
    %11 = arith.extui %10 : vector<64x128xi1> to vector<64x128xi32>
    %12 = arith.sitofp %11 : vector<64x128xi32> to vector<64x128xf32>
    %13 = arith.addf %6, %12 : vector<64x128xf32>
    %c35_i32 = arith.constant 35 : i32
    %14 = vector.broadcast %c35_i32 : i32 to vector<64x1xi32>
    %15 = arith.addi %4, %14 : vector<64x1xi32>
    %16 = vector.broadcast %15 : vector<64x1xi32> to vector<64x128xi32>
    %17 = arith.cmpi eq, %0, %16 : vector<64x128xi32>
    %18 = arith.extui %17 : vector<64x128xi1> to vector<64x128xi32>
    %19 = arith.sitofp %18 : vector<64x128xi32> to vector<64x128xf32>
    %20 = arith.addf %13, %19 : vector<64x128xf32>
    %c0_8 = arith.constant 0 : index
    %c0_9 = arith.constant 0 : index
    %21 = vector.load %arg4[%c0_8, %c0_9] : memref<128x512xf32, #tpu.memory_space<vmem>>, vector<128x512xf32>
    %cst = arith.constant dense<0.000000e+00> : vector<64x512xf32>
    %22 = tpu.matmul %20, %21, %cst {dimension_numbers = #tpu.dot_dimension_numbers<[1], [0], [0], [1], [0, 0, 1, 1], [], []>} : vector<64x128xf32>, vector<128x512xf32>, vector<64x512xf32> -> vector<64x512xf32>
    %c0_10 = arith.constant 0 : index
    %c0_11 = arith.constant 0 : index
    %23 = vector.load %arg6[%c0_10, %c0_11] : memref<1x512xf32, #tpu.memory_space<vmem>>, vector<1x512xf32>
    %24 = vector.broadcast %23 : vector<1x512xf32> to vector<64x512xf32>
    %25 = arith.addf %22, %24 : vector<64x512xf32>
    %c0_12 = arith.constant 0 : index
    %c0_13 = arith.constant 0 : index
    %26 = vector.load %arg5[%c0_12, %c0_13] : memref<128x512xbf16, #tpu.memory_space<vmem>>, vector<128x512xbf16>
    %c0_14 = arith.constant 0 : index
    %c0_15 = arith.constant 0 : index
    %27 = vector.load %arg7[%c0_14, %c0_15] : memref<128x128xbf16, #tpu.memory_space<vmem>>, vector<128x128xbf16>
    %c0_16 = arith.constant 0 : index
    %c0_17 = arith.constant 0 : index
    %28 = vector.load %arg8[%c0_16, %c0_17] : memref<1x128xf32, #tpu.memory_space<vmem>>, vector<1x128xf32>
    %cst_18 = arith.constant 0.000000e+00 : f32
    %29 = vector.broadcast %cst_18 : f32 to vector<8x128xf32>
    %cst_19 = arith.constant 0.000000e+00 : f32
    %30 = vector.broadcast %cst_19 : f32 to vector<8x128xf32>
    %31 = vector.extract_strided_slice %25 {offsets = [0, 0], sizes = [8, 512], strides = [1, 1]} : vector<64x512xf32> to vector<8x512xf32>
    %32 = arith.truncf %29 : vector<8x128xf32> to vector<8x128xbf16>
    %cst_20 = arith.constant dense<0.000000e+00> : vector<8x512xf32>
    %33 = tpu.matmul %32, %26, %cst_20 {dimension_numbers = #tpu.dot_dimension_numbers<[1], [0], [0], [1], [0, 0, 1, 1], [], []>} : vector<8x128xbf16>, vector<128x512xbf16>, vector<8x512xf32> -> vector<8x512xf32>
    %34 = arith.addf %31, %33 : vector<8x512xf32>
    %35 = arith.negf %34 : vector<8x512xf32>
    %36 = math.exp %35 : vector<8x512xf32>
    %cst_21 = arith.constant 1.000000e+00 : f32
    %37 = vector.broadcast %cst_21 : f32 to vector<8x512xf32>
    %38 = arith.addf %37, %36 : vector<8x512xf32>
    %39 = arith.divf %37, %38 : vector<8x512xf32>
    %40 = vector.extract_strided_slice %39 {offsets = [0, 0], sizes = [8, 128], strides = [1, 1]} : vector<8x512xf32> to vector<8x128xf32>
    %41 = vector.extract_strided_slice %39 {offsets = [0, 128], sizes = [8, 128], strides = [1, 1]} : vector<8x512xf32> to vector<8x128xf32>
    %42 = vector.extract_strided_slice %39 {offsets = [0, 256], sizes = [8, 128], strides = [1, 1]} : vector<8x512xf32> to vector<8x128xf32>
    %43 = vector.extract_strided_slice %39 {offsets = [0, 384], sizes = [8, 128], strides = [1, 1]} : vector<8x512xf32> to vector<8x128xf32>
    %cst_22 = arith.constant 2.000000e+00 : f32
    %44 = vector.broadcast %cst_22 : f32 to vector<8x128xf32>
    %45 = arith.mulf %44, %43 : vector<8x128xf32>
    %cst_23 = arith.constant 1.000000e+00 : f32
    %46 = vector.broadcast %cst_23 : f32 to vector<8x128xf32>
    %47 = arith.subf %45, %46 : vector<8x128xf32>
    %48 = arith.mulf %41, %30 : vector<8x128xf32>
    %49 = arith.mulf %40, %47 : vector<8x128xf32>
    %50 = arith.addf %48, %49 : vector<8x128xf32>
    %51 = math.tanh %50 : vector<8x128xf32>
    %52 = arith.mulf %42, %51 : vector<8x128xf32>
    %53 = arith.truncf %52 : vector<8x128xf32> to vector<8x128xbf16>
    %cst_24 = arith.constant dense<0.000000e+00> : vector<8x128xf32>
    %54 = tpu.matmul %53, %27, %cst_24 {dimension_numbers = #tpu.dot_dimension_numbers<[1], [0], [0], [1], [0, 0, 1, 1], [], []>} : vector<8x128xbf16>, vector<128x128xbf16>, vector<8x128xf32> -> vector<8x128xf32>
    %55 = vector.broadcast %28 : vector<1x128xf32> to vector<8x128xf32>
    %56 = arith.addf %54, %55 : vector<8x128xf32>
    %c0_25 = arith.constant 0 : index
    %c0_26 = arith.constant 0 : index
    %c0_27 = arith.constant 0 : index
    %57 = vector.load %arg9[%c0_25, %c0_26, %c0_27] : memref<8x8x128xf32, #tpu.memory_space<vmem>>, vector<1x8x128xf32>
    %58 = vector.shape_cast %57 : vector<1x8x128xf32> to vector<8x128xf32>
    %59 = vector.shape_cast %56 : vector<8x128xf32> to vector<1x8x128xf32>
    tpu.vector_store %arg9[%c0_25, %c0_26, %c0_27], %59 {strides = array<i32>} : memref<8x8x128xf32, #tpu.memory_space<vmem>>, vector<1x8x128xf32>,
    %60 = vector.extract_strided_slice %25 {offsets = [8, 0], sizes = [8, 512], strides = [1, 1]} : vector<64x512xf32> to vector<8x512xf32>
    %61 = arith.truncf %52 : vector<8x128xf32> to vector<8x128xbf16>
    %cst_28 = arith.constant dense<0.000000e+00> : vector<8x512xf32>
    %62 = tpu.matmul %61, %26, %cst_28 {dimension_numbers = #tpu.dot_dimension_numbers<[1], [0], [0], [1], [0, 0, 1, 1], [], []>} : vector<8x128xbf16>, vector<128x512xbf16>, vector<8x512xf32> -> vector<8x512xf32>
    %63 = arith.addf %60, %62 : vector<8x512xf32>
    %64 = arith.negf %63 : vector<8x512xf32>
    %65 = math.exp %64 : vector<8x512xf32>
    %cst_29 = arith.constant 1.000000e+00 : f32
    %66 = vector.broadcast %cst_29 : f32 to vector<8x512xf32>
    %67 = arith.addf %66, %65 : vector<8x512xf32>
    %68 = arith.divf %66, %67 : vector<8x512xf32>
    %69 = vector.extract_strided_slice %68 {offsets = [0, 0], sizes = [8, 128], strides = [1, 1]} : vector<8x512xf32> to vector<8x128xf32>
    %70 = vector.extract_strided_slice %68 {offsets = [0, 128], sizes = [8, 128], strides = [1, 1]} : vector<8x512xf32> to vector<8x128xf32>
    %71 = vector.extract_strided_slice %68 {offsets = [0, 256], sizes = [8, 128], strides = [1, 1]} : vector<8x512xf32> to vector<8x128xf32>
    %72 = vector.extract_strided_slice %68 {offsets = [0, 384], sizes = [8, 128], strides = [1, 1]} : vector<8x512xf32> to vector<8x128xf32>
    %cst_30 = arith.constant 2.000000e+00 : f32
    %73 = vector.broadcast %cst_30 : f32 to vector<8x128xf32>
    %74 = arith.mulf %73, %72 : vector<8x128xf32>
    %cst_31 = arith.constant 1.000000e+00 : f32
    %75 = vector.broadcast %cst_31 : f32 to vector<8x128xf32>
    %76 = arith.subf %74, %75 : vector<8x128xf32>
    %77 = arith.mulf %70, %50 : vector<8x128xf32>
    %78 = arith.mulf %69, %76 : vector<8x128xf32>
    %79 = arith.addf %77, %78 : vector<8x128xf32>
    %80 = math.tanh %79 : vector<8x128xf32>
    %81 = arith.mulf %71, %80 : vector<8x128xf32>
    %82 = arith.truncf %81 : vector<8x128xf32> to vector<8x128xbf16>
    %cst_32 = arith.constant dense<0.000000e+00> : vector<8x128xf32>
    %83 = tpu.matmul %82, %27, %cst_32 {dimension_numbers = #tpu.dot_dimension_numbers<[1], [0], [0], [1], [0, 0, 1, 1], [], []>} : vector<8x128xbf16>, vector<128x128xbf16>, vector<8x128xf32> -> vector<8x128xf32>
    %84 = vector.broadcast %28 : vector<1x128xf32> to vector<8x128xf32>
    %85 = arith.addf %83, %84 : vector<8x128xf32>
    %c1 = arith.constant 1 : index
    %c0_33 = arith.constant 0 : index
    %c0_34 = arith.constant 0 : index
    %86 = vector.load %arg9[%c1, %c0_33, %c0_34] : memref<8x8x128xf32, #tpu.memory_space<vmem>>, vector<1x8x128xf32>
    %87 = vector.shape_cast %86 : vector<1x8x128xf32> to vector<8x128xf32>
    %88 = vector.shape_cast %85 : vector<8x128xf32> to vector<1x8x128xf32>
    tpu.vector_store %arg9[%c1, %c0_33, %c0_34], %88 {strides = array<i32>} : memref<8x8x128xf32, #tpu.memory_space<vmem>>, vector<1x8x128xf32>,
    %89 = vector.extract_strided_slice %25 {offsets = [16, 0], sizes = [8, 512], strides = [1, 1]} : vector<64x512xf32> to vector<8x512xf32>
    %90 = arith.truncf %81 : vector<8x128xf32> to vector<8x128xbf16>
    %cst_35 = arith.constant dense<0.000000e+00> : vector<8x512xf32>
    %91 = tpu.matmul %90, %26, %cst_35 {dimension_numbers = #tpu.dot_dimension_numbers<[1], [0], [0], [1], [0, 0, 1, 1], [], []>} : vector<8x128xbf16>, vector<128x512xbf16>, vector<8x512xf32> -> vector<8x512xf32>
    %92 = arith.addf %89, %91 : vector<8x512xf32>
    %93 = arith.negf %92 : vector<8x512xf32>
    %94 = math.exp %93 : vector<8x512xf32>
    %cst_36 = arith.constant 1.000000e+00 : f32
    %95 = vector.broadcast %cst_36 : f32 to vector<8x512xf32>
    %96 = arith.addf %95, %94 : vector<8x512xf32>
    %97 = arith.divf %95, %96 : vector<8x512xf32>
    %98 = vector.extract_strided_slice %97 {offsets = [0, 0], sizes = [8, 128], strides = [1, 1]} : vector<8x512xf32> to vector<8x128xf32>
    %99 = vector.extract_strided_slice %97 {offsets = [0, 128], sizes = [8, 128], strides = [1, 1]} : vector<8x512xf32> to vector<8x128xf32>
    %100 = vector.extract_strided_slice %97 {offsets = [0, 256], sizes = [8, 128], strides = [1, 1]} : vector<8x512xf32> to vector<8x128xf32>
    %101 = vector.extract_strided_slice %97 {offsets = [0, 384], sizes = [8, 128], strides = [1, 1]} : vector<8x512xf32> to vector<8x128xf32>
    %cst_37 = arith.constant 2.000000e+00 : f32
    %102 = vector.broadcast %cst_37 : f32 to vector<8x128xf32>
    %103 = arith.mulf %102, %101 : vector<8x128xf32>
    %cst_38 = arith.constant 1.000000e+00 : f32
    %104 = vector.broadcast %cst_38 : f32 to vector<8x128xf32>
    %105 = arith.subf %103, %104 : vector<8x128xf32>
    %106 = arith.mulf %99, %79 : vector<8x128xf32>
    %107 = arith.mulf %98, %105 : vector<8x128xf32>
    %108 = arith.addf %106, %107 : vector<8x128xf32>
    %109 = math.tanh %108 : vector<8x128xf32>
    %110 = arith.mulf %100, %109 : vector<8x128xf32>
    %111 = arith.truncf %110 : vector<8x128xf32> to vector<8x128xbf16>
    %cst_39 = arith.constant dense<0.000000e+00> : vector<8x128xf32>
    %112 = tpu.matmul %111, %27, %cst_39 {dimension_numbers = #tpu.dot_dimension_numbers<[1], [0], [0], [1], [0, 0, 1, 1], [], []>} : vector<8x128xbf16>, vector<128x128xbf16>, vector<8x128xf32> -> vector<8x128xf32>
    %113 = vector.broadcast %28 : vector<1x128xf32> to vector<8x128xf32>
    %114 = arith.addf %112, %113 : vector<8x128xf32>
    %c2 = arith.constant 2 : index
    %c0_40 = arith.constant 0 : index
    %c0_41 = arith.constant 0 : index
    %115 = vector.load %arg9[%c2, %c0_40, %c0_41] : memref<8x8x128xf32, #tpu.memory_space<vmem>>, vector<1x8x128xf32>
    %116 = vector.shape_cast %115 : vector<1x8x128xf32> to vector<8x128xf32>
    %117 = vector.shape_cast %114 : vector<8x128xf32> to vector<1x8x128xf32>
    tpu.vector_store %arg9[%c2, %c0_40, %c0_41], %117 {strides = array<i32>} : memref<8x8x128xf32, #tpu.memory_space<vmem>>, vector<1x8x128xf32>,
    %118 = vector.extract_strided_slice %25 {offsets = [24, 0], sizes = [8, 512], strides = [1, 1]} : vector<64x512xf32> to vector<8x512xf32>
    %119 = arith.truncf %110 : vector<8x128xf32> to vector<8x128xbf16>
    %cst_42 = arith.constant dense<0.000000e+00> : vector<8x512xf32>
    %120 = tpu.matmul %119, %26, %cst_42 {dimension_numbers = #tpu.dot_dimension_numbers<[1], [0], [0], [1], [0, 0, 1, 1], [], []>} : vector<8x128xbf16>, vector<128x512xbf16>, vector<8x512xf32> -> vector<8x512xf32>
    %121 = arith.addf %118, %120 : vector<8x512xf32>
    %122 = arith.negf %121 : vector<8x512xf32>
    %123 = math.exp %122 : vector<8x512xf32>
    %cst_43 = arith.constant 1.000000e+00 : f32
    %124 = vector.broadcast %cst_43 : f32 to vector<8x512xf32>
    %125 = arith.addf %124, %123 : vector<8x512xf32>
    %126 = arith.divf %124, %125 : vector<8x512xf32>
    %127 = vector.extract_strided_slice %126 {offsets = [0, 0], sizes = [8, 128], strides = [1, 1]} : vector<8x512xf32> to vector<8x128xf32>
    %128 = vector.extract_strided_slice %126 {offsets = [0, 128], sizes = [8, 128], strides = [1, 1]} : vector<8x512xf32> to vector<8x128xf32>
    %129 = vector.extract_strided_slice %126 {offsets = [0, 256], sizes = [8, 128], strides = [1, 1]} : vector<8x512xf32> to vector<8x128xf32>
    %130 = vector.extract_strided_slice %126 {offsets = [0, 384], sizes = [8, 128], strides = [1, 1]} : vector<8x512xf32> to vector<8x128xf32>
    %cst_44 = arith.constant 2.000000e+00 : f32
    %131 = vector.broadcast %cst_44 : f32 to vector<8x128xf32>
    %132 = arith.mulf %131, %130 : vector<8x128xf32>
    %cst_45 = arith.constant 1.000000e+00 : f32
    %133 = vector.broadcast %cst_45 : f32 to vector<8x128xf32>
    %134 = arith.subf %132, %133 : vector<8x128xf32>
    %135 = arith.mulf %128, %108 : vector<8x128xf32>
    %136 = arith.mulf %127, %134 : vector<8x128xf32>
    %137 = arith.addf %135, %136 : vector<8x128xf32>
    %138 = math.tanh %137 : vector<8x128xf32>
    %139 = arith.mulf %129, %138 : vector<8x128xf32>
    %140 = arith.truncf %139 : vector<8x128xf32> to vector<8x128xbf16>
    %cst_46 = arith.constant dense<0.000000e+00> : vector<8x128xf32>
    %141 = tpu.matmul %140, %27, %cst_46 {dimension_numbers = #tpu.dot_dimension_numbers<[1], [0], [0], [1], [0, 0, 1, 1], [], []>} : vector<8x128xbf16>, vector<128x128xbf16>, vector<8x128xf32> -> vector<8x128xf32>
    %142 = vector.broadcast %28 : vector<1x128xf32> to vector<8x128xf32>
    %143 = arith.addf %141, %142 : vector<8x128xf32>
    %c3 = arith.constant 3 : index
    %c0_47 = arith.constant 0 : index
    %c0_48 = arith.constant 0 : index
    %144 = vector.load %arg9[%c3, %c0_47, %c0_48] : memref<8x8x128xf32, #tpu.memory_space<vmem>>, vector<1x8x128xf32>
    %145 = vector.shape_cast %144 : vector<1x8x128xf32> to vector<8x128xf32>
    %146 = vector.shape_cast %143 : vector<8x128xf32> to vector<1x8x128xf32>
    tpu.vector_store %arg9[%c3, %c0_47, %c0_48], %146 {strides = array<i32>} : memref<8x8x128xf32, #tpu.memory_space<vmem>>, vector<1x8x128xf32>,
    %147 = vector.extract_strided_slice %25 {offsets = [32, 0], sizes = [8, 512], strides = [1, 1]} : vector<64x512xf32> to vector<8x512xf32>
    %148 = arith.truncf %139 : vector<8x128xf32> to vector<8x128xbf16>
    %cst_49 = arith.constant dense<0.000000e+00> : vector<8x512xf32>
    %149 = tpu.matmul %148, %26, %cst_49 {dimension_numbers = #tpu.dot_dimension_numbers<[1], [0], [0], [1], [0, 0, 1, 1], [], []>} : vector<8x128xbf16>, vector<128x512xbf16>, vector<8x512xf32> -> vector<8x512xf32>
    %150 = arith.addf %147, %149 : vector<8x512xf32>
    %151 = arith.negf %150 : vector<8x512xf32>
    %152 = math.exp %151 : vector<8x512xf32>
    %cst_50 = arith.constant 1.000000e+00 : f32
    %153 = vector.broadcast %cst_50 : f32 to vector<8x512xf32>
    %154 = arith.addf %153, %152 : vector<8x512xf32>
    %155 = arith.divf %153, %154 : vector<8x512xf32>
    %156 = vector.extract_strided_slice %155 {offsets = [0, 0], sizes = [8, 128], strides = [1, 1]} : vector<8x512xf32> to vector<8x128xf32>
    %157 = vector.extract_strided_slice %155 {offsets = [0, 128], sizes = [8, 128], strides = [1, 1]} : vector<8x512xf32> to vector<8x128xf32>
    %158 = vector.extract_strided_slice %155 {offsets = [0, 256], sizes = [8, 128], strides = [1, 1]} : vector<8x512xf32> to vector<8x128xf32>
    %159 = vector.extract_strided_slice %155 {offsets = [0, 384], sizes = [8, 128], strides = [1, 1]} : vector<8x512xf32> to vector<8x128xf32>
    %cst_51 = arith.constant 2.000000e+00 : f32
    %160 = vector.broadcast %cst_51 : f32 to vector<8x128xf32>
    %161 = arith.mulf %160, %159 : vector<8x128xf32>
    %cst_52 = arith.constant 1.000000e+00 : f32
    %162 = vector.broadcast %cst_52 : f32 to vector<8x128xf32>
    %163 = arith.subf %161, %162 : vector<8x128xf32>
    %164 = arith.mulf %157, %137 : vector<8x128xf32>
    %165 = arith.mulf %156, %163 : vector<8x128xf32>
    %166 = arith.addf %164, %165 : vector<8x128xf32>
    %167 = math.tanh %166 : vector<8x128xf32>
    %168 = arith.mulf %158, %167 : vector<8x128xf32>
    %169 = arith.truncf %168 : vector<8x128xf32> to vector<8x128xbf16>
    %cst_53 = arith.constant dense<0.000000e+00> : vector<8x128xf32>
    %170 = tpu.matmul %169, %27, %cst_53 {dimension_numbers = #tpu.dot_dimension_numbers<[1], [0], [0], [1], [0, 0, 1, 1], [], []>} : vector<8x128xbf16>, vector<128x128xbf16>, vector<8x128xf32> -> vector<8x128xf32>
    %171 = vector.broadcast %28 : vector<1x128xf32> to vector<8x128xf32>
    %172 = arith.addf %170, %171 : vector<8x128xf32>
    %c4 = arith.constant 4 : index
    %c0_54 = arith.constant 0 : index
    %c0_55 = arith.constant 0 : index
    %173 = vector.load %arg9[%c4, %c0_54, %c0_55] : memref<8x8x128xf32, #tpu.memory_space<vmem>>, vector<1x8x128xf32>
    %174 = vector.shape_cast %173 : vector<1x8x128xf32> to vector<8x128xf32>
    %175 = vector.shape_cast %172 : vector<8x128xf32> to vector<1x8x128xf32>
    tpu.vector_store %arg9[%c4, %c0_54, %c0_55], %175 {strides = array<i32>} : memref<8x8x128xf32, #tpu.memory_space<vmem>>, vector<1x8x128xf32>,
    %176 = vector.extract_strided_slice %25 {offsets = [40, 0], sizes = [8, 512], strides = [1, 1]} : vector<64x512xf32> to vector<8x512xf32>
    %177 = arith.truncf %168 : vector<8x128xf32> to vector<8x128xbf16>
    %cst_56 = arith.constant dense<0.000000e+00> : vector<8x512xf32>
    %178 = tpu.matmul %177, %26, %cst_56 {dimension_numbers = #tpu.dot_dimension_numbers<[1], [0], [0], [1], [0, 0, 1, 1], [], []>} : vector<8x128xbf16>, vector<128x512xbf16>, vector<8x512xf32> -> vector<8x512xf32>
    %179 = arith.addf %176, %178 : vector<8x512xf32>
    %180 = arith.negf %179 : vector<8x512xf32>
    %181 = math.exp %180 : vector<8x512xf32>
    %cst_57 = arith.constant 1.000000e+00 : f32
    %182 = vector.broadcast %cst_57 : f32 to vector<8x512xf32>
    %183 = arith.addf %182, %181 : vector<8x512xf32>
    %184 = arith.divf %182, %183 : vector<8x512xf32>
    %185 = vector.extract_strided_slice %184 {offsets = [0, 0], sizes = [8, 128], strides = [1, 1]} : vector<8x512xf32> to vector<8x128xf32>
    %186 = vector.extract_strided_slice %184 {offsets = [0, 128], sizes = [8, 128], strides = [1, 1]} : vector<8x512xf32> to vector<8x128xf32>
    %187 = vector.extract_strided_slice %184 {offsets = [0, 256], sizes = [8, 128], strides = [1, 1]} : vector<8x512xf32> to vector<8x128xf32>
    %188 = vector.extract_strided_slice %184 {offsets = [0, 384], sizes = [8, 128], strides = [1, 1]} : vector<8x512xf32> to vector<8x128xf32>
    %cst_58 = arith.constant 2.000000e+00 : f32
    %189 = vector.broadcast %cst_58 : f32 to vector<8x128xf32>
    %190 = arith.mulf %189, %188 : vector<8x128xf32>
    %cst_59 = arith.constant 1.000000e+00 : f32
    %191 = vector.broadcast %cst_59 : f32 to vector<8x128xf32>
    %192 = arith.subf %190, %191 : vector<8x128xf32>
    %193 = arith.mulf %186, %166 : vector<8x128xf32>
    %194 = arith.mulf %185, %192 : vector<8x128xf32>
    %195 = arith.addf %193, %194 : vector<8x128xf32>
    %196 = math.tanh %195 : vector<8x128xf32>
    %197 = arith.mulf %187, %196 : vector<8x128xf32>
    %198 = arith.truncf %197 : vector<8x128xf32> to vector<8x128xbf16>
    %cst_60 = arith.constant dense<0.000000e+00> : vector<8x128xf32>
    %199 = tpu.matmul %198, %27, %cst_60 {dimension_numbers = #tpu.dot_dimension_numbers<[1], [0], [0], [1], [0, 0, 1, 1], [], []>} : vector<8x128xbf16>, vector<128x128xbf16>, vector<8x128xf32> -> vector<8x128xf32>
    %200 = vector.broadcast %28 : vector<1x128xf32> to vector<8x128xf32>
    %201 = arith.addf %199, %200 : vector<8x128xf32>
    %c5 = arith.constant 5 : index
    %c0_61 = arith.constant 0 : index
    %c0_62 = arith.constant 0 : index
    %202 = vector.load %arg9[%c5, %c0_61, %c0_62] : memref<8x8x128xf32, #tpu.memory_space<vmem>>, vector<1x8x128xf32>
    %203 = vector.shape_cast %202 : vector<1x8x128xf32> to vector<8x128xf32>
    %204 = vector.shape_cast %201 : vector<8x128xf32> to vector<1x8x128xf32>
    tpu.vector_store %arg9[%c5, %c0_61, %c0_62], %204 {strides = array<i32>} : memref<8x8x128xf32, #tpu.memory_space<vmem>>, vector<1x8x128xf32>,
    %205 = vector.extract_strided_slice %25 {offsets = [48, 0], sizes = [8, 512], strides = [1, 1]} : vector<64x512xf32> to vector<8x512xf32>
    %206 = arith.truncf %197 : vector<8x128xf32> to vector<8x128xbf16>
    %cst_63 = arith.constant dense<0.000000e+00> : vector<8x512xf32>
    %207 = tpu.matmul %206, %26, %cst_63 {dimension_numbers = #tpu.dot_dimension_numbers<[1], [0], [0], [1], [0, 0, 1, 1], [], []>} : vector<8x128xbf16>, vector<128x512xbf16>, vector<8x512xf32> -> vector<8x512xf32>
    %208 = arith.addf %205, %207 : vector<8x512xf32>
    %209 = arith.negf %208 : vector<8x512xf32>
    %210 = math.exp %209 : vector<8x512xf32>
    %cst_64 = arith.constant 1.000000e+00 : f32
    %211 = vector.broadcast %cst_64 : f32 to vector<8x512xf32>
    %212 = arith.addf %211, %210 : vector<8x512xf32>
    %213 = arith.divf %211, %212 : vector<8x512xf32>
    %214 = vector.extract_strided_slice %213 {offsets = [0, 0], sizes = [8, 128], strides = [1, 1]} : vector<8x512xf32> to vector<8x128xf32>
    %215 = vector.extract_strided_slice %213 {offsets = [0, 128], sizes = [8, 128], strides = [1, 1]} : vector<8x512xf32> to vector<8x128xf32>
    %216 = vector.extract_strided_slice %213 {offsets = [0, 256], sizes = [8, 128], strides = [1, 1]} : vector<8x512xf32> to vector<8x128xf32>
    %217 = vector.extract_strided_slice %213 {offsets = [0, 384], sizes = [8, 128], strides = [1, 1]} : vector<8x512xf32> to vector<8x128xf32>
    %cst_65 = arith.constant 2.000000e+00 : f32
    %218 = vector.broadcast %cst_65 : f32 to vector<8x128xf32>
    %219 = arith.mulf %218, %217 : vector<8x128xf32>
    %cst_66 = arith.constant 1.000000e+00 : f32
    %220 = vector.broadcast %cst_66 : f32 to vector<8x128xf32>
    %221 = arith.subf %219, %220 : vector<8x128xf32>
    %222 = arith.mulf %215, %195 : vector<8x128xf32>
    %223 = arith.mulf %214, %221 : vector<8x128xf32>
    %224 = arith.addf %222, %223 : vector<8x128xf32>
    %225 = math.tanh %224 : vector<8x128xf32>
    %226 = arith.mulf %216, %225 : vector<8x128xf32>
    %227 = arith.truncf %226 : vector<8x128xf32> to vector<8x128xbf16>
    %cst_67 = arith.constant dense<0.000000e+00> : vector<8x128xf32>
    %228 = tpu.matmul %227, %27, %cst_67 {dimension_numbers = #tpu.dot_dimension_numbers<[1], [0], [0], [1], [0, 0, 1, 1], [], []>} : vector<8x128xbf16>, vector<128x128xbf16>, vector<8x128xf32> -> vector<8x128xf32>
    %229 = vector.broadcast %28 : vector<1x128xf32> to vector<8x128xf32>
    %230 = arith.addf %228, %229 : vector<8x128xf32>
    %c6 = arith.constant 6 : index
    %c0_68 = arith.constant 0 : index
    %c0_69 = arith.constant 0 : index
    %231 = vector.load %arg9[%c6, %c0_68, %c0_69] : memref<8x8x128xf32, #tpu.memory_space<vmem>>, vector<1x8x128xf32>
    %232 = vector.shape_cast %231 : vector<1x8x128xf32> to vector<8x128xf32>
    %233 = vector.shape_cast %230 : vector<8x128xf32> to vector<1x8x128xf32>
    tpu.vector_store %arg9[%c6, %c0_68, %c0_69], %233 {strides = array<i32>} : memref<8x8x128xf32, #tpu.memory_space<vmem>>, vector<1x8x128xf32>,
    %234 = vector.extract_strided_slice %25 {offsets = [56, 0], sizes = [8, 512], strides = [1, 1]} : vector<64x512xf32> to vector<8x512xf32>
    %235 = arith.truncf %226 : vector<8x128xf32> to vector<8x128xbf16>
    %cst_70 = arith.constant dense<0.000000e+00> : vector<8x512xf32>
    %236 = tpu.matmul %235, %26, %cst_70 {dimension_numbers = #tpu.dot_dimension_numbers<[1], [0], [0], [1], [0, 0, 1, 1], [], []>} : vector<8x128xbf16>, vector<128x512xbf16>, vector<8x512xf32> -> vector<8x512xf32>
    %237 = arith.addf %234, %236 : vector<8x512xf32>
    %238 = arith.negf %237 : vector<8x512xf32>
    %239 = math.exp %238 : vector<8x512xf32>
    %cst_71 = arith.constant 1.000000e+00 : f32
    %240 = vector.broadcast %cst_71 : f32 to vector<8x512xf32>
    %241 = arith.addf %240, %239 : vector<8x512xf32>
    %242 = arith.divf %240, %241 : vector<8x512xf32>
    %243 = vector.extract_strided_slice %242 {offsets = [0, 0], sizes = [8, 128], strides = [1, 1]} : vector<8x512xf32> to vector<8x128xf32>
    %244 = vector.extract_strided_slice %242 {offsets = [0, 128], sizes = [8, 128], strides = [1, 1]} : vector<8x512xf32> to vector<8x128xf32>
    %245 = vector.extract_strided_slice %242 {offsets = [0, 256], sizes = [8, 128], strides = [1, 1]} : vector<8x512xf32> to vector<8x128xf32>
    %246 = vector.extract_strided_slice %242 {offsets = [0, 384], sizes = [8, 128], strides = [1, 1]} : vector<8x512xf32> to vector<8x128xf32>
    %cst_72 = arith.constant 2.000000e+00 : f32
    %247 = vector.broadcast %cst_72 : f32 to vector<8x128xf32>
    %248 = arith.mulf %247, %246 : vector<8x128xf32>
    %cst_73 = arith.constant 1.000000e+00 : f32
    %249 = vector.broadcast %cst_73 : f32 to vector<8x128xf32>
    %250 = arith.subf %248, %249 : vector<8x128xf32>
    %251 = arith.mulf %244, %224 : vector<8x128xf32>
    %252 = arith.mulf %243, %250 : vector<8x128xf32>
    %253 = arith.addf %251, %252 : vector<8x128xf32>
    %254 = math.tanh %253 : vector<8x128xf32>
    %255 = arith.mulf %245, %254 : vector<8x128xf32>
    %256 = arith.truncf %255 : vector<8x128xf32> to vector<8x128xbf16>
    %cst_74 = arith.constant dense<0.000000e+00> : vector<8x128xf32>
    %257 = tpu.matmul %256, %27, %cst_74 {dimension_numbers = #tpu.dot_dimension_numbers<[1], [0], [0], [1], [0, 0, 1, 1], [], []>} : vector<8x128xbf16>, vector<128x128xbf16>, vector<8x128xf32> -> vector<8x128xf32>
    %258 = vector.broadcast %28 : vector<1x128xf32> to vector<8x128xf32>
    %259 = arith.addf %257, %258 : vector<8x128xf32>
    %c7 = arith.constant 7 : index
    %c0_75 = arith.constant 0 : index
    %c0_76 = arith.constant 0 : index
    %260 = vector.load %arg9[%c7, %c0_75, %c0_76] : memref<8x8x128xf32, #tpu.memory_space<vmem>>, vector<1x8x128xf32>
    %261 = vector.shape_cast %260 : vector<1x8x128xf32> to vector<8x128xf32>
    %262 = vector.shape_cast %259 : vector<8x128xf32> to vector<1x8x128xf32>
    tpu.vector_store %arg9[%c7, %c0_75, %c0_76], %262 {strides = array<i32>} : memref<8x8x128xf32, #tpu.memory_space<vmem>>, vector<1x8x128xf32>,
    return
  }
  func.func @transform_0(%arg0: i32) -> (i32, i32, i32) {
    %c0_i32 = arith.constant 0 : i32
    %c0_i32_0 = arith.constant 0 : i32
    %c0_i32_1 = arith.constant 0 : i32
    return %c0_i32, %arg0, %c0_i32_0 : i32, i32, i32
  }
  func.func @transform_1(%arg0: i32) -> (i32, i32, i32) {
    %c0_i32 = arith.constant 0 : i32
    %c0_i32_0 = arith.constant 0 : i32
    %c0_i32_1 = arith.constant 0 : i32
    return %c0_i32, %arg0, %c0_i32_0 : i32, i32, i32
  }
  func.func @transform_2(%arg0: i32) -> (i32, i32, i32) {
    %c0_i32 = arith.constant 0 : i32
    %c0_i32_0 = arith.constant 0 : i32
    %c0_i32_1 = arith.constant 0 : i32
    return %c0_i32, %arg0, %c0_i32_0 : i32, i32, i32
  }
  func.func @transform_3(%arg0: i32) -> (i32, i32) {
    %c0_i32 = arith.constant 0 : i32
    %c0_i32_0 = arith.constant 0 : i32
    %c0_i32_1 = arith.constant 0 : i32
    return %c0_i32, %c0_i32_0 : i32, i32
  }
  func.func @transform_4(%arg0: i32) -> (i32, i32) {
    %c0_i32 = arith.constant 0 : i32
    %c0_i32_0 = arith.constant 0 : i32
    %c0_i32_1 = arith.constant 0 : i32
    return %c0_i32, %c0_i32_0 : i32, i32
  }
  func.func @transform_5(%arg0: i32) -> (i32, i32) {
    %c0_i32 = arith.constant 0 : i32
    %c0_i32_0 = arith.constant 0 : i32
    %c0_i32_1 = arith.constant 0 : i32
    return %c0_i32, %c0_i32_0 : i32, i32
  }
  func.func @transform_6(%arg0: i32) -> (i32, i32) {
    %c0_i32 = arith.constant 0 : i32
    %c0_i32_0 = arith.constant 0 : i32
    %c0_i32_1 = arith.constant 0 : i32
    return %c0_i32, %c0_i32_0 : i32, i32
  }
  func.func @transform_7(%arg0: i32) -> (i32, i32) {
    %c0_i32 = arith.constant 0 : i32
    %c0_i32_0 = arith.constant 0 : i32
    %c0_i32_1 = arith.constant 0 : i32
    return %c0_i32, %c0_i32_0 : i32, i32
  }
  func.func @transform_8(%arg0: i32) -> (i32, i32, i32) {
    %c0_i32 = arith.constant 0 : i32
    %c0_i32_0 = arith.constant 0 : i32
    %c0_i32_1 = arith.constant 0 : i32
    return %c0_i32, %arg0, %c0_i32_0 : i32, i32, i32
  }
}

</mosaic_0001>

<bundles_post_ra>
// kernel: model_lstm_forward.1
= control target key start
LH: loop header
LB: loop body
LE: loop exit
PB: predicated region body
PF: predicated region fallthrough
CT: control target
= control target key end

     0   :  { %v2347_v0 = vmov 0   ;;  %s3630_s1 = inlined_call_operand.vmem [shape: s32[8,8,1], index: 1, kind: input, shape index: {}]   ;;  %s3631_s2 = inlined_call_operand.vmem [shape: s32[8,8,1], index: 2, kind: input, shape index: {}]   ;;  %s3632_s3 = inlined_call_operand.vmem [shape: f32[128,512], index: 3, kind: input, shape index: {}]   ;;  %s3633_s4 = inlined_call_operand.vmem [shape: bf16[128,512], index: 4, kind: input, shape index: {}]   ;;  %s3634_s0 = inlined_call_operand.vmem [shape: f32[8,8,128], index: 0, kind: input, shape index: {}]   ;;  %s3635_s5 = inlined_call_operand.vmem [shape: f32[1,512], index: 5, kind: input, shape index: {}]   ;;  %s3636_s7 = inlined_call_operand.vmem [shape: f32[1,128], index: 7, kind: input, shape index: {}]   ;;  %s3637_s6 = inlined_call_operand.vmem [shape: bf16[128,128], index: 6, kind: input, shape index: {}]   ;;  %s3638_s8 = inlined_call_operand.vmem [shape: f32[8,8,128], index: 8, kind: output, shape index: {}]  }
   0x1   :  { %2191 = vset.pattern.permute.xlu1 %v2347_v0  ;;  %2190 = vset.pattern.permute.xlu0 %v2347_v0  ;;  %v33_v1 = vld [vmem:[%s3630_s1 + $0x8] sm:$0xff]  ;;  %v32_v2 = vld [vmem:[%s3630_s1] sm:$0xff]  ;;  %v34_v3 = vld [vmem:[%s3630_s1 + $0x10] sm:$0xff] }
   0x2   :  { %v57_v4 = vadd.s32 19, %v33_v1  ;;  %v56_v5 = vadd.s32 19, %v32_v2  ;;  %2192 = vset.pattern.permute.xlu2 %v2347_v0  ;;  %v58_v6 = vadd.s32 19, %v34_v3  ;;  %v41_v7 = vld [vmem:[%s3631_s2 + $0x8] sm:$0xff]  ;;  %v40_v8 = vld [vmem:[%s3631_s2] sm:$0xff]  ;;  %v42_v9 = vld [vmem:[%s3631_s2 + $0x10] sm:$0xff] }
   0x3   :  { %v121_v10 = vadd.s32 35, %v41_v7  ;;  %v120_v11 = vadd.s32 35, %v40_v8  ;;  %v122_v12 = vadd.s32 35, %v42_v9  ;;  %v43_v13 = vld [vmem:[%s3631_s2 + $0x18] sm:$0xff]  ;;  %v244_v15 = vld [vmem:[%s3632_s3 + $0x1e0] sm:$0xff]  ;;  %v245_v16 = vld [vmem:[%s3632_s3 + $0x1e8] sm:$0xff] }
   0x4   :  { %68 = vperm.xlu1 %2191, %v57_v4   ;;  %65 = vperm.xlu0 %2190, %v56_v5   ;;  %v35_v14 = vld [vmem:[%s3630_s1 + $0x18] sm:$0xff]  ;;  %v246_v17 = vld [vmem:[%s3632_s3 + $0x1f0] sm:$0xff]  ;;  %v240_v19 = vld [vmem:[%s3632_s3 + $0x1c0] sm:$0xff]  ;;  %v123_v24 = vadd.s32 35, %v43_v13 }
   0x5   :  { %71 = vperm.xlu2 %2192, %v58_v6   ;;  %258 = vmatpush.msra.mxu0 %v244_v15  ;;  %v247_v18 = vld [vmem:[%s3632_s3 + $0x1f8] sm:$0xff]  ;;  %v241_v20 = vld [vmem:[%s3632_s3 + $0x1c8] sm:$0xff]  ;;  %v36_v21 = vld [vmem:[%s3630_s1 + $0x20] sm:$0xff]  ;;  %v59_v25 = vadd.s32 19, %v35_v14 }
   0x6   :  { %299 = vmatpush.msra.mxu1 %v245_v16  ;;  %340 = vmatpush.msra.mxu2 %v246_v17  ;;  %v242_v22 = vld [vmem:[%s3632_s3 + $0x1d0] sm:$0xff]  ;;  %v243_v23 = vld [vmem:[%s3632_s3 + $0x1d8] sm:$0xff]  ;;  %v60_v26 = vadd.s32 19, %v36_v21  ;;  %v37_v27 = vld [vmem:[%s3630_s1 + $0x28] sm:$0xff] }
   0x7   :  { %381 = vmatpush.msra.mxu3 %v247_v18  ;;  %259 = vmatpush.msra.mxu0 %v240_v19  ;;  %v44_v28 = vld [vmem:[%s3631_s2 + $0x20] sm:$0xff]  ;;  %v45_v29 = vld [vmem:[%s3631_s2 + $0x28] sm:$0xff]  ;;  %v61_v30 = vadd.s32 19, %v37_v27  ;;  %v46_v33 = vld [vmem:[%s3631_s2 + $0x30] sm:$0xff] }
   0x8   :  { %300 = vmatpush.msra.mxu1 %v241_v20  ;;  %341 = vmatpush.msra.mxu2 %v242_v22  ;;  %v124_v31 = vadd.s32 35, %v44_v28  ;;  %v125_v32 = vadd.s32 35, %v45_v29  ;;  %v38_v34 = vld [vmem:[%s3630_s1 + $0x30] sm:$0xff]  ;;  %v39_v35 = vld [vmem:[%s3630_s1 + $0x38] sm:$0xff]  ;;  %v126_v36 = vadd.s32 35, %v46_v33  ;;  %v236_v41 = vld [vmem:[%s3632_s3 + $0x1a0] sm:$0xff] }
   0x9   :  { %382 = vmatpush.msra.mxu3 %v243_v23  ;;  %v62_v37 = vadd.s32 19, %v38_v34  ;;  %v63_v38 = vadd.s32 19, %v39_v35  ;;  %v47_v39 = vld [vmem:[%s3631_s2 + $0x38] sm:$0xff]  ;;  %v237_v42 = vld [vmem:[%s3632_s3 + $0x1a8] sm:$0xff]  ;;  %v238_v43 = vld [vmem:[%s3632_s3 + $0x1b0] sm:$0xff]  ;;  %260 = vmatpush.msra.mxu0 %v236_v41 }
   0xa   :  { %v127_v40 = vadd.s32 35, %v47_v39  ;;  %301 = vmatpush.msra.mxu1 %v237_v42  ;;  %v239_v44 = vld [vmem:[%s3632_s3 + $0x1b8] sm:$0xff]  ;;  %v232_v45 = vld [vmem:[%s3632_s3 + $0x180] sm:$0xff]  ;;  %v233_v46 = vld [vmem:[%s3632_s3 + $0x188] sm:$0xff]  ;;  %342 = vmatpush.msra.mxu2 %v238_v43 }
   0xb   :  { %383 = vmatpush.msra.mxu3 %v239_v44  ;;  %v234_v47 = vld [vmem:[%s3632_s3 + $0x190] sm:$0xff]  ;;  %v235_v48 = vld [vmem:[%s3632_s3 + $0x198] sm:$0xff]  ;;  %v228_v49 = vld [vmem:[%s3632_s3 + $0x160] sm:$0xff]  ;;  %261 = vmatpush.msra.mxu0 %v232_v45 }
   0xc   :  { %132 = vperm.xlu1 %2191, %v121_v10   ;;  %129 = vperm.xlu0 %2190, %v120_v11   ;;  %v229_v50 = vld [vmem:[%s3632_s3 + $0x168] sm:$0xff]  ;;  %v230_v51 = vld [vmem:[%s3632_s3 + $0x170] sm:$0xff]  ;;  %v231_v52 = vld [vmem:[%s3632_s3 + $0x178] sm:$0xff] }
   0xd   :  { %135 = vperm.xlu2 %2192, %v122_v12   ;;  %302 = vmatpush.msra.mxu1 %v233_v46  ;;  %v224_v53 = vld [vmem:[%s3632_s3 + $0x140] sm:$0xff]  ;;  %v225_v54 = vld [vmem:[%s3632_s3 + $0x148] sm:$0xff]  ;;  %v226_v55 = vld [vmem:[%s3632_s3 + $0x150] sm:$0xff]  ;;  %v30_v46 = vlaneseq }
   0xe   :  { %343 = vmatpush.msra.mxu2 %v234_v47  ;;  %384 = vmatpush.msra.mxu3 %v235_v48  ;;  %v227_v56 = vld [vmem:[%s3632_s3 + $0x158] sm:$0xff]  ;;  %v220_v57 = vld [vmem:[%s3632_s3 + $0x120] sm:$0xff]  ;;  %v221_v58 = vld [vmem:[%s3632_s3 + $0x128] sm:$0xff] }
   0xf   :  { %262 = vmatpush.msra.mxu0 %v228_v49  ;;  %303 = vmatpush.msra.mxu1 %v229_v50  ;;  %v222_v59 = vld [vmem:[%s3632_s3 + $0x130] sm:$0xff]  ;;  %v223_v60 = vld [vmem:[%s3632_s3 + $0x138] sm:$0xff]  ;;  %v216_v61 = vld [vmem:[%s3632_s3 + $0x100] sm:$0xff]  ;;  %v2673_v47 = vand.u32 127, %v30_v46 }
  0x10   :  { %344 = vmatpush.msra.mxu2 %v230_v51  ;;  %385 = vmatpush.msra.mxu3 %v231_v52  ;;  %v217_v62 = vld [vmem:[%s3632_s3 + $0x108] sm:$0xff]  ;;  %v218_v63 = vld [vmem:[%s3632_s3 + $0x110] sm:$0xff]  ;;  %v219_v1 = vld [vmem:[%s3632_s3 + $0x118] sm:$0xff] }
  0x11   :  { %263 = vmatpush.msra.mxu0 %v224_v53  ;;  %304 = vmatpush.msra.mxu1 %v225_v54  ;;  %v212_v2 = vld [vmem:[%s3632_s3 + $0xe0] sm:$0xff]  ;;  %v213_v3 = vld [vmem:[%s3632_s3 + $0xe8] sm:$0xff]  ;;  %v214_v4 = vld [vmem:[%s3632_s3 + $0xf0] sm:$0xff] }
  0x12   :  { %345 = vmatpush.msra.mxu2 %v226_v55  ;;  %386 = vmatpush.msra.mxu3 %v227_v56  ;;  %v215_v5 = vld [vmem:[%s3632_s3 + $0xf8] sm:$0xff]  ;;  %v208_v6 = vld [vmem:[%s3632_s3 + $0xc0] sm:$0xff]  ;;  %v209_v7 = vld [vmem:[%s3632_s3 + $0xc8] sm:$0xff] }
  0x13   :  { %264 = vmatpush.msra.mxu0 %v220_v57  ;;  %305 = vmatpush.msra.mxu1 %v221_v58  ;;  %v210_v8 = vld [vmem:[%s3632_s3 + $0xd0] sm:$0xff]  ;;  %v211_v9 = vld [vmem:[%s3632_s3 + $0xd8] sm:$0xff]  ;;  %v204_v10 = vld [vmem:[%s3632_s3 + $0xa0] sm:$0xff] }
  0x14   :  { %138 = vperm.xlu1 %2191, %v123_v24   ;;  %74 = vperm.xlu0 %2190, %v59_v25   ;;  %v205_v11 = vld [vmem:[%s3632_s3 + $0xa8] sm:$0xff]  ;;  %v206_v12 = vld [vmem:[%s3632_s3 + $0xb0] sm:$0xff]  ;;  %v207_v13 = vld [vmem:[%s3632_s3 + $0xb8] sm:$0xff] }
  0x15   :  { %77 = vperm.xlu2 %2192, %v60_v26   ;;  %346 = vmatpush.msra.mxu2 %v222_v59  ;;  %v200_v14 = vld [vmem:[%s3632_s3 + $0x80] sm:$0xff]  ;;  %v201_v15 = vld [vmem:[%s3632_s3 + $0x88] sm:$0xff]  ;;  %v202_v16 = vld [vmem:[%s3632_s3 + $0x90] sm:$0xff] }
  0x16   :  { %387 = vmatpush.msra.mxu3 %v223_v60  ;;  %265 = vmatpush.msra.mxu0 %v216_v61  ;;  %v203_v17 = vld [vmem:[%s3632_s3 + $0x98] sm:$0xff]  ;;  %v196_v18 = vld [vmem:[%s3632_s3 + $0x60] sm:$0xff]  ;;  %v197_v19 = vld [vmem:[%s3632_s3 + $0x68] sm:$0xff] }
  0x17   :  { %306 = vmatpush.msra.mxu1 %v217_v62  ;;  %347 = vmatpush.msra.mxu2 %v218_v63  ;;  %v198_v20 = vld [vmem:[%s3632_s3 + $0x70] sm:$0xff]  ;;  %v199_v21 = vld [vmem:[%s3632_s3 + $0x78] sm:$0xff]  ;;  %v192_v22 = vld [vmem:[%s3632_s3 + $0x40] sm:$0xff]  ;;  %v2348_v63 = vmov 0.0  }
  0x18   :  { %388 = vmatpush.msra.mxu3 %v219_v1  ;;  %266 = vmatpush.msra.mxu0 %v212_v2  ;;  %v193_v23 = vld [vmem:[%s3632_s3 + $0x48] sm:$0xff]  ;;  %v194_v24 = vld [vmem:[%s3632_s3 + $0x50] sm:$0xff]  ;;  %v195_v25 = vld [vmem:[%s3632_s3 + $0x58] sm:$0xff] }
  0x19   :  { %307 = vmatpush.msra.mxu1 %v213_v3  ;;  %348 = vmatpush.msra.mxu2 %v214_v4  ;;  %v188_v26 = vld [vmem:[%s3632_s3 + $0x20] sm:$0xff]  ;;  %v189_v27 = vld [vmem:[%s3632_s3 + $0x28] sm:$0xff]  ;;  %v190_v28 = vld [vmem:[%s3632_s3 + $0x30] sm:$0xff] }
  0x1a   :  { %389 = vmatpush.msra.mxu3 %v215_v5  ;;  %267 = vmatpush.msra.mxu0 %v208_v6  ;;  %v191_v29 = vld [vmem:[%s3632_s3 + $0x38] sm:$0xff]  ;;  %v2177_v34 = vld [vmem:[%s3633_s4 + $0xec] sm:$0xf]  ;;  %v2055_v39 = vld [vmem:[%s3633_s4 + $0xe0] sm:$0xf] }
  0x1b   :  { %308 = vmatpush.msra.mxu1 %v209_v7  ;;  %349 = vmatpush.msra.mxu2 %v210_v8  ;;  %v187_v33 = vld [vmem:[%s3632_s3 + $0x18] sm:$0xff]  ;;  %v2178_v41 = vld [vmem:[%s3633_s4 + $0xec] sm:$0xf0]  ;;  %v2176_v42 = vld [vmem:[%s3633_s4 + $0xe4] sm:$0xf] }
  0x1c   :  { %80 = vperm.xlu1 %2191, %v61_v30   ;;  %141 = vperm.xlu0 %2190, %v124_v31   ;;  %v184_v30 = vld [vmem:[%s3632_s3] sm:$0xff]  ;;  %v185_v31 = vld [vmem:[%s3632_s3 + $0x8] sm:$0xff]  ;;  %v2065_v35 = vld [vmem:[%s3633_s4 + $0xf8] sm:$0xf0]  ;;  %v2666_v44 = vor.u32 %v2178_v41, %v2055_v39 }
  0x1d   :  { %144 = vperm.xlu2 %2192, %v125_v32   ;;  %390 = vmatpush.msra.mxu3 %v211_v9  ;;  %v186_v32 = vld [vmem:[%s3632_s3 + $0x10] sm:$0xff]  ;;  %v2063_v48 = vld [vmem:[%s3633_s4 + $0xe8] sm:$0xf]  ;;  %v2179_v49 = vld [vmem:[%s3633_s4 + $0xf4] sm:$0xf0] }
  0x1e   :  { %268 = vmatpush.msra.mxu0 %v204_v10  ;;  %309 = vmatpush.msra.mxu1 %v205_v11  ;;  %v2057_v43 = vld [vmem:[%s3633_s4 + $0xf0] sm:$0xf0]  ;;  %v2681_v50 = vor.u32 %v2179_v49, %v2063_v48  ;;  %v2169_v51 = vld [vmem:[%s3633_s4 + $0xac] sm:$0xf]  ;;  %v2033_v52 = vld [vmem:[%s3633_s4 + $0xb8] sm:$0xf0] }
  0x1f   :  { %350 = vmatpush.msra.mxu2 %v206_v12  ;;  %391 = vmatpush.msra.mxu3 %v207_v13  ;;  %v2668_v45 = vor.u32 %v2176_v42, %v2057_v43  ;;  %v2039_v53 = vld [vmem:[%s3633_s4 + $0xc0] sm:$0xf]  ;;  %v2692_v54 = vor.u32 %v2169_v51, %v2033_v52  ;;  %v2174_v55 = vld [vmem:[%s3633_s4 + $0xcc] sm:$0xf0]  ;;  %v2172_v56 = vld [vmem:[%s3633_s4 + $0xc4] sm:$0xf] }
  0x20   :  { %269 = vmatpush.msra.mxu0 %v200_v14  ;;  %310 = vmatpush.msra.mxu1 %v201_v15  ;;  %v2041_v57 = vld [vmem:[%s3633_s4 + $0xd0] sm:$0xf0]  ;;  %v2704_v60 = vor.u32 %v2174_v55, %v2039_v53  ;;  %v48_v62 = vld [vmem:[%s3634_s0] sm:$0xff]  ;;  %v2047_v2 = vld [vmem:[%s3633_s4 + $0xc8] sm:$0xf] }
  0x21   :  { %351 = vmatpush.msra.mxu2 %v202_v16  ;;  %392 = vmatpush.msra.mxu3 %v203_v17  ;;  %v2706_v61 = vor.u32 %v2172_v56, %v2041_v57  ;;  %v2175_v3 = vld [vmem:[%s3633_s4 + $0xd4] sm:$0xf0]  ;;  %v2165_v5 = vld [vmem:[%s3633_s4 + $0x8c] sm:$0xf]  ;;  %v2017_v6 = vld [vmem:[%s3633_s4 + $0x98] sm:$0xf0] }
  0x22   :  { %270 = vmatpush.msra.mxu0 %v196_v18  ;;  %311 = vmatpush.msra.mxu1 %v197_v19  ;;  %v2722_v4 = vor.u32 %v2175_v3, %v2047_v2  ;;  %v2023_v7 = vld [vmem:[%s3633_s4 + $0xa0] sm:$0xf]  ;;  %v2733_v8 = vor.u32 %v2165_v5, %v2017_v6  ;;  %v2170_v9 = vld [vmem:[%s3633_s4 + $0xac] sm:$0xf0]  ;;  %v2168_v10 = vld [vmem:[%s3633_s4 + $0xa4] sm:$0xf] }
  0x23   :  { %352 = vmatpush.msra.mxu2 %v198_v20  ;;  %393 = vmatpush.msra.mxu3 %v199_v21  ;;  %3670 = vst [vmem:[#allocation2_spill] sm:$0xff] %v2706_v61  ;;  %v2025_v11 = vld [vmem:[%s3633_s4 + $0xb0] sm:$0xf0]  ;;  %v2745_v13 = vor.u32 %v2170_v9, %v2023_v7  ;;  %v2031_v20 = vld [vmem:[%s3633_s4 + $0xa8] sm:$0xf]  ;;  %v51_v9 = vld [vmem:[%s3634_s0 + $0x18] sm:$0xff] }
  0x24   :  { %147 = vperm.xlu1 %2191, %v126_v36   ;;  %83 = vperm.xlu0 %2190, %v62_v37   ;;  %v2643_v36 = vor.u32 %v2177_v34, %v2065_v35  ;;  %v2173_v37 = vld [vmem:[%s3633_s4 + $0xcc] sm:$0xf]  ;;  %v2747_v14 = vor.u32 %v2168_v10, %v2025_v11  ;;  %v2171_v21 = vld [vmem:[%s3633_s4 + $0xb4] sm:$0xf0]  ;;  %v50_v42 = vld [vmem:[%s3634_s0 + $0x10] sm:$0xff] }
  0x25   :  { %86 = vperm.xlu2 %2192, %v63_v38   ;;  %271 = vmatpush.msra.mxu0 %v192_v22  ;;  %v2049_v38 = vld [vmem:[%s3633_s4 + $0xd8] sm:$0xf0]  ;;  %v49_v22 = vld [vmem:[%s3634_s0 + $0x8] sm:$0xff]  ;;  %v1991_v52 = vld [vmem:[%s3633_s4 + $0x60] sm:$0xf] }
  0x26   :  { %312 = vmatpush.msra.mxu1 %v193_v23  ;;  %353 = vmatpush.msra.mxu2 %v194_v24  ;;  %3671 = vst [vmem:[#allocation3_spill] sm:$0xff] %v2747_v14  ;;  %v2765_v24 = vor.u32 %v2171_v21, %v2031_v20  ;;  %v2157_v49 = vld [vmem:[%s3633_s4 + $0x4c] sm:$0xf]  ;;  %v1985_v51 = vld [vmem:[%s3633_s4 + $0x58] sm:$0xf0] }
  0x27   :  { %394 = vmatpush.msra.mxu3 %v195_v25  ;;  %272 = vmatpush.msra.mxu0 %v188_v26  ;;  %v2161_v25 = vld [vmem:[%s3633_s4 + $0x6c] sm:$0xf]  ;;  %v2001_v26 = vld [vmem:[%s3633_s4 + $0x78] sm:$0xf0]  ;;  %v2821_v55 = vor.u32 %v2157_v49, %v1985_v51  ;;  %v2162_v56 = vld [vmem:[%s3633_s4 + $0x6c] sm:$0xf0] }
  0x28   :  { %313 = vmatpush.msra.mxu1 %v189_v27  ;;  %354 = vmatpush.msra.mxu2 %v190_v28  ;;  %v2007_v27 = vld [vmem:[%s3633_s4 + $0x80] sm:$0xf]  ;;  %v2160_v57 = vld [vmem:[%s3633_s4 + $0x64] sm:$0xf]  ;;  %v1999_v2 = vld [vmem:[%s3633_s4 + $0x68] sm:$0xf] }
  0x29   :  { %395 = vmatpush.msra.mxu3 %v191_v29  ;;  %273 = vmatpush.msra.mxu0 %v184_v30  ;;  %v2778_v29 = vor.u32 %v2161_v25, %v2001_v26  ;;  %v2166_v30 = vld [vmem:[%s3633_s4 + $0x8c] sm:$0xf0]  ;;  %v2163_v3 = vld [vmem:[%s3633_s4 + $0x74] sm:$0xf0]  ;;  %v2153_v11 = vld [vmem:[%s3633_s4 + $0x2c] sm:$0xf] }
  0x2a   :  { %314 = vmatpush.msra.mxu1 %v185_v31  ;;  %355 = vmatpush.msra.mxu2 %v186_v32  ;;  %v2164_v31 = vld [vmem:[%s3633_s4 + $0x84] sm:$0xf]  ;;  %v2009_v32 = vld [vmem:[%s3633_s4 + $0x90] sm:$0xf0]  ;;  %v2790_v34 = vor.u32 %v2166_v30, %v2007_v27  ;;  %v2845_v5 = vor.u32 %v2163_v3, %v1999_v2  ;;  %v1983_v25 = vld [vmem:[%s3633_s4 + $0x48] sm:$0xf] }
  0x2b   :  { %396 = vmatpush.msra.mxu3 %v187_v33  ;;  %631 = vmatpush.bf16.msrb.mxu0 %v2666_v44  ;;  %v2792_v35 = vor.u32 %v2164_v31, %v2009_v32  ;;  %v2156_v20 = vld [vmem:[%s3633_s4 + $0x44] sm:$0xf]  ;;  %v1977_v21 = vld [vmem:[%s3633_s4 + $0x50] sm:$0xf0]  ;;  %v2159_v26 = vld [vmem:[%s3633_s4 + $0x54] sm:$0xf0] }
  0x2c   :  { %150 = vperm.xlu0 %2190, %v127_v40   ;;  %v2655_v40 = vor.u32 %v2173_v37, %v2049_v38  ;;  %644 = vmatpush.bf16.msrb.mxu1 %v2668_v45  ;;  %v2015_v37 = vld [vmem:[%s3633_s4 + $0x88] sm:$0xf]  ;;  %v2167_v38 = vld [vmem:[%s3633_s4 + $0x94] sm:$0xf0]  ;;  %v2887_v27 = vor.u32 %v2159_v26, %v1983_v25  ;;  %v2149_v51 = vld [vmem:[%s3633_s4 + $0xc] sm:$0xf] }
  0x2d   :  { %670 = vmatpush.bf16.msrb.mxu3 %v2643_v36  ;;  %657 = vmatpush.bf16.msrb.mxu2 %v2681_v50  ;;  %3672 = vst [vmem:[#allocation4_spill] sm:$0xff] %v2792_v35  ;;  %v2802_v39 = vor.u32 %v2167_v38, %v2015_v37  ;;  %v1959_v37 = vld [vmem:[%s3633_s4 + $0x20] sm:$0xf]  ;;  %v2154_v38 = vld [vmem:[%s3633_s4 + $0x2c] sm:$0xf0] }
  0x2e   :  { %v2148_v2 = vld [vmem:[%s3633_s4 + $0x4] sm:$0xf]  ;;  %v1945_v3 = vld [vmem:[%s3633_s4 + $0x10] sm:$0xf0] }
  0x2f   :  { %632 = vmatpush.bf16.msrb.mxu0 %v2704_v60 }
  0x30   :  { %645 = vmatpush.bf16.msrb.mxu1 %v2706_v61 }
  0x31   :  { %671 = vmatpush.bf16.msrb.mxu3 %v2655_v40  ;;  %658 = vmatpush.bf16.msrb.mxu2 %v2722_v4 }
  0x33   :  { %633 = vmatpush.bf16.msrb.mxu0 %v2745_v13 }
  0x34   :  { %646 = vmatpush.bf16.msrb.mxu1 %v2747_v14 }
  0x35   :  { %672 = vmatpush.bf16.msrb.mxu3 %v2692_v54  ;;  %659 = vmatpush.bf16.msrb.mxu2 %v2765_v24 }
  0x37   :  { %634 = vmatpush.bf16.msrb.mxu0 %v2790_v34 }
  0x38   :  { %647 = vmatpush.bf16.msrb.mxu1 %v2792_v35 }
  0x39   :  { %673 = vmatpush.bf16.msrb.mxu3 %v2733_v8  ;;  %660 = vmatpush.bf16.msrb.mxu2 %v2802_v39 }
  0x3d   :  { %674 = vmatpush.bf16.msrb.mxu3 %v2778_v29  ;;  %661 = vmatpush.bf16.msrb.mxu2 %v2845_v5 }
  0x41   :  { %675 = vmatpush.bf16.msrb.mxu3 %v2821_v55  ;;  %662 = vmatpush.bf16.msrb.mxu2 %v2887_v27 }
  0x5f   :  { %v72_v16 = vpop.permute.xlu2 %71 }
  0x60   :  { %vm90_vm4 = vcmp.eq.s32.totalorder %v2673_v47, %v72_v16 }
  0x61   :  { %v1927_v43 = vsel %vm90_vm4, 1.0, %v2348_v63 }
  0x62   :  { %v114_v53 = vadd.f32 %v1927_v43, %v50_v42  ;;  %v2907_v42 = vor.u32 %v2154_v38, %v1959_v37  ;;  %v1961_v43 = vld [vmem:[%s3633_s4 + $0x30] sm:$0xf0] }
  0x67   :  { %v136_v46 = vpop.permute.xlu2 %135 }
  0x68   :  { %vm154_vm5 = vcmp.eq.s32.totalorder %v2673_v47, %v136_v46  ;;  %v1967_v46 = vld [vmem:[%s3633_s4 + $0x28] sm:$0xf] }
  0x6f   :  { %v78_v16 = vpop.permute.xlu2 %77 }
  0x70   :  { %vm92_vm8 = vcmp.eq.s32.totalorder %v2673_v47, %v78_v16 }
  0x71   :  { %v1929_v31 = vsel %vm92_vm8, 1.0, %v2348_v63 }
  0x76   :  { %v69_v58 = vpop.permute.xlu1 %68  ;;  %v66_v59 = vpop.permute.xlu0 %65 }
  0x77   :  { %vm88_vm0 = vcmp.eq.s32.totalorder %v2673_v47, %v66_v59  ;;  %vm89_vm1 = vcmp.eq.s32.totalorder %v2673_v47, %v69_v58  ;;  %v1993_v58 = vld [vmem:[%s3633_s4 + $0x70] sm:$0xf0]  ;;  %v1935_v59 = vsel %vm154_vm5, 1.0, %v2348_v63 }
  0x78   :  { %v1925_v1 = vsel %vm88_vm0, 1.0, %v2348_v63  ;;  %v1926_v23 = vsel %vm89_vm1, 1.0, %v2348_v63  ;;  %v178_v6 = vadd.f32 %v1935_v59, %v114_v53  ;;  %v2150_v59 = vld [vmem:[%s3633_s4 + $0xc] sm:$0xf0] }
  0x79   :  { %v112_v15 = vadd.f32 %v1925_v1, %v48_v62  ;;  %v113_v28 = vadd.f32 %v1926_v23, %v49_v22  ;;  %v2833_v62 = vor.u32 %v2162_v56, %v1991_v52  ;;  %v2835_v1 = vor.u32 %v2160_v57, %v1993_v58  ;;  %v1953_v52 = vld [vmem:[%s3633_s4 + $0x18] sm:$0xf0]  ;;  %v1943_v57 = vld [vmem:[%s3633_s4] sm:$0xf] }
  0x7a   :  { %v2878_v23 = vor.u32 %v2156_v20, %v1977_v21  ;;  %v2931_v58 = vor.u32 %v2149_v51, %v1953_v52  ;;  %v145_v20 = vpop.permute.xlu2 %144 }
  0x7b   :  { %3673 = vst [vmem:[#allocation5_spill] sm:$0xff] %v2835_v1  ;;  %635 = vmatpush.bf16.msrb.mxu0 %v2833_v62  ;;  %648 = vmatpush.bf16.msrb.mxu1 %v2835_v1  ;;  %vm157_vm11 = vcmp.eq.s32.totalorder %v2673_v47, %v145_v20 }
  0x7c   :  { %3674 = vst [vmem:[#allocation6_spill] sm:$0xff] %v2878_v23  ;;  %v1938_v26 = vsel %vm157_vm11, 1.0, %v2348_v63 }
  0x7e   :  { %v130_v12 = vpop.permute.xlu0 %129  ;;  %v133_v17 = vpop.permute.xlu1 %132 }
  0x7f   :  { %vm152_vm2 = vcmp.eq.s32.totalorder %v2673_v47, %v130_v12  ;;  %vm153_vm3 = vcmp.eq.s32.totalorder %v2673_v47, %v133_v17  ;;  %v1969_v12 = vld [vmem:[%s3633_s4 + $0x38] sm:$0xf0]  ;;  %649 = vmatpush.bf16.msrb.mxu1 %v2878_v23 }
  0x80   :  { %v1933_v18 = vsel %vm152_vm2, 1.0, %v2348_v63  ;;  %v1934_v33 = vsel %vm153_vm3, 1.0, %v2348_v63 }
  0x81   :  { %v176_v19 = vadd.f32 %v1933_v18, %v112_v15  ;;  %v177_v41 = vadd.f32 %v1934_v33, %v113_v28  ;;  %v1975_v15 = vld [vmem:[%s3633_s4 + $0x40] sm:$0xf]  ;;  %v2864_v18 = vor.u32 %v2153_v11, %v1969_v12  ;;  %v2151_v11 = vld [vmem:[%s3633_s4 + $0x14] sm:$0xf0] }
  0x82   :  { %v52_v33 = vld [vmem:[%s3634_s0 + $0x20] sm:$0xff]  ;;  %v87_v37 = vpop.permute.xlu2 %86 }
  0x83   :  { %274 = vmatmul.f32.vlgmr.msra.gmra.mxu0 %v176_v19  ;;  %315 = vmatmul.f32.vlgmr.msra.gmra.mxu1 %v176_v19  ;;  %v116_v12 = vadd.f32 %v1929_v31, %v52_v33  ;;  %v54_v31 = vld [vmem:[%s3634_s0 + $0x30] sm:$0xff]  ;;  %vm95_vm14 = vcmp.eq.s32.totalorder %v2673_v47, %v87_v37 }
  0x84   :  { %356 = vmatmul.f32.vlgmr.msra.gmra.mxu2 %v176_v19  ;;  %397 = vmatmul.f32.vlgmr.msra.gmra.mxu3 %v176_v19  ;;  %v2158_v19 = vld [vmem:[%s3633_s4 + $0x4c] sm:$0xf0] }
  0x85   :  { %v2876_v22 = vor.u32 %v2158_v19, %v1975_v15  ;;  %676 = vmatpush.bf16.msrb.mxu3 %v2864_v18 }
  0x86   :  { %v75_v48 = vpop.permute.xlu0 %74  ;;  %v139_v7 = vpop.permute.xlu1 %138 }
  0x87   :  { %vm91_vm6 = vcmp.eq.s32.totalorder %v2673_v47, %v75_v48  ;;  %vm155_vm7 = vcmp.eq.s32.totalorder %v2673_v47, %v139_v7  ;;  %636 = vmatpush.bf16.msrb.mxu0 %v2876_v22  ;;  %v2155_v48 = vld [vmem:[%s3633_s4 + $0x34] sm:$0xf0]  ;;  %v2948_v7 = vor.u32 %v2150_v59, %v1943_v57 }
  0x88   :  { %v1928_v10 = vsel %vm91_vm6, 1.0, %v2348_v63  ;;  %v1936_v28 = vsel %vm155_vm7, 1.0, %v2348_v63  ;;  %v2926_v56 = vor.u32 %v2155_v48, %v1967_v46  ;;  %v55_v46 = vld [vmem:[%s3634_s0 + $0x38] sm:$0xff]  ;;  %v1932_v48 = vsel %vm95_vm14, 1.0, %v2348_v63 }
  0x89   :  { %v115_v17 = vadd.f32 %v1928_v10, %v51_v9  ;;  %v2950_v9 = vor.u32 %v2148_v2, %v1945_v3  ;;  %v1951_v10 = vld [vmem:[%s3633_s4 + $0x8] sm:$0xf]  ;;  %677 = vmatpush.bf16.msrb.mxu3 %v2931_v58  ;;  %v119_v51 = vadd.f32 %v1932_v48, %v55_v46  ;;  %v248_v3 = vld [vmem:[%s3635_s5] sm:$0xf] }
  0x8a   :  { %663 = vmatpush.bf16.msrb.mxu2 %v2926_v56  ;;  %v2960_v15 = vor.u32 %v2151_v11, %v1951_v10  ;;  %v3046_v10 = vperm.slane %v248_v3, 1 }
  0x8b   :  { %277 = vmatmul.f32.gmra.mxu0 %v177_v41  ;;  %318 = vmatmul.f32.gmra.mxu1 %v177_v41  ;;  %v179_v32 = vadd.f32 %v1936_v28, %v115_v17  ;;  %3676 = vst [vmem:[#allocation8_spill] sm:$0xff] %v2950_v9  ;;  %v53_v17 = vld [vmem:[%s3634_s0 + $0x28] sm:$0xff] }
  0x8c   :  { %359 = vmatmul.f32.gmra.mxu2 %v177_v41  ;;  %400 = vmatmul.f32.gmra.mxu3 %v177_v41  ;;  %v2152_v41 = vld [vmem:[%s3633_s4 + $0x24] sm:$0xf]  ;;  %3680 = vst [vmem:[#allocation12_spill] sm:$0xff] %v3046_v10 }
  0x8d   :  { %v2924_v53 = vor.u32 %v2152_v41, %v1961_v43  ;;  %637 = vmatpush.bf16.msrb.mxu0 %v2907_v42  ;;  %862 = vmatpush.bf16.msra.mxu3 %v2681_v50 }
  0x8e   :  { %v142_v30 = vpop.permute.xlu0 %141  ;;  %v81_v49 = vpop.permute.xlu1 %80  ;;  %664 = vmatpush.bf16.msrb.mxu2 %v2960_v15 }
  0x8f   :  { %vm156_vm9 = vcmp.eq.s32.totalorder %v2673_v47, %v142_v30  ;;  %3675 = vst [vmem:[#allocation7_spill] sm:$0xff] %v2924_v53  ;;  %650 = vmatpush.bf16.msrb.mxu1 %v2924_v53  ;;  %vm93_vm10 = vcmp.eq.s32.totalorder %v2673_v47, %v81_v49 }
  0x90   :  { %v1930_v19 = vsel %vm93_vm10, 1.0, %v2348_v63 }
  0x91   :  { %638 = vmatpush.bf16.msrb.mxu0 %v2948_v7  ;;  %v117_v25 = vadd.f32 %v1930_v19, %v53_v17  ;;  %863 = vmatpush.bf16.msra.mxu3 %v2722_v4 }
  0x92   :  { %849 = vmatpush.bf16.msra.mxu2 %v2668_v45 }
  0x93   :  { %280 = vmatmul.f32.gmra.mxu0 %v178_v6  ;;  %321 = vmatmul.f32.gmra.mxu1 %v178_v6  ;;  %v181_v28 = vadd.f32 %v1938_v26, %v117_v25  ;;  %v3060_v25 = vperm.slane %v248_v3, 3 }
  0x94   :  { %362 = vmatmul.f32.gmra.mxu2 %v178_v6  ;;  %403 = vmatmul.f32.gmra.mxu3 %v178_v6  ;;  %v1937_v6 = vsel %vm156_vm9, 1.0, %v2348_v63 }
  0x95   :  { %v180_v16 = vadd.f32 %v1937_v6, %v116_v12  ;;  %651 = vmatpush.bf16.msrb.mxu1 %v2950_v9  ;;  %864 = vmatpush.bf16.msra.mxu3 %v2765_v24  ;;  %v3044_v6 = vperm.slane %v248_v3, 0  ;;  %3686 = vst [vmem:[#allocation18_spill] sm:$0xff] %v3060_v25 }
  0x96   :  { %v84_v21 = vpop.permute.xlu0 %83  ;;  %850 = vmatpush.bf16.msra.mxu2 %v2706_v61  ;;  %v148_v30 = vpop.permute.xlu1 %147 }
  0x97   :  { %vm94_vm12 = vcmp.eq.s32.totalorder %v2673_v47, %v84_v21  ;;  %vm158_vm13 = vcmp.eq.s32.totalorder %v2673_v47, %v148_v30  ;;  %3679 = vst [vmem:[#allocation11_spill] sm:$0xff] %v3044_v6  ;;  %v3058_v21 = vperm.slane %v248_v3, 2 }
  0x98   :  { %v1939_v38 = vsel %vm158_vm13, 1.0, %v2348_v63 }
  0x99   :  { %836 = vmatpush.bf16.msra.mxu1 %v2666_v44  ;;  %865 = vmatpush.bf16.msra.mxu3 %v2802_v39  ;;  %3685 = vst [vmem:[#allocation17_spill] sm:$0xff] %v3058_v21 }
  0x9a   :  { %851 = vmatpush.bf16.msra.mxu2 %v2747_v14 }
  0x9b   :  { %283 = vmatmul.f32.gmra.mxu0 %v179_v32  ;;  %324 = vmatmul.f32.gmra.mxu1 %v179_v32 }
  0x9c   :  { %365 = vmatmul.f32.gmra.mxu2 %v179_v32  ;;  %406 = vmatmul.f32.gmra.mxu3 %v179_v32  ;;  %v1931_v32 = vsel %vm94_vm12, 1.0, %v2348_v63 }
  0x9d   :  { %837 = vmatpush.bf16.msra.mxu1 %v2704_v60  ;;  %v118_v33 = vadd.f32 %v1931_v32, %v54_v31  ;;  %866 = vmatpush.bf16.msra.mxu3 %v2845_v5 }
  0x9e   :  { %v151_v41 = vpop.permute.xlu0 %150  ;;  %852 = vmatpush.bf16.msra.mxu2 %v2792_v35 }
  0x9f   :  { %v182_v43 = vadd.f32 %v1939_v38, %v118_v33  ;;  %vm159_vm15 = vcmp.eq.s32.totalorder %v2673_v47, %v151_v41 }
  0xa0   :  { %v1940_v49 = vsel %vm159_vm15, 1.0, %v2348_v63 }
  0xa1   :  { %838 = vmatpush.bf16.msra.mxu1 %v2745_v13  ;;  %867 = vmatpush.bf16.msra.mxu3 %v2887_v27  ;;  %v183_v47 = vadd.f32 %v1940_v49, %v119_v51 }
  0xa2   :  { %853 = vmatpush.bf16.msra.mxu2 %v2835_v1 }
  0xa3   :  { %286 = vmatmul.f32.gmra.mxu0 %v180_v16  ;;  %327 = vmatmul.f32.gmra.mxu1 %v180_v16 }
  0xa4   :  { %368 = vmatmul.f32.gmra.mxu2 %v180_v16  ;;  %409 = vmatmul.f32.gmra.mxu3 %v180_v16 }
  0xa5   :  { %839 = vmatpush.bf16.msra.mxu1 %v2790_v34  ;;  %868 = vmatpush.bf16.msra.mxu3 %v2926_v56 }
  0xa6   :  { %854 = vmatpush.bf16.msra.mxu2 %v2878_v23 }
  0xa9   :  { %840 = vmatpush.bf16.msra.mxu1 %v2833_v62  ;;  %869 = vmatpush.bf16.msra.mxu3 %v2960_v15 }
  0xaa   :  { %855 = vmatpush.bf16.msra.mxu2 %v2924_v53 }
  0xab   :  { %289 = vmatmul.f32.gmra.mxu0 %v181_v28  ;;  %330 = vmatmul.f32.gmra.mxu1 %v181_v28 }
  0xac   :  { %371 = vmatmul.f32.gmra.mxu2 %v181_v28  ;;  %412 = vmatmul.f32.gmra.mxu3 %v181_v28 }
  0xad   :  { %841 = vmatpush.bf16.msra.mxu1 %v2876_v22 }
  0xae   :  { %856 = vmatpush.bf16.msra.mxu2 %v2950_v9 }
  0xb1   :  { %842 = vmatpush.bf16.msra.mxu1 %v2907_v42 }
  0xb3   :  { %292 = vmatmul.f32.gmra.mxu0 %v182_v43  ;;  %333 = vmatmul.f32.gmra.mxu1 %v182_v43 }
  0xb4   :  { %374 = vmatmul.f32.gmra.mxu2 %v182_v43  ;;  %415 = vmatmul.f32.gmra.mxu3 %v182_v43 }
  0xb5   :  { %843 = vmatpush.bf16.msra.mxu1 %v2948_v7 }
  0xbb   :  { %295 = vmatmul.f32.gmra.mxu0 %v183_v47  ;;  %336 = vmatmul.f32.gmra.mxu1 %v183_v47 }
  0xbc   :  { %377 = vmatmul.f32.gmra.mxu2 %v183_v47  ;;  %418 = vmatmul.f32.gmra.mxu3 %v183_v47 }
  0xc3   :  { %639 = vmatmul.bf16.vlgmr.msrb.gmra.mxu0 %v2347_v0  ;;  %652 = vmatmul.bf16.vlgmr.msrb.gmra.mxu1 %v2347_v0 }
  0xc4   :  { %665 = vmatmul.bf16.vlgmr.msrb.gmra.mxu2 %v2347_v0  ;;  %678 = vmatmul.bf16.vlgmr.msrb.gmra.mxu3 %v2347_v0 }
  0xc5   :  { %991 = vmatpush.bf16.msrb.mxu2 %v2666_v44  ;;  %1004 = vmatpush.bf16.msrb.mxu3 %v2668_v45 }
  0xc9   :  { %992 = vmatpush.bf16.msrb.mxu2 %v2704_v60  ;;  %1005 = vmatpush.bf16.msrb.mxu3 %v2706_v61 }
  0xcd   :  { %993 = vmatpush.bf16.msrb.mxu2 %v2745_v13  ;;  %1006 = vmatpush.bf16.msrb.mxu3 %v2747_v14 }
  0xd1   :  { %994 = vmatpush.bf16.msrb.mxu2 %v2790_v34  ;;  %1007 = vmatpush.bf16.msrb.mxu3 %v2792_v35 }
  0xd5   :  { %995 = vmatpush.bf16.msrb.mxu2 %v2833_v62  ;;  %1008 = vmatpush.bf16.msrb.mxu3 %v2835_v1 }
  0xd9   :  { %996 = vmatpush.bf16.msrb.mxu2 %v2876_v22  ;;  %1009 = vmatpush.bf16.msrb.mxu3 %v2878_v23 }
  0xdd   :  { %997 = vmatpush.bf16.msrb.mxu2 %v2907_v42  ;;  %1010 = vmatpush.bf16.msrb.mxu3 %v2924_v53 }
  0xe1   :  { %998 = vmatpush.bf16.msrb.mxu2 %v2948_v7  ;;  %1011 = vmatpush.bf16.msrb.mxu3 %v2950_v9 }
 0x100   :  { %v3029_v0 = vpop.f32.mrf.mxu0  ;;  %v3031_v63 = vpop.f32.mrf.mxu1 }
 0x107   :  { %v3033_v52 = vpop.f32.mrf.mxu2  ;;  %v3035_v57 = vpop.f32.mrf.mxu3 }
 0x108   :  { %v3037_v59 = vpop.f32.mrf.mxu0  ;;  %v3039_v2 = vpop.f32.mrf.mxu1 }
 0x109   :  { %3677 = vst [vmem:[#allocation9_spill] sm:$0xff] %v3037_v59 }
 0x10a   :  { %3678 = vst [vmem:[#allocation10_spill] sm:$0xff] %v3039_v2 }
 0x10f   :  { %v3048_v11 = vpop.f32.mrf.mxu2  ;;  %v3050_v12 = vpop.f32.mrf.mxu3 }
 0x110   :  { %3681 = vst [vmem:[#allocation13_spill] sm:$0xff] %v3048_v11  ;;  %v281_v16 = vpop.f32.mrf.mxu0  ;;  %v322_v17 = vpop.f32.mrf.mxu1 }
 0x111   :  { %3682 = vst [vmem:[#allocation14_spill] sm:$0xff] %v3050_v12  ;;  %v3053_v19 = vadd.f32 %v281_v16, %v3044_v6  ;;  %v3056_v20 = vadd.f32 %v322_v17, %v3046_v10 }
 0x113   :  { %3683 = vst [vmem:[#allocation15_spill] sm:$0xff] %v3053_v19 }
 0x114   :  { %3684 = vst [vmem:[#allocation16_spill] sm:$0xff] %v3056_v20 }
 0x117   :  { %v363_v26 = vpop.f32.mrf.mxu2  ;;  %v404_v28 = vpop.f32.mrf.mxu3 }
 0x118   :  { %v3063_v30 = vadd.f32 %v363_v26, %v3058_v21  ;;  %v3066_v31 = vadd.f32 %v404_v28, %v3060_v25  ;;  %v3068_v32 = vpop.f32.mrf.mxu0  ;;  %v3070_v33 = vpop.f32.mrf.mxu1 }
 0x119   :  { %3689 = vst [vmem:[#allocation21_spill] sm:$0xff] %v3068_v32 }
 0x11a   :  { %3687 = vst [vmem:[#allocation19_spill] sm:$0xff] %v3063_v30 }
 0x11b   :  { %3688 = vst [vmem:[#allocation20_spill] sm:$0xff] %v3066_v31 }
 0x11c   :  { %3690 = vst [vmem:[#allocation22_spill] sm:$0xff] %v3070_v33 }
 0x11f   :  { %v3072_v37 = vpop.f32.mrf.mxu2  ;;  %v3074_v38 = vpop.f32.mrf.mxu3 }
 0x120   :  { %3691 = vst [vmem:[#allocation23_spill] sm:$0xff] %v3072_v37  ;;  %v287_v41 = vpop.f32.mrf.mxu0  ;;  %v328_v43 = vpop.f32.mrf.mxu1 }
 0x121   :  { %3692 = vst [vmem:[#allocation24_spill] sm:$0xff] %v3074_v38  ;;  %v3077_v46 = vadd.f32 %v287_v41, %v3044_v6  ;;  %v3080_v48 = vadd.f32 %v328_v43, %v3046_v10  ;;  %v3097_v41 = vld [vmem:[%s3637_s6 + $0x38] sm:$0xff] }
 0x122   :  { %822 = vmatpush.bf16.msra.mxu0 %v3097_v41  ;;  %976 = vmatpush.bf16.msrb.mxu1 %v3097_v41 }
 0x123   :  { %3693 = vst [vmem:[#allocation25_spill] sm:$0xff] %v3077_v46 }
 0x124   :  { %3694 = vst [vmem:[#allocation26_spill] sm:$0xff] %v3080_v48 }
 0x127   :  { %v369_v49 = vpop.f32.mrf.mxu2  ;;  %v410_v51 = vpop.f32.mrf.mxu3 }
 0x128   :  { %v3083_v47 = vadd.f32 %v369_v49, %v3058_v21  ;;  %v3086_v3 = vadd.f32 %v410_v51, %v3060_v25  ;;  %v290_v16 = vpop.f32.mrf.mxu0  ;;  %v331_v17 = vpop.f32.mrf.mxu1 }
 0x129   :  { %v3089_v26 = vadd.f32 %v290_v16, %v3044_v6  ;;  %v3092_v28 = vadd.f32 %v331_v17, %v3046_v10 }
 0x12a   :  { %3695 = vst [vmem:[#allocation27_spill] sm:$0xff] %v3083_v47 }
 0x12b   :  { %3696 = vst [vmem:[#allocation28_spill] sm:$0xff] %v3086_v3 }
 0x12c   :  { %3697 = vst [vmem:[#allocation29_spill] sm:$0xff] %v3089_v26 }
 0x12d   :  { %3698 = vst [vmem:[#allocation30_spill] sm:$0xff] %v3092_v28 }
 0x12f   :  { %v372_v43 = vpop.f32.mrf.mxu2  ;;  %v413_v46 = vpop.f32.mrf.mxu3 }
 0x130   :  { %v3100_v49 = vadd.f32 %v372_v43, %v3058_v21  ;;  %v3103_v51 = vadd.f32 %v413_v46, %v3060_v25  ;;  %v293_v3 = vpop.f32.mrf.mxu0  ;;  %v334_v47 = vpop.f32.mrf.mxu1  ;;  %v3116_v43 = vld [vmem:[%s3637_s6 + $0x30] sm:$0xff]  ;;  %v3123_v46 = vld [vmem:[%s3637_s6 + $0x28] sm:$0xff] }
 0x131   :  { %v3108_v16 = vadd.f32 %v293_v3, %v3044_v6  ;;  %v3111_v17 = vadd.f32 %v334_v47, %v3046_v10  ;;  %823 = vmatpush.bf16.msra.mxu0 %v3116_v43  ;;  %977 = vmatpush.bf16.msrb.mxu1 %v3116_v43 }
 0x132   :  { %3699 = vst [vmem:[#allocation31_spill] sm:$0xff] %v3100_v49 }
 0x133   :  { %3700 = vst [vmem:[#allocation32_spill] sm:$0xff] %v3103_v51 }
 0x134   :  { %3701 = vst [vmem:[#allocation33_spill] sm:$0xff] %v3108_v16 }
 0x135   :  { %3702 = vst [vmem:[#allocation34_spill] sm:$0xff] %v3111_v17  ;;  %824 = vmatpush.bf16.msra.mxu0 %v3123_v46  ;;  %978 = vmatpush.bf16.msrb.mxu1 %v3123_v46 }
 0x137   :  { %v375_v51 = vpop.f32.mrf.mxu2  ;;  %v416_v3 = vpop.f32.mrf.mxu3 }
 0x138   :  { %v3126_v16 = vadd.f32 %v375_v51, %v3058_v21  ;;  %v3129_v47 = vadd.f32 %v416_v3, %v3060_v25  ;;  %v296_v17 = vpop.f32.mrf.mxu0  ;;  %v337_v49 = vpop.f32.mrf.mxu1  ;;  %v3142_v51 = vld [vmem:[%s3637_s6 + $0x20] sm:$0xff]  ;;  %v3149_v3 = vld [vmem:[%s3637_s6 + $0x18] sm:$0xff] }
 0x139   :  { %v3134_v28 = vadd.f32 %v296_v17, %v3044_v6  ;;  %v3137_v26 = vadd.f32 %v337_v49, %v3046_v10  ;;  %825 = vmatpush.bf16.msra.mxu0 %v3142_v51  ;;  %979 = vmatpush.bf16.msrb.mxu1 %v3142_v51  ;;  %v276_v17 = vadd.f32 %v3029_v0, %v3044_v6  ;;  %v3166_v0 = vld [vmem:[%s3637_s6 + $0x10] sm:$0xff] }
 0x13a   :  { %3703 = vst [vmem:[#allocation35_spill] sm:$0xff] %v3126_v16  ;;  %v317_v49 = vadd.f32 %v3031_v63, %v3046_v10 }
 0x13b   :  { %3704 = vst [vmem:[#allocation36_spill] sm:$0xff] %v3129_v47 }
 0x13c   :  { %3705 = vst [vmem:[#allocation37_spill] sm:$0xff] %v3134_v28 }
 0x13d   :  { %3706 = vst [vmem:[#allocation38_spill] sm:$0xff] %v3137_v26  ;;  %826 = vmatpush.bf16.msra.mxu0 %v3149_v3  ;;  %980 = vmatpush.bf16.msrb.mxu1 %v3149_v3 }
 0x13f   :  { %v378_v28 = vpop.f32.mrf.mxu2  ;;  %v419_v26 = vpop.f32.mrf.mxu3 }
 0x140   :  { %v3156_v47 = vadd.f32 %v378_v28, %v3058_v21  ;;  %v3159_v16 = vadd.f32 %v419_v26, %v3060_v25  ;;  %v640_v48 = vpop.f32.mrf.mxu0  ;;  %v653_v38 = vpop.f32.mrf.mxu1  ;;  %v358_v26 = vadd.f32 %v3033_v52, %v3058_v21  ;;  %v399_v28 = vadd.f32 %v3035_v57, %v3060_v25  ;;  %v3184_v57 = vld [vmem:[%s3637_s6] sm:$0xff] }
 0x141   :  { %v683_v37 = vadd.f32 %v640_v48, %v276_v17  ;;  %v684_v32 = vadd.f32 %v653_v38, %v317_v49  ;;  %827 = vmatpush.bf16.msra.mxu0 %v3166_v0  ;;  %981 = vmatpush.bf16.msrb.mxu1 %v3166_v0  ;;  %v3177_v38 = vld [vmem:[%s3637_s6 + $0x8] sm:$0xff] }
 0x142   :  { %3707 = vst [vmem:[#allocation39_spill] sm:$0xff] %v3156_v47 }
 0x143   :  { %3708 = vst [vmem:[#allocation40_spill] sm:$0xff] %v3159_v16  ;;  %v2069_v63 = vmul.f32 -1.442695, %v683_v37  ;;  %v2070_v33 = vmul.f32 -1.442695, %v684_v32 }
 0x145   :  { %2194 = vpow2.f32 %v2069_v63  ;;  %828 = vmatpush.bf16.msra.mxu0 %v3177_v38  ;;  %982 = vmatpush.bf16.msrb.mxu1 %v3177_v38 }
 0x146   :  { %2196 = vpow2.f32 %v2070_v33 }
 0x147   :  { %v666_v48 = vpop.f32.mrf.mxu2  ;;  %v679_v37 = vpop.f32.mrf.mxu3 }
 0x148   :  { %v685_v32 = vadd.f32 %v666_v48, %v358_v26  ;;  %v686_v17 = vadd.f32 %v679_v37, %v399_v28  ;;  %v642_v49 = vpop.f32.mrf.mxu0  ;;  %v655_v16 = vpop.f32.mrf.mxu1 }
 0x149   :  { %829 = vmatpush.bf16.msra.mxu0 %v3184_v57  ;;  %983 = vmatpush.bf16.msrb.mxu1 %v3184_v57 }
 0x14a   :  { %v2071_v52 = vmul.f32 -1.442695, %v685_v32  ;;  %v2072_v63 = vmul.f32 -1.442695, %v686_v17 }
 0x14b   :  { %v2195_v33 = vpop.eup %2194 }
 0x14c   :  { %v2197_v47 = vpop.eup %2196  ;;  %v3186_v31 = vadd.f32 1.0, %v2195_v33  ;;  %2198 = vpow2.f32 %v2071_v52 }
 0x14d   :  { %v700_v16 = vadd.f32 1.0, %v2197_v47  ;;  %2200 = vpow2.f32 %v2072_v63  ;;  %875 = vmatpush.bf16.msrb.mxu0 %v2643_v36 }
 0x14e   :  { %2202 = vrcp.f32 %v3186_v31  ;;  %vm708_vm6 = vweird.f32 %v3186_v31 }
 0x14f   :  { %2204 = vrcp.f32 %v700_v16  ;;  %v681_v26 = vpop.f32.mrf.mxu3  ;;  %v668_v28 = vpop.f32.mrf.mxu2  ;;  %vm723_vm2 = vweird.f32 %v700_v16  ;;  %v729_v2 = vand.u32 2147483648, %v700_v16 }
 0x151   :  { %876 = vmatpush.bf16.msrb.mxu0 %v2655_v40  ;;  %v730_v59 = vor.u32 1.1754944e-38, %v729_v2 }
 0x152   :  { %v2199_v48 = vpop.eup %2198 }
 0x153   :  { %v2201_v37 = vpop.eup %2200  ;;  %v3194_v33 = vadd.f32 1.0, %v2199_v48 }
 0x154   :  { %v2203_v32 = vpop.eup %2202  ;;  %v702_v17 = vadd.f32 1.0, %v2201_v37 }
 0x155   :  { %v2205_v49 = vpop.eup %2204  ;;  %877 = vmatpush.bf16.msrb.mxu0 %v2692_v54  ;;  %v704_v47 = vmul.f32 %v2203_v32, %v3186_v31  ;;  %vm709_vm3 = vweird.f32 %v2203_v32  ;;  %v744_v2 = vand.u32 2147483648, %v3194_v33  ;;  %vm738_vm13 = vweird.f32 %v3194_v33 }
 0x156   :  { %v719_v52 = vmul.f32 %v2205_v49, %v700_v16  ;;  %2206 = vrcp.f32 %v702_v17  ;;  %vm724_vm0 = vweird.f32 %v2205_v49  ;;  %v759_v48 = vand.u32 2147483648, %v702_v17  ;;  %vm710_vm9 = vmor %vm708_vm6, %vm709_vm3 }
 0x157   :  { %2208 = vrcp.f32 %v3194_v33  ;;  %v705_v26 = vsub.f32 1.0, %v704_v47  ;;  %v757_v21 = vand.u32 2147483647, %v702_v17  ;;  %vm3202_vm4 = vmor %vm723_vm2, %vm724_vm0  ;;  %vm753_vm5 = vweird.f32 %v702_v17 }
 0x158   :  { %v720_v63 = vsub.f32 1.0, %v719_v52  ;;  %v727_v52 = vand.u32 2147483647, %v700_v16  ;;  %v712_v16 = vand.u32 2147483647, %v3186_v31 }
 0x159   :  { %878 = vmatpush.bf16.msrb.mxu0 %v2733_v8  ;;  %v706_v19 = vmul.f32 %v2203_v32, %v705_v26  ;;  %vm758_vm8 = vcmp.eq.f32.partialorder %v757_v21, 8.507059e+37 }
 0x15a   :  { %v721_v30 = vmul.f32 %v2205_v49, %v720_v63  ;;  %vm728_vm10 = vcmp.eq.f32.partialorder %v727_v52, 8.507059e+37  ;;  %vm713_vm11 = vcmp.eq.f32.partialorder %v712_v16, 8.507059e+37 }
 0x15b   :  { %v707_v10 = vadd.f32 %v2203_v32, %v706_v19 }
 0x15c   :  { %v2207_v28 = vpop.eup %2206  ;;  %v722_v25 = vadd.f32 %v2205_v49, %v721_v30  ;;  %v714_v30 = vand.u32 2147483648, %v3186_v31 }
 0x15d   :  { %879 = vmatpush.bf16.msrb.mxu0 %v2778_v29  ;;  %v749_v37 = vmul.f32 %v2207_v28, %v702_v17  ;;  %v2209_v20 = vpop.eup %2208  ;;  %vm754_vm1 = vweird.f32 %v2207_v28  ;;  %v711_v17 = vsel %vm710_vm9, %v2203_v32, %v707_v10  ;;  %v745_v32 = vor.u32 1.1754944e-38, %v744_v2 }
 0x15e   :  { %v734_v47 = vmul.f32 %v2209_v20, %v3194_v33  ;;  %vm755_vm7 = vmor %vm753_vm5, %vm754_vm1  ;;  %v726_v19 = vsel %vm3202_vm4, %v2205_v49, %v722_v25  ;;  %v715_v53 = vor.u32 1.1754944e-38, %v714_v30  ;;  %vm739_vm12 = vweird.f32 %v2209_v20  ;;  %v3714_v49 = vld [vmem:[#allocation7_spill] sm:$0xff]  ;;  %v3718_v30 = vld [vmem:[#allocation9_spill] sm:$0xff] }
 0x15f   :  { %v750_v12 = vsub.f32 1.0, %v749_v37  ;;  %v731_v23 = vsel %vm728_vm10, %v730_v59, %v726_v19  ;;  %v742_v59 = vand.u32 2147483647, %v3194_v33  ;;  %vm740_vm14 = vmor %vm738_vm13, %vm739_vm12  ;;  %v3715_v33 = vld [vmem:[#allocation8_spill] sm:$0xff] }
 0x160   :  { %v735_v6 = vsub.f32 1.0, %v734_v47  ;;  %v716_v1 = vsel %vm713_vm11, %v715_v53, %v711_v17  ;;  %v765_v35 = vmul.f32 0.0, %v731_v23 }
 0x161   :  { %880 = vmatpush.bf16.msrb.mxu0 %v2821_v55  ;;  %v751_v11 = vmul.f32 %v2207_v28, %v750_v12  ;;  %v760_v12 = vor.u32 1.1754944e-38, %v759_v48  ;;  %vm743_vm15 = vcmp.eq.f32.partialorder %v742_v59, 8.507059e+37 }
 0x162   :  { %v736_v31 = vmul.f32 %v2209_v20, %v735_v6  ;;  %v3712_v6 = vld [vmem:[#allocation5_spill] sm:$0xff] }
 0x163   :  { %v752_v26 = vadd.f32 %v2207_v28, %v751_v11 }
 0x164   :  { %v737_v21 = vadd.f32 %v2209_v20, %v736_v31 }
 0x165   :  { %881 = vmatpush.bf16.msrb.mxu0 %v2864_v18  ;;  %v756_v37 = vsel %vm755_vm7, %v2207_v28, %v752_v26  ;;  %v3262_v28 = vld [vmem:[%s3636_s7] ss:$0 sm:$0xff]  ;;  %v3717_v26 = vld [vmem:[#allocation11_spill] sm:$0xff] }
 0x166   :  { %v761_v11 = vsel %vm758_vm8, %v760_v12, %v756_v37  ;;  %v741_v10 = vsel %vm740_vm14, %v2209_v20, %v737_v21  ;;  %v3713_v20 = vld [vmem:[#allocation6_spill] sm:$0xff]  ;;  %3716 = vst [vmem:[#allocation41_spill] sm:$0xff] %v3262_v28  ;;  %v279_v12 = vadd.f32 %v3718_v30, %v3717_v26  ;;  %v3719_v37 = vld [vmem:[#allocation12_spill] sm:$0xff] }
 0x167   :  { %v763_v9 = vmul.f32 2.0, %v761_v11  ;;  %v3720_v11 = vld [vmem:[#allocation10_spill] sm:$0xff] }
 0x168   :  { %v320_v17 = vadd.f32 %v3720_v11, %v3719_v37 }
 0x169   :  { %882 = vmatpush.bf16.msrb.mxu0 %v2931_v58  ;;  %v2073_v48 = vadd.f32 -1.0, %v763_v9  ;;  %v746_v9 = vsel %vm743_vm15, %v745_v32, %v741_v10  ;;  %v3721_v32 = vld [vmem:[#allocation17_spill] sm:$0xff] }
 0x16b   :  { %v766_v63 = vmul.f32 %v2073_v48, %v716_v1 }
 0x16d   :  { %v3213_v25 = vadd.f32 %v766_v63, %v765_v35  ;;  %v3711_v35 = vld [vmem:[#allocation4_spill] sm:$0xff] }
 0x16f   :  { %2210 = vtanh.f32 %v3213_v25 }
 0x175   :  { %v2211_v53 = vpop.eup %2210 }
 0x176   :  { %v769_v23 = vmul.f32 %v2211_v53, %v746_v9  ;;  %v3722_v53 = vld [vmem:[#allocation13_spill] sm:$0xff] }
 0x177   :  { %v361_v9 = vadd.f32 %v3722_v53, %v3721_v32 }
 0x178   :  { %v770_v1 = vpack.c.bf16 %v769_v23, %v769_v23 }
 0x17a   :  { %830 = vmatmul.bf16.vlgmr.msra.gmra.mxu0 %v770_v1  ;;  %844 = vmatmul.bf16.vlgmr.msra.gmra.mxu1 %v770_v1 }
 0x17b   :  { %857 = vmatmul.bf16.vlgmr.msra.gmra.mxu2 %v770_v1  ;;  %870 = vmatmul.bf16.vlgmr.msra.gmra.mxu3 %v770_v1 }
 0x17c   :  { %1017 = vmatpush.bf16.msra.mxu0 %v2681_v50  ;;  %1030 = vmatpush.bf16.msra.mxu1 %v2643_v36 }
 0x17d   :  { %1131 = vmatpush.bf16.msra.mxu2 %v3097_v41  ;;  %1146 = vmatpush.bf16.msra.mxu3 %v2666_v44 }
 0x180   :  { %1018 = vmatpush.bf16.msra.mxu0 %v2722_v4  ;;  %1031 = vmatpush.bf16.msra.mxu1 %v2655_v40 }
 0x181   :  { %1132 = vmatpush.bf16.msra.mxu2 %v3116_v43  ;;  %1147 = vmatpush.bf16.msra.mxu3 %v2704_v60 }
 0x184   :  { %1019 = vmatpush.bf16.msra.mxu0 %v2765_v24  ;;  %1032 = vmatpush.bf16.msra.mxu1 %v2692_v54 }
 0x185   :  { %1133 = vmatpush.bf16.msra.mxu2 %v3123_v46  ;;  %1148 = vmatpush.bf16.msra.mxu3 %v2745_v13 }
 0x188   :  { %1020 = vmatpush.bf16.msra.mxu0 %v2802_v39  ;;  %1033 = vmatpush.bf16.msra.mxu1 %v2733_v8 }
 0x189   :  { %1134 = vmatpush.bf16.msra.mxu2 %v3142_v51  ;;  %1149 = vmatpush.bf16.msra.mxu3 %v2790_v34 }
 0x18a   :  { %883 = vmatmul.bf16.vlgmr.msrb.gmra.mxu0 %v770_v1  ;;  %v3723_v1 = vld [vmem:[#allocation18_spill] sm:$0xff] }
 0x18c   :  { %1021 = vmatpush.bf16.msra.mxu0 %v2845_v5  ;;  %1034 = vmatpush.bf16.msra.mxu1 %v2778_v29 }
 0x18d   :  { %1135 = vmatpush.bf16.msra.mxu2 %v3149_v3  ;;  %1150 = vmatpush.bf16.msra.mxu3 %v2833_v62 }
 0x190   :  { %1022 = vmatpush.bf16.msra.mxu0 %v2887_v27  ;;  %1035 = vmatpush.bf16.msra.mxu1 %v2821_v55 }
 0x191   :  { %1136 = vmatpush.bf16.msra.mxu2 %v3166_v0  ;;  %1151 = vmatpush.bf16.msra.mxu3 %v2876_v22 }
 0x194   :  { %1023 = vmatpush.bf16.msra.mxu0 %v2926_v56  ;;  %1036 = vmatpush.bf16.msra.mxu1 %v2864_v18 }
 0x195   :  { %1137 = vmatpush.bf16.msra.mxu2 %v3177_v38  ;;  %1152 = vmatpush.bf16.msra.mxu3 %v2907_v42 }
 0x198   :  { %1024 = vmatpush.bf16.msra.mxu0 %v2960_v15  ;;  %1037 = vmatpush.bf16.msra.mxu1 %v2931_v58 }
 0x199   :  { %1138 = vmatpush.bf16.msra.mxu2 %v3184_v57  ;;  %1153 = vmatpush.bf16.msra.mxu3 %v2948_v7 }
 0x19c   :  { %1159 = vmatpush.bf16.msrb.mxu0 %v2668_v45 }
 0x1a0   :  { %1160 = vmatpush.bf16.msrb.mxu0 %v2706_v61 }
 0x1a4   :  { %1161 = vmatpush.bf16.msrb.mxu0 %v2747_v14 }
 0x1a8   :  { %1162 = vmatpush.bf16.msrb.mxu0 %v3711_v35 }
 0x1ac   :  { %1163 = vmatpush.bf16.msrb.mxu0 %v3712_v6 }
 0x1b0   :  { %1164 = vmatpush.bf16.msrb.mxu0 %v3713_v20 }
 0x1b4   :  { %1165 = vmatpush.bf16.msrb.mxu0 %v3714_v49 }
 0x1b8   :  { %1166 = vmatpush.bf16.msrb.mxu0 %v3715_v33 }
 0x1f7   :  { %v831_v52 = vpop.f32.mrf.mxu0  ;;  %v845_v47 = vpop.f32.mrf.mxu1 }
 0x1f8   :  { %v832_v16 = vadd.f32 %v3262_v28, %v831_v52  ;;  %v888_v19 = vadd.f32 %v845_v47, %v279_v12  ;;  %v3724_v52 = vld [vmem:[#allocation14_spill] sm:$0xff] }
 0x1f9   :  { %v402_v30 = vadd.f32 %v3724_v52, %v3723_v1 }
 0x1fa   :  { %835 = vst [vmem:[%s3638_s8] sm:$0xff] %v832_v16  ;;  %v2106_v48 = vmul.f32 -1.442695, %v888_v19 }
 0x1fc   :  { %2212 = vpow2.f32 %v2106_v48 }
 0x1fe   :  { %v858_v31 = vpop.f32.mrf.mxu2  ;;  %v871_v63 = vpop.f32.mrf.mxu3 }
 0x1ff   :  { %v889_v21 = vadd.f32 %v858_v31, %v320_v17  ;;  %v833_v2 = vpop.f32.mrf.mxu0  ;;  %v847_v59 = vpop.f32.mrf.mxu1  ;;  %v890_v23 = vadd.f32 %v871_v63, %v361_v9 }
 0x201   :  { %v2107_v10 = vmul.f32 -1.442695, %v889_v21  ;;  %v2108_v19 = vmul.f32 -1.442695, %v890_v23 }
 0x202   :  { %v2213_v11 = vpop.eup %2212 }
 0x203   :  { %2214 = vpow2.f32 %v2107_v10  ;;  %v904_v2 = vadd.f32 1.0, %v2213_v11 }
 0x204   :  { %2216 = vpow2.f32 %v2108_v19 }
 0x205   :  { %vm913_vm6 = vweird.f32 %v904_v2 }
 0x206   :  { %v860_v47 = vpop.f32.mrf.mxu2  ;;  %v873_v12 = vpop.f32.mrf.mxu3 }
 0x207   :  { %v884_v16 = vpop.f32.mrf.mxu0 }
 0x208   :  { %v891_v26 = vadd.f32 %v884_v16, %v402_v30 }
 0x209   :  { %v2215_v37 = vpop.eup %2214 }
 0x20a   :  { %v905_v17 = vadd.f32 1.0, %v2215_v37  ;;  %v2109_v31 = vmul.f32 -1.442695, %v891_v26  ;;  %v2217_v21 = vpop.eup %2216 }
 0x20b   :  { %v906_v52 = vadd.f32 1.0, %v2217_v21 }
 0x20c   :  { %2218 = vrcp.f32 %v905_v17  ;;  %vm928_vm3 = vweird.f32 %v905_v17  ;;  %v934_v21 = vand.u32 2147483648, %v905_v17 }
 0x20d   :  { %2220 = vpow2.f32 %v2109_v31  ;;  %vm943_vm13 = vweird.f32 %v906_v52 }
 0x20e   :  { %2222 = vrcp.f32 %v904_v2 }
 0x20f   :  { %v886_v48 = vpop.f32.mrf.mxu0 }
 0x212   :  { %v2219_v63 = vpop.eup %2218 }
 0x213   :  { %v2221_v59 = vpop.eup %2220  ;;  %v924_v9 = vmul.f32 %v2219_v63, %v905_v17  ;;  %vm929_vm0 = vweird.f32 %v2219_v63 }
 0x214   :  { %v2223_v10 = vpop.eup %2222  ;;  %v907_v53 = vadd.f32 1.0, %v2221_v59  ;;  %vm3276_vm4 = vmor %vm928_vm3, %vm929_vm0 }
 0x215   :  { %v909_v47 = vmul.f32 %v2223_v10, %v904_v2  ;;  %v925_v23 = vsub.f32 1.0, %v924_v9  ;;  %vm914_vm2 = vweird.f32 %v2223_v10 }
 0x216   :  { %2224 = vrcp.f32 %v907_v53  ;;  %v964_v31 = vand.u32 2147483648, %v907_v53  ;;  %v962_v32 = vand.u32 2147483647, %v907_v53  ;;  %vm958_vm5 = vweird.f32 %v907_v53  ;;  %vm915_vm9 = vmor %vm913_vm6, %vm914_vm2 }
 0x217   :  { %2226 = vrcp.f32 %v906_v52  ;;  %v910_v30 = vsub.f32 1.0, %v909_v47  ;;  %v926_v26 = vmul.f32 %v2219_v63, %v925_v23  ;;  %v932_v47 = vand.u32 2147483647, %v905_v17 }
 0x218   :  { %vm963_vm8 = vcmp.eq.f32.partialorder %v962_v32, 8.507059e+37 }
 0x219   :  { %v911_v11 = vmul.f32 %v2223_v10, %v910_v30  ;;  %v927_v48 = vadd.f32 %v2219_v63, %v926_v26  ;;  %v919_v30 = vand.u32 2147483648, %v904_v2  ;;  %v917_v26 = vand.u32 2147483647, %v904_v2 }
 0x21a   :  { %vm933_vm10 = vcmp.eq.f32.partialorder %v932_v47, 8.507059e+37  ;;  %v3733_v47 = vld [vmem:[#allocation41_spill] sm:$0xff] }
 0x21b   :  { %v912_v28 = vadd.f32 %v2223_v10, %v911_v11  ;;  %v935_v11 = vor.u32 1.1754944e-38, %v934_v21  ;;  %vm918_vm11 = vcmp.eq.f32.partialorder %v917_v26, 8.507059e+37  ;;  %v3732_v21 = vld [vmem:[#allocation8_spill] sm:$0xff]  ;;  %v3734_v26 = vld [vmem:[#allocation15_spill] sm:$0xff] }
 0x21c   :  { %v2225_v37 = vpop.eup %2224 }
 0x21d   :  { %v954_v12 = vmul.f32 %v2225_v37, %v907_v53  ;;  %v2227_v16 = vpop.eup %2226  ;;  %vm959_vm1 = vweird.f32 %v2225_v37  ;;  %v916_v6 = vsel %vm915_vm9, %v2223_v10, %v912_v28 }
 0x21e   :  { %v939_v59 = vmul.f32 %v2227_v16, %v906_v52  ;;  %vm960_vm7 = vmor %vm958_vm5, %vm959_vm1  ;;  %vm944_vm12 = vweird.f32 %v2227_v16 }
 0x21f   :  { %v955_v19 = vsub.f32 1.0, %v954_v12  ;;  %v965_v12 = vor.u32 1.1754944e-38, %v964_v31  ;;  %vm945_vm14 = vmor %vm943_vm13, %vm944_vm12 }
 0x220   :  { %v940_v49 = vsub.f32 1.0, %v939_v59 }
 0x221   :  { %v956_v1 = vmul.f32 %v2225_v37, %v955_v19  ;;  %v931_v19 = vsel %vm3276_vm4, %v2219_v63, %v927_v48 }
 0x222   :  { %v936_v53 = vsel %vm933_vm10, %v935_v11, %v931_v19  ;;  %v941_v31 = vmul.f32 %v2227_v16, %v940_v49 }
 0x223   :  { %v957_v23 = vadd.f32 %v2225_v37, %v956_v1  ;;  %v920_v1 = vor.u32 1.1754944e-38, %v919_v30  ;;  %v970_v2 = vmul.f32 %v936_v53, %v3213_v25  ;;  %v3728_v25 = vld [vmem:[#allocation4_spill] sm:$0xff] }
 0x224   :  { %v942_v32 = vadd.f32 %v2227_v16, %v941_v31 }
 0x225   :  { %v961_v33 = vsel %vm960_vm7, %v2225_v37, %v957_v23  ;;  %v921_v14 = vsel %vm918_vm11, %v920_v1, %v916_v6  ;;  %v949_v37 = vand.u32 2147483648, %v906_v52 }
 0x226   :  { %v966_v20 = vsel %vm963_vm8, %v965_v12, %v961_v33  ;;  %v947_v33 = vand.u32 2147483647, %v906_v52  ;;  %v3730_v52 = vld [vmem:[#allocation6_spill] sm:$0xff] }
 0x227   :  { %v968_v17 = vmul.f32 2.0, %v966_v20  ;;  %v946_v20 = vsel %vm945_vm14, %v2227_v16, %v942_v32  ;;  %v950_v28 = vor.u32 1.1754944e-38, %v949_v37  ;;  %v3731_v16 = vld [vmem:[#allocation7_spill] sm:$0xff] }
 0x228   :  { %vm948_vm15 = vcmp.eq.f32.partialorder %v947_v33, 8.507059e+37  ;;  %v3736_v32 = vld [vmem:[#allocation19_spill] sm:$0xff] }
 0x229   :  { %v2110_v35 = vadd.f32 -1.0, %v968_v17  ;;  %v951_v48 = vsel %vm948_vm15, %v950_v28, %v946_v20  ;;  %v3735_v17 = vld [vmem:[#allocation16_spill] sm:$0xff] }
 0x22b   :  { %v971_v9 = vmul.f32 %v2110_v35, %v921_v14  ;;  %v3727_v14 = vld [vmem:[#allocation3_spill] sm:$0xff]  ;;  %v3729_v35 = vld [vmem:[#allocation5_spill] sm:$0xff] }
 0x22d   :  { %v3284_v63 = vadd.f32 %v971_v9, %v970_v2 }
 0x22f   :  { %2228 = vtanh.f32 %v3284_v63 }
 0x235   :  { %v2229_v10 = vpop.eup %2228 }
 0x236   :  { %v974_v6 = vmul.f32 %v2229_v10, %v951_v48 }
 0x238   :  { %v975_v49 = vpack.c.bf16 %v974_v6, %v974_v6  ;;  %v3737_v6 = vld [vmem:[#allocation20_spill] sm:$0xff] }
 0x23a   :  { %984 = vmatmul.bf16.vlgmr.msrb.gmra.mxu1 %v975_v49  ;;  %999 = vmatmul.bf16.vlgmr.msrb.gmra.mxu2 %v975_v49 }
 0x23b   :  { %1012 = vmatmul.bf16.vlgmr.msrb.gmra.mxu3 %v975_v49  ;;  %1025 = vmatmul.bf16.vlgmr.msra.gmra.mxu0 %v975_v49 }
 0x23c   :  { %1172 = vmatpush.bf16.msrb.mxu1 %v2681_v50  ;;  %1185 = vmatpush.bf16.msrb.mxu2 %v2643_v36 }
 0x23d   :  { %1286 = vmatpush.bf16.msrb.mxu3 %v3097_v41  ;;  %1301 = vmatpush.bf16.msra.mxu0 %v2666_v44 }
 0x240   :  { %1173 = vmatpush.bf16.msrb.mxu1 %v2722_v4  ;;  %1186 = vmatpush.bf16.msrb.mxu2 %v2655_v40 }
 0x241   :  { %1287 = vmatpush.bf16.msrb.mxu3 %v3116_v43  ;;  %1302 = vmatpush.bf16.msra.mxu0 %v2704_v60 }
 0x244   :  { %1174 = vmatpush.bf16.msrb.mxu1 %v2765_v24  ;;  %1187 = vmatpush.bf16.msrb.mxu2 %v2692_v54 }
 0x245   :  { %1288 = vmatpush.bf16.msrb.mxu3 %v3123_v46  ;;  %1303 = vmatpush.bf16.msra.mxu0 %v2745_v13 }
 0x248   :  { %1175 = vmatpush.bf16.msrb.mxu1 %v2802_v39  ;;  %1188 = vmatpush.bf16.msrb.mxu2 %v2733_v8 }
 0x249   :  { %1289 = vmatpush.bf16.msrb.mxu3 %v3142_v51  ;;  %1304 = vmatpush.bf16.msra.mxu0 %v2790_v34 }
 0x24a   :  { %1038 = vmatmul.bf16.vlgmr.msra.gmra.mxu1 %v975_v49 }
 0x24c   :  { %1176 = vmatpush.bf16.msrb.mxu1 %v2845_v5  ;;  %1189 = vmatpush.bf16.msrb.mxu2 %v2778_v29 }
 0x24d   :  { %1290 = vmatpush.bf16.msrb.mxu3 %v3149_v3  ;;  %1305 = vmatpush.bf16.msra.mxu0 %v2833_v62 }
 0x250   :  { %1177 = vmatpush.bf16.msrb.mxu1 %v2887_v27  ;;  %1190 = vmatpush.bf16.msrb.mxu2 %v2821_v55 }
 0x251   :  { %1291 = vmatpush.bf16.msrb.mxu3 %v3166_v0  ;;  %1306 = vmatpush.bf16.msra.mxu0 %v2876_v22 }
 0x254   :  { %1178 = vmatpush.bf16.msrb.mxu1 %v2926_v56  ;;  %1191 = vmatpush.bf16.msrb.mxu2 %v2864_v18 }
 0x255   :  { %1292 = vmatpush.bf16.msrb.mxu3 %v3177_v38  ;;  %1307 = vmatpush.bf16.msra.mxu0 %v2907_v42 }
 0x258   :  { %1179 = vmatpush.bf16.msrb.mxu1 %v2960_v15  ;;  %1192 = vmatpush.bf16.msrb.mxu2 %v2931_v58 }
 0x259   :  { %1293 = vmatpush.bf16.msrb.mxu3 %v3184_v57  ;;  %1308 = vmatpush.bf16.msra.mxu0 %v2948_v7 }
 0x25c   :  { %1314 = vmatpush.bf16.msra.mxu1 %v2668_v45 }
 0x260   :  { %1315 = vmatpush.bf16.msra.mxu1 %v2706_v61 }
 0x264   :  { %1316 = vmatpush.bf16.msra.mxu1 %v3727_v14 }
 0x268   :  { %1317 = vmatpush.bf16.msra.mxu1 %v3728_v25 }
 0x26c   :  { %1318 = vmatpush.bf16.msra.mxu1 %v3729_v35 }
 0x270   :  { %1319 = vmatpush.bf16.msra.mxu1 %v3730_v52 }
 0x274   :  { %1320 = vmatpush.bf16.msra.mxu1 %v3731_v16 }
 0x278   :  { %1321 = vmatpush.bf16.msra.mxu1 %v3732_v21 }
 0x2b7   :  { %v985_v59 = vpop.f32.mrf.mxu1 }
 0x2b8   :  { %v986_v23 = vadd.f32 %v3733_v47, %v985_v59  ;;  %v1026_v30 = vpop.f32.mrf.mxu0 }
 0x2b9   :  { %v1045_v37 = vadd.f32 %v1026_v30, %v3736_v32 }
 0x2ba   :  { %2111 = vst [vmem:[%s3638_s8 + $0x8] sm:$0xff] %v986_v23 }
 0x2bb   :  { %v2114_v48 = vmul.f32 -1.442695, %v1045_v37 }
 0x2bd   :  { %v1000_v12 = vpop.f32.mrf.mxu2 }
 0x2be   :  { %v1043_v19 = vadd.f32 %v1000_v12, %v3734_v26  ;;  %v1013_v11 = vpop.f32.mrf.mxu3 }
 0x2bf   :  { %v1044_v1 = vadd.f32 %v1013_v11, %v3735_v17  ;;  %v987_v53 = vpop.f32.mrf.mxu1 }
 0x2c0   :  { %v2112_v31 = vmul.f32 -1.442695, %v1043_v19  ;;  %v1028_v2 = vpop.f32.mrf.mxu0 }
 0x2c1   :  { %v2113_v9 = vmul.f32 -1.442695, %v1044_v1 }
 0x2c2   :  { %2230 = vpow2.f32 %v2112_v31 }
 0x2c3   :  { %2232 = vpow2.f32 %v2113_v9 }
 0x2c4   :  { %2234 = vpow2.f32 %v2114_v48 }
 0x2c5   :  { %v1002_v33 = vpop.f32.mrf.mxu2 }
 0x2c6   :  { %v1015_v20 = vpop.f32.mrf.mxu3 }
 0x2c7   :  { %v1039_v28 = vpop.f32.mrf.mxu1 }
 0x2c8   :  { %v2231_v10 = vpop.eup %2230  ;;  %v1046_v49 = vadd.f32 %v1039_v28, %v3737_v6 }
 0x2c9   :  { %v2233_v59 = vpop.eup %2232  ;;  %v1059_v26 = vadd.f32 1.0, %v2231_v10 }
 0x2ca   :  { %v1060_v23 = vadd.f32 1.0, %v2233_v59  ;;  %v2115_v12 = vmul.f32 -1.442695, %v1046_v49  ;;  %v2235_v11 = vpop.eup %2234 }
 0x2cb   :  { %v1061_v31 = vadd.f32 1.0, %v2235_v11  ;;  %vm1068_vm6 = vweird.f32 %v1059_v26 }
 0x2cc   :  { %2236 = vrcp.f32 %v1060_v23  ;;  %vm1083_vm2 = vweird.f32 %v1060_v23  ;;  %v1087_v11 = vand.u32 2147483647, %v1060_v23  ;;  %v1089_v47 = vand.u32 2147483648, %v1060_v23 }
 0x2cd   :  { %2238 = vpow2.f32 %v2115_v12  ;;  %vm1098_vm13 = vweird.f32 %v1061_v31 }
 0x2ce   :  { %2240 = vrcp.f32 %v1059_v26  ;;  %vm1088_vm10 = vcmp.eq.f32.partialorder %v1087_v11, 8.507059e+37 }
 0x2cf   :  { %v1041_v19 = vpop.f32.mrf.mxu1 }
 0x2d2   :  { %v2237_v17 = vpop.eup %2236 }
 0x2d3   :  { %v2239_v1 = vpop.eup %2238  ;;  %v1079_v2 = vmul.f32 %v2237_v17, %v1060_v23  ;;  %vm1084_vm0 = vweird.f32 %v2237_v17  ;;  %v1090_v23 = vor.u32 1.1754944e-38, %v1089_v47 }
 0x2d4   :  { %v2241_v30 = vpop.eup %2240  ;;  %v1062_v53 = vadd.f32 1.0, %v2239_v1  ;;  %vm3335_vm4 = vmor %vm1083_vm2, %vm1084_vm0 }
 0x2d5   :  { %v1064_v9 = vmul.f32 %v2241_v30, %v1059_v26  ;;  %v1080_v32 = vsub.f32 1.0, %v1079_v2  ;;  %vm1069_vm3 = vweird.f32 %v2241_v30 }
 0x2d6   :  { %2242 = vrcp.f32 %v1062_v53  ;;  %v1119_v49 = vand.u32 2147483648, %v1062_v53  ;;  %v1117_v19 = vand.u32 2147483647, %v1062_v53  ;;  %vm1113_vm5 = vweird.f32 %v1062_v53  ;;  %vm1070_vm9 = vmor %vm1068_vm6, %vm1069_vm3 }
 0x2d7   :  { %2244 = vrcp.f32 %v1061_v31  ;;  %v1065_v37 = vsub.f32 1.0, %v1064_v9  ;;  %v1081_v20 = vmul.f32 %v2237_v17, %v1080_v32  ;;  %v1074_v32 = vand.u32 2147483648, %v1059_v26 }
 0x2d8   :  { %vm1118_vm8 = vcmp.eq.f32.partialorder %v1117_v19, 8.507059e+37 }
 0x2d9   :  { %v1066_v48 = vmul.f32 %v2241_v30, %v1065_v37  ;;  %v1082_v59 = vadd.f32 %v2237_v17, %v1081_v20  ;;  %v1120_v37 = vor.u32 1.1754944e-38, %v1119_v49  ;;  %v1072_v20 = vand.u32 2147483647, %v1059_v26 }
 0x2da   :  { %v1075_v25 = vor.u32 1.1754944e-38, %v1074_v32  ;;  %v3751_v32 = vld [vmem:[#allocation41_spill] sm:$0xff] }
 0x2db   :  { %v1067_v21 = vadd.f32 %v2241_v30, %v1066_v48  ;;  %vm1073_vm11 = vcmp.eq.f32.partialorder %v1072_v20, 8.507059e+37 }
 0x2dc   :  { %v2243_v33 = vpop.eup %2242 }
 0x2dd   :  { %v1109_v28 = vmul.f32 %v2243_v33, %v1062_v53  ;;  %v2245_v10 = vpop.eup %2244  ;;  %vm1114_vm1 = vweird.f32 %v2243_v33  ;;  %v1071_v52 = vsel %vm1070_vm9, %v2241_v30, %v1067_v21  ;;  %v1102_v21 = vand.u32 2147483647, %v1061_v31 }
 0x2de   :  { %v1094_v1 = vmul.f32 %v2245_v10, %v1061_v31  ;;  %vm1115_vm7 = vmor %vm1113_vm5, %vm1114_vm1  ;;  %v1076_v61 = vsel %vm1073_vm11, %v1075_v25, %v1071_v52  ;;  %vm1099_vm12 = vweird.f32 %v2245_v10 }
 0x2df   :  { %v1110_v6 = vsub.f32 1.0, %v1109_v28  ;;  %v1086_v28 = vsel %vm3335_vm4, %v2237_v17, %v1082_v59  ;;  %vm1100_vm14 = vmor %vm1098_vm13, %vm1099_vm12  ;;  %vm1103_vm15 = vcmp.eq.f32.partialorder %v1102_v21, 8.507059e+37 }
 0x2e0   :  { %v1095_v16 = vsub.f32 1.0, %v1094_v1 }
 0x2e1   :  { %v1111_v12 = vmul.f32 %v2243_v33, %v1110_v6 }
 0x2e2   :  { %v1096_v14 = vmul.f32 %v2245_v10, %v1095_v16 }
 0x2e3   :  { %v1112_v9 = vadd.f32 %v2243_v33, %v1111_v12  ;;  %v1091_v12 = vsel %vm1088_vm10, %v1090_v23, %v1086_v28 }
 0x2e4   :  { %v1125_v26 = vmul.f32 %v1091_v12, %v3284_v63  ;;  %v1097_v17 = vadd.f32 %v2245_v10, %v1096_v14  ;;  %v3747_v14 = vld [vmem:[#allocation12_spill] sm:$0xff] }
 0x2e5   :  { %v1116_v6 = vsel %vm1115_vm7, %v2243_v33, %v1112_v9  ;;  %v1104_v33 = vand.u32 2147483648, %v1061_v31  ;;  %v3749_v31 = vld [vmem:[#allocation11_spill] sm:$0xff] }
 0x2e6   :  { %v1121_v48 = vsel %vm1118_vm8, %v1120_v37, %v1116_v6  ;;  %v1101_v47 = vsel %vm1100_vm14, %v2245_v10, %v1097_v17  ;;  %v3750_v10 = vld [vmem:[#allocation21_spill] sm:$0xff] }
 0x2e7   :  { %v1123_v35 = vmul.f32 2.0, %v1121_v48  ;;  %v1105_v30 = vor.u32 1.1754944e-38, %v1104_v33  ;;  %v285_v19 = vadd.f32 %v3750_v10, %v3749_v31 }
 0x2e9   :  { %v2116_v53 = vadd.f32 -1.0, %v1123_v35  ;;  %v1106_v35 = vsel %vm1103_vm15, %v1105_v30, %v1101_v47  ;;  %v3754_v30 = vld [vmem:[#allocation18_spill] sm:$0xff] }
 0x2eb   :  { %v1126_v49 = vmul.f32 %v2116_v53, %v1076_v61  ;;  %v3740_v61 = vld [vmem:[#allocation2_spill] sm:$0xff] }
 0x2ed   :  { %v3342_v2 = vadd.f32 %v1126_v49, %v1125_v26  ;;  %v3752_v26 = vld [vmem:[#allocation17_spill] sm:$0xff]  ;;  %v3753_v49 = vld [vmem:[#allocation23_spill] sm:$0xff] }
 0x2ee   :  { %v367_v17 = vadd.f32 %v3753_v49, %v3752_v26 }
 0x2ef   :  { %2246 = vtanh.f32 %v3342_v2 }
 0x2f5   :  { %v2247_v59 = vpop.eup %2246 }
 0x2f6   :  { %v1129_v16 = vmul.f32 %v2247_v59, %v1106_v35  ;;  %v3755_v59 = vld [vmem:[#allocation24_spill] sm:$0xff] }
 0x2f7   :  { %v408_v35 = vadd.f32 %v3755_v59, %v3754_v30 }
 0x2f8   :  { %v1130_v25 = vpack.c.bf16 %v1129_v16, %v1129_v16 }
 0x2fa   :  { %1139 = vmatmul.bf16.vlgmr.msra.gmra.mxu2 %v1130_v25  ;;  %1154 = vmatmul.bf16.vlgmr.msra.gmra.mxu3 %v1130_v25 }
 0x2fb   :  { %1167 = vmatmul.bf16.vlgmr.msrb.gmra.mxu0 %v1130_v25  ;;  %1180 = vmatmul.bf16.vlgmr.msrb.gmra.mxu1 %v1130_v25 }
 0x2fc   :  { %1327 = vmatpush.bf16.msra.mxu2 %v2681_v50  ;;  %1340 = vmatpush.bf16.msra.mxu3 %v2643_v36 }
 0x2fd   :  { %1441 = vmatpush.bf16.msrb.mxu0 %v3097_v41  ;;  %1456 = vmatpush.bf16.msrb.mxu1 %v2666_v44  ;;  %v3741_v41 = vld [vmem:[#allocation3_spill] sm:$0xff] }
 0x300   :  { %1328 = vmatpush.bf16.msra.mxu2 %v2722_v4  ;;  %1341 = vmatpush.bf16.msra.mxu3 %v2655_v40 }
 0x301   :  { %1442 = vmatpush.bf16.msrb.mxu0 %v3116_v43  ;;  %1457 = vmatpush.bf16.msrb.mxu1 %v2704_v60  ;;  %v3742_v43 = vld [vmem:[#allocation4_spill] sm:$0xff] }
 0x304   :  { %1329 = vmatpush.bf16.msra.mxu2 %v2765_v24  ;;  %1342 = vmatpush.bf16.msra.mxu3 %v2692_v54 }
 0x305   :  { %1443 = vmatpush.bf16.msrb.mxu0 %v3123_v46  ;;  %1458 = vmatpush.bf16.msrb.mxu1 %v2745_v13  ;;  %v3743_v46 = vld [vmem:[#allocation5_spill] sm:$0xff] }
 0x308   :  { %1330 = vmatpush.bf16.msra.mxu2 %v2802_v39  ;;  %1343 = vmatpush.bf16.msra.mxu3 %v2733_v8 }
 0x309   :  { %1444 = vmatpush.bf16.msrb.mxu0 %v3142_v51  ;;  %1459 = vmatpush.bf16.msrb.mxu1 %v2790_v34  ;;  %v3744_v51 = vld [vmem:[#allocation6_spill] sm:$0xff] }
 0x30a   :  { %1193 = vmatmul.bf16.vlgmr.msrb.gmra.mxu2 %v1130_v25 }
 0x30c   :  { %1331 = vmatpush.bf16.msra.mxu2 %v2845_v5  ;;  %1344 = vmatpush.bf16.msra.mxu3 %v2778_v29 }
 0x30d   :  { %1445 = vmatpush.bf16.msrb.mxu0 %v3149_v3  ;;  %1460 = vmatpush.bf16.msrb.mxu1 %v2833_v62  ;;  %v3745_v3 = vld [vmem:[#allocation7_spill] sm:$0xff] }
 0x310   :  { %1332 = vmatpush.bf16.msra.mxu2 %v2887_v27  ;;  %1345 = vmatpush.bf16.msra.mxu3 %v2821_v55 }
 0x311   :  { %1446 = vmatpush.bf16.msrb.mxu0 %v3166_v0  ;;  %1461 = vmatpush.bf16.msrb.mxu1 %v2876_v22  ;;  %v3746_v0 = vld [vmem:[#allocation8_spill] sm:$0xff] }
 0x314   :  { %1333 = vmatpush.bf16.msra.mxu2 %v2926_v56  ;;  %1346 = vmatpush.bf16.msra.mxu3 %v2864_v18 }
 0x315   :  { %1447 = vmatpush.bf16.msrb.mxu0 %v3177_v38  ;;  %1462 = vmatpush.bf16.msrb.mxu1 %v2907_v42 }
 0x318   :  { %1334 = vmatpush.bf16.msra.mxu2 %v2960_v15  ;;  %1347 = vmatpush.bf16.msra.mxu3 %v2931_v58 }
 0x319   :  { %1448 = vmatpush.bf16.msrb.mxu0 %v3184_v57  ;;  %1463 = vmatpush.bf16.msrb.mxu1 %v2948_v7  ;;  %v3748_v57 = vld [vmem:[#allocation22_spill] sm:$0xff] }
 0x31a   :  { %v326_v52 = vadd.f32 %v3748_v57, %v3747_v14 }
 0x31c   :  { %1469 = vmatpush.bf16.msrb.mxu2 %v2668_v45 }
 0x320   :  { %1470 = vmatpush.bf16.msrb.mxu2 %v3740_v61 }
 0x324   :  { %1471 = vmatpush.bf16.msrb.mxu2 %v3741_v41 }
 0x328   :  { %1472 = vmatpush.bf16.msrb.mxu2 %v3742_v43 }
 0x32c   :  { %1473 = vmatpush.bf16.msrb.mxu2 %v3743_v46 }
 0x330   :  { %1474 = vmatpush.bf16.msrb.mxu2 %v3744_v51 }
 0x334   :  { %1475 = vmatpush.bf16.msrb.mxu2 %v3745_v3 }
 0x338   :  { %1476 = vmatpush.bf16.msrb.mxu2 %v3746_v0 }
 0x378   :  { %v1168_v38 = vpop.f32.mrf.mxu0  ;;  %v1181_v63 = vpop.f32.mrf.mxu1 }
 0x379   :  { %v1199_v1 = vadd.f32 %v1168_v38, %v326_v52  ;;  %v1200_v33 = vadd.f32 %v1181_v63, %v367_v17 }
 0x37b   :  { %v2119_v28 = vmul.f32 -1.442695, %v1199_v1  ;;  %v2120_v16 = vmul.f32 -1.442695, %v1200_v33 }
 0x37d   :  { %v1140_v11 = vpop.f32.mrf.mxu2  ;;  %v1155_v9 = vpop.f32.mrf.mxu3  ;;  %2248 = vpow2.f32 %v2119_v28 }
 0x37e   :  { %v1141_v37 = vadd.f32 %v3751_v32, %v1140_v11  ;;  %v1198_v20 = vadd.f32 %v1155_v9, %v285_v19 }
 0x380   :  { %2117 = vst [vmem:[%s3638_s8 + $0x10] sm:$0xff] %v1141_v37  ;;  %v1170_v6 = vpop.f32.mrf.mxu0  ;;  %v1183_v23 = vpop.f32.mrf.mxu1  ;;  %v2118_v48 = vmul.f32 -1.442695, %v1198_v20 }
 0x382   :  { %2250 = vpow2.f32 %v2118_v48 }
 0x383   :  { %v2249_v21 = vpop.eup %2248  ;;  %2252 = vpow2.f32 %v2120_v16 }
 0x384   :  { %v1215_v25 = vadd.f32 1.0, %v2249_v21 }
 0x385   :  { %v1142_v12 = vpop.f32.mrf.mxu2  ;;  %v1157_v53 = vpop.f32.mrf.mxu3 }
 0x386   :  { %2254 = vrcp.f32 %v1215_v25  ;;  %vm1238_vm2 = vweird.f32 %v1215_v25  ;;  %v1242_v30 = vand.u32 2147483647, %v1215_v25  ;;  %v1244_v59 = vand.u32 2147483648, %v1215_v25 }
 0x388   :  { %v2251_v47 = vpop.eup %2250  ;;  %vm1243_vm10 = vcmp.eq.f32.partialorder %v1242_v30, 8.507059e+37 }
 0x389   :  { %v1214_v57 = vadd.f32 1.0, %v2251_v47  ;;  %v2253_v10 = vpop.eup %2252 }
 0x38a   :  { %v1216_v37 = vadd.f32 1.0, %v2253_v10 }
 0x38b   :  { %vm1223_vm6 = vweird.f32 %v1214_v57 }
 0x38c   :  { %v2255_v19 = vpop.eup %2254  ;;  %vm1253_vm13 = vweird.f32 %v1216_v37 }
 0x38d   :  { %v1194_v38 = vpop.f32.mrf.mxu2  ;;  %v1234_v9 = vmul.f32 %v2255_v19, %v1215_v25  ;;  %vm1239_vm0 = vweird.f32 %v2255_v19  ;;  %v1245_v25 = vor.u32 1.1754944e-38, %v1244_v59 }
 0x38e   :  { %v1201_v14 = vadd.f32 %v1194_v38, %v408_v35  ;;  %vm3397_vm3 = vmor %vm1238_vm2, %vm1239_vm0 }
 0x38f   :  { %v1235_v28 = vsub.f32 1.0, %v1234_v9 }
 0x390   :  { %v2121_v52 = vmul.f32 -1.442695, %v1201_v14 }
 0x391   :  { %v1236_v48 = vmul.f32 %v2255_v19, %v1235_v28 }
 0x392   :  { %2256 = vpow2.f32 %v2121_v52  ;;  %v1229_v52 = vand.u32 2147483648, %v1214_v57 }
 0x393   :  { %2258 = vrcp.f32 %v1214_v57  ;;  %v1237_v33 = vadd.f32 %v2255_v19, %v1236_v48 }
 0x395   :  { %v1196_v31 = vpop.f32.mrf.mxu2  ;;  %v1241_v10 = vsel %vm3397_vm3, %v2255_v19, %v1237_v33  ;;  %v1257_v33 = vand.u32 2147483647, %v1216_v37 }
 0x397   :  { %vm1258_vm15 = vcmp.eq.f32.partialorder %v1257_v33, 8.507059e+37  ;;  %v3760_v33 = vld [vmem:[#allocation27_spill] sm:$0xff] }
 0x398   :  { %v2257_v1 = vpop.eup %2256 }
 0x399   :  { %v2259_v63 = vpop.eup %2258  ;;  %v1217_v11 = vadd.f32 1.0, %v2257_v1  ;;  %v1227_v1 = vand.u32 2147483647, %v1214_v57 }
 0x39a   :  { %v1219_v20 = vmul.f32 %v2259_v63, %v1214_v57  ;;  %vm1224_vm4 = vweird.f32 %v2259_v63 }
 0x39b   :  { %2260 = vrcp.f32 %v1217_v11  ;;  %v1274_v17 = vand.u32 2147483648, %v1217_v11  ;;  %v1272_v47 = vand.u32 2147483647, %v1217_v11  ;;  %vm1268_vm5 = vweird.f32 %v1217_v11  ;;  %vm1225_vm9 = vmor %vm1223_vm6, %vm1224_vm4 }
 0x39c   :  { %2262 = vrcp.f32 %v1216_v37  ;;  %v1220_v6 = vsub.f32 1.0, %v1219_v20  ;;  %vm1228_vm11 = vcmp.eq.f32.partialorder %v1227_v1, 8.507059e+37  ;;  %v3476_v1 = vld [vmem:[%s3637_s6] sm:$0xff] }
 0x39d   :  { %v1275_v31 = vor.u32 1.1754944e-38, %v1274_v17  ;;  %vm1273_vm8 = vcmp.eq.f32.partialorder %v1272_v47, 8.507059e+37 }
 0x39e   :  { %v1221_v26 = vmul.f32 %v2259_v63, %v1220_v6 }
 0x3a0   :  { %v1222_v38 = vadd.f32 %v2259_v63, %v1221_v26  ;;  %v1230_v26 = vor.u32 1.1754944e-38, %v1229_v52  ;;  %v3448_v52 = vld [vmem:[%s3637_s6 + $0x18] sm:$0xff] }
 0x3a1   :  { %v2261_v23 = vpop.eup %2260 }
 0x3a2   :  { %v1264_v12 = vmul.f32 %v2261_v23, %v1217_v11  ;;  %v2263_v53 = vpop.eup %2262  ;;  %vm1269_vm1 = vweird.f32 %v2261_v23  ;;  %v1226_v6 = vsel %vm1225_vm9, %v2259_v63, %v1222_v38 }
 0x3a3   :  { %v1249_v35 = vmul.f32 %v2263_v53, %v1216_v37  ;;  %vm1270_vm7 = vmor %vm1268_vm5, %vm1269_vm1  ;;  %vm1254_vm12 = vweird.f32 %v2263_v53 }
 0x3a4   :  { %v1265_v49 = vsub.f32 1.0, %v1264_v12  ;;  %v1246_v12 = vsel %vm1243_vm10, %v1245_v25, %v1241_v10  ;;  %vm1255_vm14 = vmor %vm1253_vm13, %vm1254_vm12  ;;  %v3466_v10 = vld [vmem:[%s3637_s6 + $0x8] sm:$0xff] }
 0x3a5   :  { %v1250_v20 = vsub.f32 1.0, %v1249_v35  ;;  %v1280_v17 = vmul.f32 %v1246_v12, %v3342_v2  ;;  %v3412_v2 = vld [vmem:[%s3637_s6 + $0x38] sm:$0xff] }
 0x3a6   :  { %v1266_v21 = vmul.f32 %v2261_v23, %v1265_v49 }
 0x3a7   :  { %v1251_v49 = vmul.f32 %v2263_v53, %v1250_v20  ;;  %v3758_v20 = vld [vmem:[#allocation26_spill] sm:$0xff] }
 0x3a8   :  { %v1267_v14 = vadd.f32 %v2261_v23, %v1266_v21  ;;  %v1231_v21 = vsel %vm1228_vm11, %v1230_v26, %v1226_v6 }
 0x3a9   :  { %v1252_v57 = vadd.f32 %v2263_v53, %v1251_v49 }
 0x3aa   :  { %v1271_v9 = vsel %vm1270_vm7, %v2261_v23, %v1267_v14  ;;  %v1259_v23 = vand.u32 2147483648, %v1216_v37  ;;  %v3421_v37 = vld [vmem:[%s3637_s6 + $0x30] sm:$0xff]  ;;  %v3439_v14 = vld [vmem:[%s3637_s6 + $0x20] sm:$0xff] }
 0x3ab   :  { %v1276_v28 = vsel %vm1273_vm8, %v1275_v31, %v1271_v9  ;;  %v1256_v63 = vsel %vm1255_vm14, %v2263_v53, %v1252_v57  ;;  %v3430_v53 = vld [vmem:[%s3637_s6 + $0x28] sm:$0xff]  ;;  %v3457_v31 = vld [vmem:[%s3637_s6 + $0x10] sm:$0xff] }
 0x3ac   :  { %v1278_v48 = vmul.f32 2.0, %v1276_v28  ;;  %v1260_v47 = vor.u32 1.1754944e-38, %v1259_v23 }
 0x3ae   :  { %v2122_v11 = vadd.f32 -1.0, %v1278_v48  ;;  %v1261_v59 = vsel %vm1258_vm15, %v1260_v47, %v1256_v63  ;;  %v3759_v48 = vld [vmem:[#allocation25_spill] sm:$0xff] }
 0x3b0   :  { %v1281_v16 = vmul.f32 %v2122_v11, %v1231_v21 }
 0x3b2   :  { %v3404_v19 = vadd.f32 %v1281_v16, %v1280_v17 }
 0x3b4   :  { %2264 = vtanh.f32 %v3404_v19 }
 0x3ba   :  { %v2265_v30 = vpop.eup %2264 }
 0x3bb   :  { %v1284_v35 = vmul.f32 %v2265_v30, %v1261_v59 }
 0x3bd   :  { %v1285_v38 = vpack.c.bf16 %v1284_v35, %v1284_v35 }
 0x3bf   :  { %1294 = vmatmul.bf16.vlgmr.msrb.gmra.mxu3 %v1285_v38  ;;  %1309 = vmatmul.bf16.vlgmr.msra.gmra.mxu0 %v1285_v38 }
 0x3c0   :  { %1322 = vmatmul.bf16.vlgmr.msra.gmra.mxu1 %v1285_v38  ;;  %1335 = vmatmul.bf16.vlgmr.msra.gmra.mxu2 %v1285_v38 }
 0x3c1   :  { %1482 = vmatpush.bf16.msrb.mxu3 %v2681_v50  ;;  %1495 = vmatpush.bf16.msra.mxu0 %v2643_v36 }
 0x3c2   :  { %1596 = vmatpush.bf16.msra.mxu1 %v3412_v2  ;;  %1611 = vmatpush.bf16.msra.mxu2 %v2666_v44 }
 0x3c5   :  { %1483 = vmatpush.bf16.msrb.mxu3 %v2722_v4  ;;  %1496 = vmatpush.bf16.msra.mxu0 %v2655_v40 }
 0x3c6   :  { %1597 = vmatpush.bf16.msra.mxu1 %v3421_v37  ;;  %1612 = vmatpush.bf16.msra.mxu2 %v2704_v60 }
 0x3c9   :  { %1484 = vmatpush.bf16.msrb.mxu3 %v2765_v24  ;;  %1497 = vmatpush.bf16.msra.mxu0 %v2692_v54 }
 0x3ca   :  { %1598 = vmatpush.bf16.msra.mxu1 %v3430_v53  ;;  %1613 = vmatpush.bf16.msra.mxu2 %v2745_v13 }
 0x3cd   :  { %1485 = vmatpush.bf16.msrb.mxu3 %v2802_v39  ;;  %1498 = vmatpush.bf16.msra.mxu0 %v2733_v8 }
 0x3ce   :  { %1599 = vmatpush.bf16.msra.mxu1 %v3439_v14  ;;  %1614 = vmatpush.bf16.msra.mxu2 %v2790_v34 }
 0x3cf   :  { %1348 = vmatmul.bf16.vlgmr.msra.gmra.mxu3 %v1285_v38  ;;  %v3761_v38 = vld [vmem:[#allocation28_spill] sm:$0xff] }
 0x3d1   :  { %1486 = vmatpush.bf16.msrb.mxu3 %v2845_v5  ;;  %1499 = vmatpush.bf16.msra.mxu0 %v2778_v29 }
 0x3d2   :  { %1600 = vmatpush.bf16.msra.mxu1 %v3448_v52  ;;  %1615 = vmatpush.bf16.msra.mxu2 %v2833_v62 }
 0x3d5   :  { %1487 = vmatpush.bf16.msrb.mxu3 %v2887_v27  ;;  %1500 = vmatpush.bf16.msra.mxu0 %v2821_v55 }
 0x3d6   :  { %1601 = vmatpush.bf16.msra.mxu1 %v3457_v31  ;;  %1616 = vmatpush.bf16.msra.mxu2 %v2876_v22 }
 0x3d9   :  { %1488 = vmatpush.bf16.msrb.mxu3 %v2926_v56  ;;  %1501 = vmatpush.bf16.msra.mxu0 %v2864_v18 }
 0x3da   :  { %1602 = vmatpush.bf16.msra.mxu1 %v3466_v10  ;;  %1617 = vmatpush.bf16.msra.mxu2 %v2907_v42 }
 0x3dd   :  { %1489 = vmatpush.bf16.msrb.mxu3 %v2960_v15  ;;  %1502 = vmatpush.bf16.msra.mxu0 %v2931_v58 }
 0x3de   :  { %1603 = vmatpush.bf16.msra.mxu1 %v3476_v1  ;;  %1618 = vmatpush.bf16.msra.mxu2 %v2948_v7 }
 0x3e1   :  { %1624 = vmatpush.bf16.msra.mxu3 %v2668_v45 }
 0x3e5   :  { %1625 = vmatpush.bf16.msra.mxu3 %v3740_v61 }
 0x3e9   :  { %1626 = vmatpush.bf16.msra.mxu3 %v3741_v41 }
 0x3ed   :  { %1627 = vmatpush.bf16.msra.mxu3 %v3742_v43 }
 0x3f1   :  { %1628 = vmatpush.bf16.msra.mxu3 %v3743_v46 }
 0x3f5   :  { %1629 = vmatpush.bf16.msra.mxu3 %v3744_v51 }
 0x3f9   :  { %1630 = vmatpush.bf16.msra.mxu3 %v3745_v3 }
 0x3fd   :  { %1631 = vmatpush.bf16.msra.mxu3 %v3746_v0 }
 0x43c   :  { %v1310_v9 = vpop.f32.mrf.mxu0 }
 0x43d   :  { %v1323_v25 = vpop.f32.mrf.mxu1  ;;  %v1353_v12 = vadd.f32 %v1310_v9, %v3759_v48 }
 0x43e   :  { %v1354_v28 = vadd.f32 %v1323_v25, %v3758_v20 }
 0x43f   :  { %v2124_v16 = vmul.f32 -1.442695, %v1353_v12 }
 0x440   :  { %v2125_v21 = vmul.f32 -1.442695, %v1354_v28 }
 0x442   :  { %v1295_v6 = vpop.f32.mrf.mxu3  ;;  %2266 = vpow2.f32 %v2125_v21 }
 0x443   :  { %v1296_v26 = vadd.f32 %v3751_v32, %v1295_v6  ;;  %v1336_v11 = vpop.f32.mrf.mxu2  ;;  %2268 = vpow2.f32 %v2124_v16 }
 0x444   :  { %v1312_v49 = vpop.f32.mrf.mxu0  ;;  %v1355_v63 = vadd.f32 %v1336_v11, %v3760_v33 }
 0x445   :  { %2123 = vst [vmem:[%s3638_s8 + $0x18] sm:$0xff] %v1296_v26  ;;  %v1325_v17 = vpop.f32.mrf.mxu1 }
 0x446   :  { %v2126_v59 = vmul.f32 -1.442695, %v1355_v63 }
 0x448   :  { %v2267_v47 = vpop.eup %2266  ;;  %2270 = vpow2.f32 %v2126_v59 }
 0x449   :  { %v2269_v30 = vpop.eup %2268  ;;  %v1370_v35 = vadd.f32 1.0, %v2267_v47 }
 0x44a   :  { %v1297_v57 = vpop.f32.mrf.mxu3  ;;  %v1369_v25 = vadd.f32 1.0, %v2269_v30 }
 0x44b   :  { %v1338_v23 = vpop.f32.mrf.mxu2  ;;  %2272 = vrcp.f32 %v1370_v35  ;;  %vm1393_vm2 = vweird.f32 %v1370_v35 }
 0x44c   :  { %vm1378_vm6 = vweird.f32 %v1369_v25 }
 0x44e   :  { %v2271_v6 = vpop.eup %2270 }
 0x44f   :  { %v1371_v21 = vadd.f32 1.0, %v2271_v6  ;;  %v1399_v6 = vand.u32 2147483648, %v1370_v35 }
 0x451   :  { %v2273_v48 = vpop.eup %2272  ;;  %vm1408_vm13 = vweird.f32 %v1371_v21 }
 0x452   :  { %v1349_v32 = vpop.f32.mrf.mxu3  ;;  %v1389_v11 = vmul.f32 %v2273_v48, %v1370_v35  ;;  %vm1394_vm0 = vweird.f32 %v2273_v48 }
 0x453   :  { %v1356_v9 = vadd.f32 %v1349_v32, %v3761_v38  ;;  %vm3495_vm4 = vmor %vm1393_vm2, %vm1394_vm0 }
 0x454   :  { %v1390_v16 = vsub.f32 1.0, %v1389_v11 }
 0x455   :  { %v2127_v20 = vmul.f32 -1.442695, %v1356_v9 }
 0x456   :  { %v1391_v33 = vmul.f32 %v2273_v48, %v1390_v16  ;;  %v1384_v16 = vand.u32 2147483648, %v1369_v25 }
 0x457   :  { %2274 = vpow2.f32 %v2127_v20 }
 0x458   :  { %2276 = vrcp.f32 %v1369_v25  ;;  %v1392_v38 = vadd.f32 %v2273_v48, %v1391_v33  ;;  %v1382_v33 = vand.u32 2147483647, %v1369_v25  ;;  %v1385_v43 = vor.u32 1.1754944e-38, %v1384_v16 }
 0x45a   :  { %v1351_v28 = vpop.f32.mrf.mxu3  ;;  %vm1383_vm11 = vcmp.eq.f32.partialorder %v1382_v33, 8.507059e+37  ;;  %v3773_v33 = vld [vmem:[#allocation31_spill] sm:$0xff] }
 0x45b   :  { %v1397_v28 = vand.u32 2147483647, %v1370_v35  ;;  %v1400_v35 = vor.u32 1.1754944e-38, %v1399_v6  ;;  %v3772_v6 = vld [vmem:[#allocation30_spill] sm:$0xff] }
 0x45d   :  { %v2275_v12 = vpop.eup %2274  ;;  %vm1398_vm10 = vcmp.eq.f32.partialorder %v1397_v28, 8.507059e+37 }
 0x45e   :  { %v2277_v26 = vpop.eup %2276  ;;  %v1372_v49 = vadd.f32 1.0, %v2275_v12 }
 0x45f   :  { %v1374_v17 = vmul.f32 %v2277_v26, %v1369_v25  ;;  %vm1379_vm3 = vweird.f32 %v2277_v26 }
 0x460   :  { %2278 = vrcp.f32 %v1372_v49  ;;  %v1429_v32 = vand.u32 2147483648, %v1372_v49  ;;  %v1427_v20 = vand.u32 2147483647, %v1372_v49  ;;  %vm1423_vm5 = vweird.f32 %v1372_v49  ;;  %vm1380_vm9 = vmor %vm1378_vm6, %vm1379_vm3 }
 0x461   :  { %2280 = vrcp.f32 %v1371_v21  ;;  %v1375_v57 = vsub.f32 1.0, %v1374_v17 }
 0x462   :  { %vm1428_vm8 = vcmp.eq.f32.partialorder %v1427_v20, 8.507059e+37 }
 0x463   :  { %v1376_v30 = vmul.f32 %v2277_v26, %v1375_v57  ;;  %v1430_v57 = vor.u32 1.1754944e-38, %v1429_v32 }
 0x465   :  { %v1377_v0 = vadd.f32 %v2277_v26, %v1376_v30 }
 0x466   :  { %v2279_v23 = vpop.eup %2278 }
 0x467   :  { %v1419_v63 = vmul.f32 %v2279_v23, %v1372_v49  ;;  %v2281_v47 = vpop.eup %2280  ;;  %vm1424_vm1 = vweird.f32 %v2279_v23  ;;  %v1381_v51 = vsel %vm1380_vm9, %v2277_v26, %v1377_v0  ;;  %v1412_v0 = vand.u32 2147483647, %v1371_v21 }
 0x468   :  { %v1404_v12 = vmul.f32 %v2281_v47, %v1371_v21  ;;  %vm1425_vm7 = vmor %vm1423_vm5, %vm1424_vm1  ;;  %v1386_v41 = vsel %vm1383_vm11, %v1385_v43, %v1381_v51  ;;  %vm1409_vm12 = vweird.f32 %v2281_v47 }
 0x469   :  { %v1420_v59 = vsub.f32 1.0, %v1419_v63  ;;  %v1396_v63 = vsel %vm3495_vm4, %v2273_v48, %v1392_v38  ;;  %vm1410_vm14 = vmor %vm1408_vm13, %vm1409_vm12  ;;  %vm1413_vm15 = vcmp.eq.f32.partialorder %v1412_v0, 8.507059e+37 }
 0x46a   :  { %v1405_v30 = vsub.f32 1.0, %v1404_v12 }
 0x46b   :  { %v1421_v9 = vmul.f32 %v2279_v23, %v1420_v59 }
 0x46c   :  { %v1406_v61 = vmul.f32 %v2281_v47, %v1405_v30 }
 0x46d   :  { %v1422_v17 = vadd.f32 %v2279_v23, %v1421_v9  ;;  %v1401_v9 = vsel %vm1398_vm10, %v1400_v35, %v1396_v63 }
 0x46e   :  { %v1435_v25 = vmul.f32 %v1401_v9, %v3404_v19  ;;  %v1407_v48 = vadd.f32 %v2281_v47, %v1406_v61  ;;  %v3771_v19 = vld [vmem:[#allocation29_spill] sm:$0xff] }
 0x46f   :  { %v1426_v59 = vsel %vm1425_vm7, %v2279_v23, %v1422_v17  ;;  %v1414_v23 = vand.u32 2147483648, %v1371_v21 }
 0x470   :  { %v1431_v3 = vsel %vm1428_vm8, %v1430_v57, %v1426_v59 }
 0x471   :  { %v1433_v46 = vmul.f32 2.0, %v1431_v3  ;;  %v1411_v3 = vsel %vm1410_vm14, %v2281_v47, %v1407_v48  ;;  %v1415_v26 = vor.u32 1.1754944e-38, %v1414_v23 }
 0x473   :  { %v2128_v49 = vadd.f32 -1.0, %v1433_v46  ;;  %v1416_v46 = vsel %vm1413_vm15, %v1415_v26, %v1411_v3 }
 0x475   :  { %v1436_v32 = vmul.f32 %v2128_v49, %v1386_v41 }
 0x477   :  { %v3502_v11 = vadd.f32 %v1436_v32, %v1435_v25  ;;  %v3774_v25 = vld [vmem:[#allocation32_spill] sm:$0xff] }
 0x479   :  { %2282 = vtanh.f32 %v3502_v11 }
 0x47f   :  { %v2283_v38 = vpop.eup %2282 }
 0x480   :  { %v1439_v43 = vmul.f32 %v2283_v38, %v1416_v46 }
 0x482   :  { %v1440_v51 = vpack.c.bf16 %v1439_v43, %v1439_v43 }
 0x484   :  { %1449 = vmatmul.bf16.vlgmr.msrb.gmra.mxu0 %v1440_v51  ;;  %1464 = vmatmul.bf16.vlgmr.msrb.gmra.mxu1 %v1440_v51 }
 0x485   :  { %1477 = vmatmul.bf16.vlgmr.msrb.gmra.mxu2 %v1440_v51  ;;  %1490 = vmatmul.bf16.vlgmr.msrb.gmra.mxu3 %v1440_v51 }
 0x486   :  { %1637 = vmatpush.bf16.msrb.mxu0 %v2681_v50  ;;  %1650 = vmatpush.bf16.msrb.mxu1 %v2643_v36 }
 0x487   :  { %1751 = vmatpush.bf16.msrb.mxu2 %v3412_v2  ;;  %1766 = vmatpush.bf16.msrb.mxu3 %v2666_v44  ;;  %v3764_v44 = vld [vmem:[#allocation2_spill] sm:$0xff] }
 0x48a   :  { %1638 = vmatpush.bf16.msrb.mxu0 %v2722_v4  ;;  %1651 = vmatpush.bf16.msrb.mxu1 %v2655_v40 }
 0x48b   :  { %1752 = vmatpush.bf16.msrb.mxu2 %v3421_v37  ;;  %1767 = vmatpush.bf16.msrb.mxu3 %v2704_v60  ;;  %v3765_v60 = vld [vmem:[#allocation3_spill] sm:$0xff] }
 0x48e   :  { %1639 = vmatpush.bf16.msrb.mxu0 %v2765_v24  ;;  %1652 = vmatpush.bf16.msrb.mxu1 %v2692_v54 }
 0x48f   :  { %1753 = vmatpush.bf16.msrb.mxu2 %v3430_v53  ;;  %1768 = vmatpush.bf16.msrb.mxu3 %v2745_v13  ;;  %v3766_v13 = vld [vmem:[#allocation4_spill] sm:$0xff] }
 0x492   :  { %1640 = vmatpush.bf16.msrb.mxu0 %v2802_v39  ;;  %1653 = vmatpush.bf16.msrb.mxu1 %v2733_v8 }
 0x493   :  { %1754 = vmatpush.bf16.msrb.mxu2 %v3439_v14  ;;  %1769 = vmatpush.bf16.msrb.mxu3 %v2790_v34  ;;  %v3767_v34 = vld [vmem:[#allocation5_spill] sm:$0xff] }
 0x494   :  { %1503 = vmatmul.bf16.vlgmr.msra.gmra.mxu0 %v1440_v51 }
 0x496   :  { %1641 = vmatpush.bf16.msrb.mxu0 %v2845_v5  ;;  %1654 = vmatpush.bf16.msrb.mxu1 %v2778_v29 }
 0x497   :  { %1755 = vmatpush.bf16.msrb.mxu2 %v3448_v52  ;;  %1770 = vmatpush.bf16.msrb.mxu3 %v2833_v62  ;;  %v3768_v62 = vld [vmem:[#allocation6_spill] sm:$0xff] }
 0x49a   :  { %1642 = vmatpush.bf16.msrb.mxu0 %v2887_v27  ;;  %1655 = vmatpush.bf16.msrb.mxu1 %v2821_v55 }
 0x49b   :  { %1756 = vmatpush.bf16.msrb.mxu2 %v3457_v31  ;;  %1771 = vmatpush.bf16.msrb.mxu3 %v2876_v22  ;;  %v3769_v22 = vld [vmem:[#allocation7_spill] sm:$0xff] }
 0x49e   :  { %1643 = vmatpush.bf16.msrb.mxu0 %v2926_v56  ;;  %1656 = vmatpush.bf16.msrb.mxu1 %v2864_v18 }
 0x49f   :  { %1757 = vmatpush.bf16.msrb.mxu2 %v3466_v10  ;;  %1772 = vmatpush.bf16.msrb.mxu3 %v2907_v42  ;;  %v3770_v42 = vld [vmem:[#allocation8_spill] sm:$0xff] }
 0x4a2   :  { %1644 = vmatpush.bf16.msrb.mxu0 %v2960_v15  ;;  %1657 = vmatpush.bf16.msrb.mxu1 %v2931_v58 }
 0x4a3   :  { %1758 = vmatpush.bf16.msrb.mxu2 %v3476_v1  ;;  %1773 = vmatpush.bf16.msrb.mxu3 %v2948_v7  ;;  %v3548_v7 = vld [vmem:[%s3636_s7] ss:$0 sm:$0xff] }
 0x4a6   :  { %1779 = vmatpush.bf16.msra.mxu0 %v2668_v45 }
 0x4aa   :  { %1780 = vmatpush.bf16.msra.mxu0 %v3764_v44 }
 0x4ae   :  { %1781 = vmatpush.bf16.msra.mxu0 %v3765_v60 }
 0x4b2   :  { %1782 = vmatpush.bf16.msra.mxu0 %v3766_v13 }
 0x4b6   :  { %1783 = vmatpush.bf16.msra.mxu0 %v3767_v34 }
 0x4ba   :  { %1784 = vmatpush.bf16.msra.mxu0 %v3768_v62 }
 0x4be   :  { %1785 = vmatpush.bf16.msra.mxu0 %v3769_v22 }
 0x4c2   :  { %1786 = vmatpush.bf16.msra.mxu0 %v3770_v42 }
 0x501   :  { %v1450_v61 = vpop.f32.mrf.mxu0  ;;  %v1465_v45 = vpop.f32.mrf.mxu1 }
 0x502   :  { %v1451_v41 = vadd.f32 %v3548_v7, %v1450_v61  ;;  %v1508_v21 = vadd.f32 %v1465_v45, %v3771_v19 }
 0x504   :  { %2129 = vst [vmem:[%s3638_s8 + $0x20] sm:$0xff] %v1451_v41  ;;  %v2130_v47 = vmul.f32 -1.442695, %v1508_v21 }
 0x506   :  { %2284 = vpow2.f32 %v2130_v47 }
 0x508   :  { %v1478_v20 = vpop.f32.mrf.mxu2  ;;  %v1491_v28 = vpop.f32.mrf.mxu3 }
 0x509   :  { %v1509_v12 = vadd.f32 %v1478_v20, %v3772_v6  ;;  %v1452_v17 = vpop.f32.mrf.mxu0  ;;  %v1467_v16 = vpop.f32.mrf.mxu1  ;;  %v1510_v63 = vadd.f32 %v1491_v28, %v3773_v33 }
 0x50b   :  { %v2131_v57 = vmul.f32 -1.442695, %v1509_v12  ;;  %v2132_v49 = vmul.f32 -1.442695, %v1510_v63 }
 0x50c   :  { %v2285_v9 = vpop.eup %2284 }
 0x50d   :  { %2286 = vpow2.f32 %v2131_v57  ;;  %v1524_v3 = vadd.f32 1.0, %v2285_v9 }
 0x50e   :  { %2288 = vpow2.f32 %v2132_v49 }
 0x50f   :  { %vm1533_vm6 = vweird.f32 %v1524_v3 }
 0x510   :  { %v1480_v59 = vpop.f32.mrf.mxu2  ;;  %v1493_v35 = vpop.f32.mrf.mxu3 }
 0x511   :  { %v1504_v30 = vpop.f32.mrf.mxu0  ;;  %v1539_v59 = vand.u32 2147483648, %v1524_v3 }
 0x512   :  { %v1511_v32 = vadd.f32 %v1504_v30, %v3774_v25  ;;  %v1537_v30 = vand.u32 2147483647, %v1524_v3 }
 0x513   :  { %v2287_v48 = vpop.eup %2286 }
 0x514   :  { %v1525_v23 = vadd.f32 1.0, %v2287_v48  ;;  %v2133_v0 = vmul.f32 -1.442695, %v1511_v32  ;;  %v2289_v38 = vpop.eup %2288  ;;  %vm1538_vm11 = vcmp.eq.f32.partialorder %v1537_v30, 8.507059e+37 }
 0x515   :  { %v1526_v13 = vadd.f32 1.0, %v2289_v38 }
 0x516   :  { %2290 = vrcp.f32 %v1525_v23  ;;  %vm1548_vm3 = vweird.f32 %v1525_v23  ;;  %v1554_v12 = vand.u32 2147483648, %v1525_v23  ;;  %v1552_v33 = vand.u32 2147483647, %v1525_v23 }
 0x517   :  { %2292 = vpow2.f32 %v2133_v0  ;;  %vm1563_vm13 = vweird.f32 %v1526_v13 }
 0x518   :  { %2294 = vrcp.f32 %v1524_v3  ;;  %v1555_v25 = vor.u32 1.1754944e-38, %v1554_v12  ;;  %vm1553_vm10 = vcmp.eq.f32.partialorder %v1552_v33, 8.507059e+37 }
 0x519   :  { %v1506_v26 = vpop.f32.mrf.mxu0 }
 0x51a   :  { %v1540_v26 = vor.u32 1.1754944e-38, %v1539_v59 }
 0x51c   :  { %v2291_v46 = vpop.eup %2290 }
 0x51d   :  { %v2293_v43 = vpop.eup %2292  ;;  %v1544_v60 = vmul.f32 %v2291_v46, %v1525_v23  ;;  %vm1549_vm0 = vweird.f32 %v2291_v46 }
 0x51e   :  { %v2295_v51 = vpop.eup %2294  ;;  %v1527_v44 = vadd.f32 1.0, %v2293_v43  ;;  %vm3558_vm4 = vmor %vm1548_vm3, %vm1549_vm0 }
 0x51f   :  { %v1529_v34 = vmul.f32 %v2295_v51, %v1524_v3  ;;  %v1545_v62 = vsub.f32 1.0, %v1544_v60  ;;  %vm1534_vm2 = vweird.f32 %v2295_v51 }
 0x520   :  { %2296 = vrcp.f32 %v1527_v44  ;;  %v1584_v47 = vand.u32 2147483648, %v1527_v44  ;;  %v1582_v6 = vand.u32 2147483647, %v1527_v44  ;;  %vm1578_vm5 = vweird.f32 %v1527_v44  ;;  %vm1535_vm9 = vmor %vm1533_vm6, %vm1534_vm2 }
 0x521   :  { %2298 = vrcp.f32 %v1526_v13  ;;  %v1530_v22 = vsub.f32 1.0, %v1529_v34  ;;  %v1546_v61 = vmul.f32 %v2291_v46, %v1545_v62 }
 0x522   :  { %v1585_v35 = vor.u32 1.1754944e-38, %v1584_v47  ;;  %vm1583_vm8 = vcmp.eq.f32.partialorder %v1582_v6, 8.507059e+37 }
 0x523   :  { %v1531_v19 = vmul.f32 %v2295_v51, %v1530_v22  ;;  %v1547_v20 = vadd.f32 %v2291_v46, %v1546_v61  ;;  %v1569_v22 = vand.u32 2147483648, %v1526_v13 }
 0x525   :  { %v1532_v16 = vadd.f32 %v2295_v51, %v1531_v19  ;;  %v1551_v9 = vsel %vm3558_vm4, %v2291_v46, %v1547_v20  ;;  %v1570_v61 = vor.u32 1.1754944e-38, %v1569_v22 }
 0x526   :  { %v2297_v42 = vpop.eup %2296  ;;  %v1556_v38 = vsel %vm1553_vm10, %v1555_v25, %v1551_v9 }
 0x527   :  { %v1574_v45 = vmul.f32 %v2297_v42, %v1527_v44  ;;  %v2299_v41 = vpop.eup %2298  ;;  %vm1579_vm1 = vweird.f32 %v2297_v42  ;;  %v1536_v0 = vsel %vm1535_vm9, %v2295_v51, %v1532_v16  ;;  %v1590_v3 = vmul.f32 %v1556_v38, %v3502_v11 }
 0x528   :  { %v1559_v17 = vmul.f32 %v2299_v41, %v1526_v13  ;;  %vm1580_vm7 = vmor %vm1578_vm5, %vm1579_vm1  ;;  %v1541_v44 = vsel %vm1538_vm11, %v1540_v26, %v1536_v0  ;;  %vm1564_vm12 = vweird.f32 %v2299_v41  ;;  %v1567_v51 = vand.u32 2147483647, %v1526_v13 }
 0x529   :  { %v1575_v21 = vsub.f32 1.0, %v1574_v45  ;;  %vm1565_vm14 = vmor %vm1563_vm13, %vm1564_vm12 }
 0x52a   :  { %v1560_v32 = vsub.f32 1.0, %v1559_v17  ;;  %vm1568_vm15 = vcmp.eq.f32.partialorder %v1567_v51, 8.507059e+37 }
 0x52b   :  { %v1576_v28 = vmul.f32 %v2297_v42, %v1575_v21 }
 0x52c   :  { %v1561_v60 = vmul.f32 %v2299_v41, %v1560_v32 }
 0x52d   :  { %v1577_v63 = vadd.f32 %v2297_v42, %v1576_v28 }
 0x52e   :  { %v1562_v62 = vadd.f32 %v2299_v41, %v1561_v60 }
 0x52f   :  { %v1581_v49 = vsel %vm1580_vm7, %v2297_v42, %v1577_v63 }
 0x530   :  { %v1586_v48 = vsel %vm1583_vm8, %v1585_v35, %v1581_v49  ;;  %v1566_v42 = vsel %vm1565_vm14, %v2299_v41, %v1562_v62 }
 0x531   :  { %v1588_v23 = vmul.f32 2.0, %v1586_v48  ;;  %v1571_v19 = vsel %vm1568_vm15, %v1570_v61, %v1566_v42 }
 0x533   :  { %v2134_v43 = vadd.f32 -1.0, %v1588_v23 }
 0x535   :  { %v1591_v34 = vmul.f32 %v2134_v43, %v1541_v44 }
 0x537   :  { %v3566_v46 = vadd.f32 %v1591_v34, %v1590_v3 }
 0x539   :  { %2300 = vtanh.f32 %v3566_v46 }
 0x53f   :  { %v2301_v45 = vpop.eup %2300 }
 0x540   :  { %v1594_v21 = vmul.f32 %v2301_v45, %v1571_v19 }
 0x542   :  { %v1595_v47 = vpack.c.bf16 %v1594_v21, %v1594_v21 }
 0x544   :  { %1604 = vmatmul.bf16.vlgmr.msra.gmra.mxu1 %v1595_v47  ;;  %1619 = vmatmul.bf16.vlgmr.msra.gmra.mxu2 %v1595_v47 }
 0x545   :  { %1632 = vmatmul.bf16.vlgmr.msra.gmra.mxu3 %v1595_v47  ;;  %1645 = vmatmul.bf16.vlgmr.msrb.gmra.mxu0 %v1595_v47 }
 0x546   :  { %1792 = vmatpush.bf16.msra.mxu1 %v2681_v50  ;;  %1805 = vmatpush.bf16.msra.mxu2 %v2643_v36 }
 0x547   :  { %1906 = vmatpush.bf16.msra.mxu3 %v3412_v2 }
 0x54a   :  { %1793 = vmatpush.bf16.msra.mxu1 %v2722_v4  ;;  %1806 = vmatpush.bf16.msra.mxu2 %v2655_v40  ;;  %v3777_v4 = vld [vmem:[#allocation33_spill] sm:$0xff] }
 0x54b   :  { %1907 = vmatpush.bf16.msra.mxu3 %v3421_v37 }
 0x54e   :  { %1794 = vmatpush.bf16.msra.mxu1 %v2765_v24  ;;  %1807 = vmatpush.bf16.msra.mxu2 %v2692_v54 }
 0x54f   :  { %1908 = vmatpush.bf16.msra.mxu3 %v3430_v53 }
 0x552   :  { %1795 = vmatpush.bf16.msra.mxu1 %v2802_v39  ;;  %1808 = vmatpush.bf16.msra.mxu2 %v2733_v8 }
 0x553   :  { %1909 = vmatpush.bf16.msra.mxu3 %v3439_v14 }
 0x554   :  { %1658 = vmatmul.bf16.vlgmr.msrb.gmra.mxu1 %v1595_v47 }
 0x556   :  { %1796 = vmatpush.bf16.msra.mxu1 %v2845_v5  ;;  %1809 = vmatpush.bf16.msra.mxu2 %v2778_v29  ;;  %v3778_v29 = vld [vmem:[#allocation34_spill] sm:$0xff] }
 0x557   :  { %1910 = vmatpush.bf16.msra.mxu3 %v3448_v52  ;;  %v3780_v52 = vld [vmem:[#allocation36_spill] sm:$0xff] }
 0x55a   :  { %1797 = vmatpush.bf16.msra.mxu1 %v2887_v27  ;;  %1810 = vmatpush.bf16.msra.mxu2 %v2821_v55 }
 0x55b   :  { %1911 = vmatpush.bf16.msra.mxu3 %v3457_v31 }
 0x55e   :  { %1798 = vmatpush.bf16.msra.mxu1 %v2926_v56  ;;  %1811 = vmatpush.bf16.msra.mxu2 %v2864_v18  ;;  %v3779_v56 = vld [vmem:[#allocation35_spill] sm:$0xff] }
 0x55f   :  { %1912 = vmatpush.bf16.msra.mxu3 %v3466_v10 }
 0x562   :  { %1799 = vmatpush.bf16.msra.mxu1 %v2960_v15  ;;  %1812 = vmatpush.bf16.msra.mxu2 %v2931_v58 }
 0x563   :  { %1913 = vmatpush.bf16.msra.mxu3 %v3476_v1 }
 0x5c1   :  { %v1605_v36 = vpop.f32.mrf.mxu1 }
 0x5c2   :  { %v1606_v40 = vadd.f32 %v3548_v7, %v1605_v36  ;;  %v1646_v50 = vpop.f32.mrf.mxu0 }
 0x5c3   :  { %v1665_v58 = vadd.f32 %v1646_v50, %v3779_v56 }
 0x5c4   :  { %2135 = vst [vmem:[%s3638_s8 + $0x28] sm:$0xff] %v1606_v40 }
 0x5c5   :  { %v2138_v14 = vmul.f32 -1.442695, %v1665_v58 }
 0x5c7   :  { %v1620_v54 = vpop.f32.mrf.mxu2 }
 0x5c8   :  { %v1663_v8 = vadd.f32 %v1620_v54, %v3777_v4  ;;  %v1633_v24 = vpop.f32.mrf.mxu3 }
 0x5c9   :  { %v1664_v39 = vadd.f32 %v1633_v24, %v3778_v29  ;;  %v1607_v55 = vpop.f32.mrf.mxu1 }
 0x5ca   :  { %v2136_v5 = vmul.f32 -1.442695, %v1663_v8  ;;  %v1648_v18 = vpop.f32.mrf.mxu0 }
 0x5cb   :  { %v2137_v27 = vmul.f32 -1.442695, %v1664_v39 }
 0x5cc   :  { %2302 = vpow2.f32 %v2136_v5 }
 0x5cd   :  { %2304 = vpow2.f32 %v2137_v27 }
 0x5ce   :  { %2306 = vpow2.f32 %v2138_v14  ;;  %v3783_v14 = vld [vmem:[#allocation38_spill] sm:$0xff] }
 0x5cf   :  { %v1622_v15 = vpop.f32.mrf.mxu2 }
 0x5d0   :  { %v1635_v2 = vpop.f32.mrf.mxu3 }
 0x5d1   :  { %v1659_v37 = vpop.f32.mrf.mxu1 }
 0x5d2   :  { %v2303_v53 = vpop.eup %2302  ;;  %v1666_v31 = vadd.f32 %v1659_v37, %v3780_v52 }
 0x5d3   :  { %v2305_v10 = vpop.eup %2304  ;;  %v1679_v13 = vadd.f32 1.0, %v2303_v53 }
 0x5d4   :  { %v1680_v1 = vadd.f32 1.0, %v2305_v10  ;;  %v2139_v11 = vmul.f32 -1.442695, %v1666_v31  ;;  %v2307_v20 = vpop.eup %2306 }
 0x5d5   :  { %v1681_v16 = vadd.f32 1.0, %v2307_v20  ;;  %vm1688_vm6 = vweird.f32 %v1679_v13  ;;  %v1694_v62 = vand.u32 2147483648, %v1679_v13  ;;  %v1692_v51 = vand.u32 2147483647, %v1679_v13 }
 0x5d6   :  { %2308 = vrcp.f32 %v1680_v1  ;;  %vm1703_vm2 = vweird.f32 %v1680_v1  ;;  %v1707_v43 = vand.u32 2147483647, %v1680_v1  ;;  %v1709_v44 = vand.u32 2147483648, %v1680_v1 }
 0x5d7   :  { %2310 = vpow2.f32 %v2139_v11  ;;  %v1695_v40 = vor.u32 1.1754944e-38, %v1694_v62  ;;  %vm1693_vm11 = vcmp.eq.f32.partialorder %v1692_v51, 8.507059e+37  ;;  %v1724_v5 = vand.u32 2147483648, %v1681_v16  ;;  %v3784_v11 = vld [vmem:[#allocation37_spill] sm:$0xff] }
 0x5d8   :  { %2312 = vrcp.f32 %v1679_v13  ;;  %v1710_v19 = vor.u32 1.1754944e-38, %v1709_v44  ;;  %vm1708_vm10 = vcmp.eq.f32.partialorder %v1707_v43, 8.507059e+37  ;;  %vm1718_vm13 = vweird.f32 %v1681_v16 }
 0x5d9   :  { %v1661_v41 = vpop.f32.mrf.mxu1  ;;  %v1722_v18 = vand.u32 2147483647, %v1681_v16  ;;  %v1725_v56 = vor.u32 1.1754944e-38, %v1724_v5 }
 0x5db   :  { %vm1723_vm15 = vcmp.eq.f32.partialorder %v1722_v18, 8.507059e+37 }
 0x5dc   :  { %v2309_v28 = vpop.eup %2308 }
 0x5dd   :  { %v2311_v6 = vpop.eup %2310  ;;  %v1699_v57 = vmul.f32 %v2309_v28, %v1680_v1  ;;  %vm1704_vm0 = vweird.f32 %v2309_v28 }
 0x5de   :  { %v2313_v12 = vpop.eup %2312  ;;  %v1682_v17 = vadd.f32 1.0, %v2311_v6  ;;  %vm3601_vm4 = vmor %vm1703_vm2, %vm1704_vm0 }
 0x5df   :  { %v1684_v33 = vmul.f32 %v2313_v12, %v1679_v13  ;;  %v1700_v63 = vsub.f32 1.0, %v1699_v57  ;;  %vm1689_vm3 = vweird.f32 %v2313_v12 }
 0x5e0   :  { %2314 = vrcp.f32 %v1682_v17  ;;  %v1739_v48 = vand.u32 2147483648, %v1682_v17  ;;  %v1737_v26 = vand.u32 2147483647, %v1682_v17  ;;  %vm1733_vm5 = vweird.f32 %v1682_v17  ;;  %vm1690_vm9 = vmor %vm1688_vm6, %vm1689_vm3 }
 0x5e1   :  { %2316 = vrcp.f32 %v1681_v16  ;;  %v1685_v59 = vsub.f32 1.0, %v1684_v33  ;;  %v1701_v30 = vmul.f32 %v2309_v28, %v1700_v63 }
 0x5e2   :  { %v1740_v22 = vor.u32 1.1754944e-38, %v1739_v48  ;;  %vm1738_vm8 = vcmp.eq.f32.partialorder %v1737_v26, 8.507059e+37 }
 0x5e3   :  { %v1686_v25 = vmul.f32 %v2313_v12, %v1685_v59  ;;  %v1702_v0 = vadd.f32 %v2309_v28, %v1701_v30 }
 0x5e5   :  { %v1687_v60 = vadd.f32 %v2313_v12, %v1686_v25  ;;  %v1706_v42 = vsel %vm3601_vm4, %v2309_v28, %v1702_v0 }
 0x5e6   :  { %v2315_v35 = vpop.eup %2314  ;;  %v1711_v50 = vsel %vm1708_vm10, %v1710_v19, %v1706_v42 }
 0x5e7   :  { %v1729_v9 = vmul.f32 %v2315_v35, %v1682_v17  ;;  %v2317_v49 = vpop.eup %2316  ;;  %vm1734_vm1 = vweird.f32 %v2315_v35  ;;  %v1691_v47 = vsel %vm1690_vm9, %v2313_v12, %v1687_v60  ;;  %v1745_v24 = vmul.f32 %v1711_v50, %v3566_v46 }
 0x5e8   :  { %v1714_v38 = vmul.f32 %v2317_v49, %v1681_v16  ;;  %vm1735_vm7 = vmor %vm1733_vm5, %vm1734_vm1  ;;  %v1696_v8 = vsel %vm1693_vm11, %v1695_v40, %v1691_v47  ;;  %vm1719_vm12 = vweird.f32 %v2317_v49  ;;  %v3785_v16 = vld [vmem:[#allocation39_spill] sm:$0xff] }
 0x5e9   :  { %v1730_v32 = vsub.f32 1.0, %v1729_v9  ;;  %vm1720_vm14 = vmor %vm1718_vm13, %vm1719_vm12  ;;  %v3786_v9 = vld [vmem:[#allocation40_spill] sm:$0xff] }
 0x5ea   :  { %v1715_v45 = vsub.f32 1.0, %v1714_v38 }
 0x5eb   :  { %v1731_v23 = vmul.f32 %v2315_v35, %v1730_v32 }
 0x5ec   :  { %v1716_v4 = vmul.f32 %v2317_v49, %v1715_v45 }
 0x5ed   :  { %v1732_v34 = vadd.f32 %v2315_v35, %v1731_v23 }
 0x5ee   :  { %v1717_v55 = vadd.f32 %v2317_v49, %v1716_v4 }
 0x5ef   :  { %v1736_v61 = vsel %vm1735_vm7, %v2315_v35, %v1732_v34 }
 0x5f0   :  { %v1741_v21 = vsel %vm1738_vm8, %v1740_v22, %v1736_v61  ;;  %v1721_v27 = vsel %vm1720_vm14, %v2317_v49, %v1717_v55 }
 0x5f1   :  { %v1743_v36 = vmul.f32 2.0, %v1741_v21  ;;  %v1726_v15 = vsel %vm1723_vm15, %v1725_v56, %v1721_v27 }
 0x5f3   :  { %v2140_v54 = vadd.f32 -1.0, %v1743_v36 }
 0x5f5   :  { %v1746_v29 = vmul.f32 %v2140_v54, %v1696_v8 }
 0x5f7   :  { %v3608_v39 = vadd.f32 %v1746_v29, %v1745_v24 }
 0x5f9   :  { %2318 = vtanh.f32 %v3608_v39 }
 0x5ff   :  { %v2319_v58 = vpop.eup %2318 }
 0x600   :  { %v1749_v2 = vmul.f32 %v2319_v58, %v1726_v15 }
 0x602   :  { %v1750_v37 = vpack.c.bf16 %v1749_v2, %v1749_v2 }
 0x604   :  { %1759 = vmatmul.bf16.vlgmr.msrb.gmra.mxu2 %v1750_v37  ;;  %1774 = vmatmul.bf16.vlgmr.msrb.gmra.mxu3 %v1750_v37 }
 0x605   :  { %1787 = vmatmul.bf16.vlgmr.msra.gmra.mxu0 %v1750_v37  ;;  %1800 = vmatmul.bf16.vlgmr.msra.gmra.mxu1 %v1750_v37 }
 0x614   :  { %1813 = vmatmul.bf16.vlgmr.msra.gmra.mxu2 %v1750_v37 }
 0x682   :  { %v1788_v46 = vpop.f32.mrf.mxu0  ;;  %v1801_v53 = vpop.f32.mrf.mxu1 }
 0x683   :  { %v1819_v52 = vadd.f32 %v1788_v46, %v3783_v14  ;;  %v1820_v57 = vadd.f32 %v1801_v53, %v3785_v16 }
 0x685   :  { %v2143_v41 = vmul.f32 -1.442695, %v1819_v52  ;;  %v2144_v59 = vmul.f32 -1.442695, %v1820_v57 }
 0x687   :  { %v1760_v31 = vpop.f32.mrf.mxu2  ;;  %v1775_v10 = vpop.f32.mrf.mxu3  ;;  %2320 = vpow2.f32 %v2143_v41 }
 0x688   :  { %v1761_v1 = vadd.f32 %v3548_v7, %v1760_v31  ;;  %v1818_v13 = vadd.f32 %v1775_v10, %v3784_v11 }
 0x68a   :  { %2141 = vst [vmem:[%s3638_s8 + $0x30] sm:$0xff] %v1761_v1  ;;  %v1790_v20 = vpop.f32.mrf.mxu0  ;;  %v1803_v28 = vpop.f32.mrf.mxu1  ;;  %v2142_v6 = vmul.f32 -1.442695, %v1818_v13 }
 0x68c   :  { %2322 = vpow2.f32 %v2142_v6 }
 0x68d   :  { %v2321_v33 = vpop.eup %2320  ;;  %2324 = vpow2.f32 %v2144_v59 }
 0x68e   :  { %v1835_v35 = vadd.f32 1.0, %v2321_v33 }
 0x68f   :  { %v1762_v12 = vpop.f32.mrf.mxu2  ;;  %v1777_v17 = vpop.f32.mrf.mxu3 }
 0x690   :  { %2326 = vrcp.f32 %v1835_v35  ;;  %vm1858_vm2 = vweird.f32 %v1835_v35  ;;  %v1862_v50 = vand.u32 2147483647, %v1835_v35  ;;  %v1864_v54 = vand.u32 2147483648, %v1835_v35 }
 0x692   :  { %v2323_v63 = vpop.eup %2322  ;;  %v1865_v58 = vor.u32 1.1754944e-38, %v1864_v54  ;;  %vm1863_vm10 = vcmp.eq.f32.partialorder %v1862_v50, 8.507059e+37 }
 0x693   :  { %v1834_v25 = vadd.f32 1.0, %v2323_v63  ;;  %v2325_v0 = vpop.eup %2324 }
 0x694   :  { %v1836_v60 = vadd.f32 1.0, %v2325_v0 }
 0x695   :  { %vm1843_vm6 = vweird.f32 %v1834_v25  ;;  %v1849_v55 = vand.u32 2147483648, %v1834_v25  ;;  %v1847_v27 = vand.u32 2147483647, %v1834_v25 }
 0x696   :  { %v2327_v23 = vpop.eup %2326  ;;  %v1879_v20 = vand.u32 2147483648, %v1836_v60  ;;  %vm1873_vm13 = vweird.f32 %v1836_v60  ;;  %v1877_v28 = vand.u32 2147483647, %v1836_v60 }
 0x697   :  { %v1814_v30 = vpop.f32.mrf.mxu2  ;;  %v1854_v44 = vmul.f32 %v2327_v23, %v1835_v35  ;;  %vm1859_vm0 = vweird.f32 %v2327_v23  ;;  %v1850_v14 = vor.u32 1.1754944e-38, %v1849_v55  ;;  %vm1848_vm11 = vcmp.eq.f32.partialorder %v1847_v27, 8.507059e+37 }
 0x698   :  { %v1821_v49 = vadd.f32 %v1814_v30, %v3786_v9  ;;  %vm3619_vm3 = vmor %vm1858_vm2, %vm1859_vm0  ;;  %v1880_v12 = vor.u32 1.1754944e-38, %v1879_v20  ;;  %vm1878_vm15 = vcmp.eq.f32.partialorder %v1877_v28, 8.507059e+37 }
 0x699   :  { %v1855_v34 = vsub.f32 1.0, %v1854_v44 }
 0x69a   :  { %v2145_v32 = vmul.f32 -1.442695, %v1821_v49 }
 0x69b   :  { %v1856_v51 = vmul.f32 %v2327_v23, %v1855_v34 }
 0x69c   :  { %2328 = vpow2.f32 %v2145_v32 }
 0x69d   :  { %2330 = vrcp.f32 %v1834_v25  ;;  %v1857_v47 = vadd.f32 %v2327_v23, %v1856_v51 }
 0x69f   :  { %v1816_v48 = vpop.f32.mrf.mxu2  ;;  %v1861_v18 = vsel %vm3619_vm3, %v2327_v23, %v1857_v47 }
 0x6a0   :  { %v1866_v53 = vsel %vm1863_vm10, %v1865_v58, %v1861_v18 }
 0x6a1   :  { %v1900_v1 = vmul.f32 %v1866_v53, %v3608_v39 }
 0x6a2   :  { %v2329_v26 = vpop.eup %2328 }
 0x6a3   :  { %v2331_v38 = vpop.eup %2330  ;;  %v1837_v43 = vadd.f32 1.0, %v2329_v26 }
 0x6a4   :  { %v1839_v3 = vmul.f32 %v2331_v38, %v1834_v25  ;;  %vm1844_vm4 = vweird.f32 %v2331_v38 }
 0x6a5   :  { %2332 = vrcp.f32 %v1837_v43  ;;  %v1894_v21 = vand.u32 2147483648, %v1837_v43  ;;  %v1892_v40 = vand.u32 2147483647, %v1837_v43  ;;  %vm1888_vm5 = vweird.f32 %v1837_v43  ;;  %vm1845_vm9 = vmor %vm1843_vm6, %vm1844_vm4 }
 0x6a6   :  { %2334 = vrcp.f32 %v1836_v60  ;;  %v1840_v62 = vsub.f32 1.0, %v1839_v3 }
 0x6a7   :  { %v1895_v5 = vor.u32 1.1754944e-38, %v1894_v21  ;;  %vm1893_vm8 = vcmp.eq.f32.partialorder %v1892_v40, 8.507059e+37 }
 0x6a8   :  { %v1841_v45 = vmul.f32 %v2331_v38, %v1840_v62 }
 0x6aa   :  { %v1842_v24 = vadd.f32 %v2331_v38, %v1841_v45 }
 0x6ab   :  { %v2333_v22 = vpop.eup %2332 }
 0x6ac   :  { %v1884_v42 = vmul.f32 %v2333_v22, %v1837_v43  ;;  %v2335_v61 = vpop.eup %2334  ;;  %vm1889_vm1 = vweird.f32 %v2333_v22  ;;  %v1846_v37 = vsel %vm1845_vm9, %v2331_v38, %v1842_v24 }
 0x6ad   :  { %v1869_v4 = vmul.f32 %v2335_v61, %v1836_v60  ;;  %vm1890_vm7 = vmor %vm1888_vm5, %vm1889_vm1  ;;  %v1851_v10 = vsel %vm1848_vm11, %v1850_v14, %v1846_v37  ;;  %vm1874_vm12 = vweird.f32 %v2335_v61 }
 0x6ae   :  { %v1885_v19 = vsub.f32 1.0, %v1884_v42  ;;  %vm1875_vm14 = vmor %vm1873_vm13, %vm1874_vm12 }
 0x6af   :  { %v1870_v15 = vsub.f32 1.0, %v1869_v4 }
 0x6b0   :  { %v1886_v36 = vmul.f32 %v2333_v22, %v1885_v19 }
 0x6b1   :  { %v1871_v31 = vmul.f32 %v2335_v61, %v1870_v15 }
 0x6b2   :  { %v1887_v29 = vadd.f32 %v2333_v22, %v1886_v36 }
 0x6b3   :  { %v1872_v41 = vadd.f32 %v2335_v61, %v1871_v31 }
 0x6b4   :  { %v1891_v56 = vsel %vm1890_vm7, %v2333_v22, %v1887_v29 }
 0x6b5   :  { %v1896_v2 = vsel %vm1893_vm8, %v1895_v5, %v1891_v56  ;;  %v1876_v6 = vsel %vm1875_vm14, %v2335_v61, %v1872_v41 }
 0x6b6   :  { %v1898_v46 = vmul.f32 2.0, %v1896_v2  ;;  %v1881_v16 = vsel %vm1878_vm15, %v1880_v12, %v1876_v6 }
 0x6b8   :  { %v2146_v52 = vadd.f32 -1.0, %v1898_v46 }
 0x6ba   :  { %v1901_v11 = vmul.f32 %v2146_v52, %v1851_v10 }
 0x6bc   :  { %v1902_v13 = vadd.f32 %v1901_v11, %v1900_v1 }
 0x6be   :  { %2336 = vtanh.f32 %v1902_v13 }
 0x6c4   :  { %v2337_v17 = vpop.eup %2336 }
 0x6c5   :  { %v1904_v57 = vmul.f32 %v2337_v17, %v1881_v16 }
 0x6c7   :  { %v1905_v33 = vpack.c.bf16 %v1904_v57, %v1904_v57 }
 0x6c9   :  { %1914 = vmatmul.bf16.vlgmr.msra.gmra.mxu3 %v1905_v33 }
 0x74c   :  { %v1915_v63 = vpop.f32.mrf.mxu3 }
 0x74d   :  { %v1916_v39 = vadd.f32 %v3548_v7, %v1915_v63 }
 0x74f   :  { %2147 = vst [vmem:[%s3638_s8 + $0x38] sm:$0xff] %v1916_v39 }
 0x754   :  { %v1917_v59 = vpop.f32.mrf.mxu3 }

</bundles_post_ra>
